<compile_context>
chip_gen: v7x
topology: tpu7x:2x2x1
jax: 0.10.0
libtpu: 0.0.40
codegen_flags: <defaults>
</compile_context>

<pallas_src>
import functools

import jax
import jax.numpy as jnp
from jax import lax
from jax.experimental import pallas as pl
from jax.experimental.pallas import tpu as pltpu

NEG_SLOPE = 0.01   # nn.LeakyReLU default
GC = 32            # growth channels of the dense block
SUBLANE_PAD = 16   # pad each source's 9*csrc tap-row block to a multiple of this


def _round_up(x, m):
    return (x + m - 1) // m * m


# ------------------------- fused Pallas kernel -------------------------------

def _rdb_fused_kernel(x_ref, w1, b1, w2, b2, w3, b3, w4, b4, w5, b5,
                      o_ref, shift_ref, patch_ref, *,
                      H, W, Cin, block_starts, block_sizes, k_prefix):
    HW = H * W
    PAD = W + 1                        # zero-border width of the shift buffer
    cdtype = patch_ref.dtype
    splits = (Cin, GC, GC, GC, GC)

    # Re-established every grid step (batch axis is "parallel"; see header).
    shift_ref[...] = jnp.zeros_like(shift_ref)          # zero borders (tiny)
    for s in range(5):                                   # zero alignment-pad rows
        lo = block_starts[s] + 9 * splits[s]
        hi = block_starts[s] + block_sizes[s]
        if hi > lo:
            patch_ref[lo:hi, :] = jnp.zeros((hi - lo, HW), cdtype)

    # Horizontal-wrap masks (vertical halo is handled by the zero borders).
    w_idx = lax.broadcasted_iota(jnp.int32, (1, HW), 1) % W
    not_left = w_idx >= 1            # valid lanes when a tap reads column w-1
    not_right = w_idx <= W - 2       # valid lanes when a tap reads column w+1

    def stage_source(act_cd, src):
        """Append the 9 shifted 3x3 taps of a (csrc, HW) activation to patch."""
        csrc = splits[src]
        r0 = block_starts[src]
        shift_ref[0:csrc, PAD:PAD + HW] = act_cd
        for dy in range(3):
            for dx in range(3):
                off = (dy - 1) * W + (dx - 1)
                tap = shift_ref[0:csrc, PAD + off:PAD + off + HW]
                if dx == 0:
                    tap = jnp.where(not_left, tap, 0)
                elif dx == 2:
                    tap = jnp.where(not_right, tap, 0)
                t = dy * 3 + dx
                patch_ref[r0 + t * csrc:r0 + (t + 1) * csrc, :] = tap

    def conv(w_ref, b_ref, k, apply_lrelu):
        # One lane-dense MXU matmul: (Cout_k, K_k) @ (K_k, HW) -> (Cout_k, HW).
        acc = jnp.dot(w_ref[...], patch_ref[0:k_prefix[k], :],
                      preferred_element_type=jnp.float32)
        acc = acc + b_ref[...]
        if apply_lrelu:
            acc = jnp.where(acc >= 0, acc, NEG_SLOPE * acc)
        return acc                                       # (Cout_k, HW) f32

    stage_source(x_ref[...].astype(cdtype), 0)                       # x
    a1 = conv(w1, b1, 0, True); stage_source(a1.astype(cdtype), 1)   # x1
    a2 = conv(w2, b2, 1, True); stage_source(a2.astype(cdtype), 2)   # x2
    a3 = conv(w3, b3, 2, True); stage_source(a3.astype(cdtype), 3)   # x3
    a4 = conv(w4, b4, 3, True); stage_source(a4.astype(cdtype), 4)   # x4
    a5 = conv(w5, b5, 4, False)                                      # x5

    o_ref[...] = a5.astype(o_ref.dtype)


# ------------------------- wrapper --------------------------------------------

def _pack_conv_weight(w_oihw, splits, block_sizes, dtype):
    """(Cout, Cin_total, 3, 3) -> (Cout, sum(block_sizes)): columns ordered
    (source, tap, channel), each source block zero-padded to its aligned size,
    matching the kernel's im2col row layout."""
    cout = w_oihw.shape[0]
    cols, start = [], 0
    for csrc, bsize in zip(splits, block_sizes):
        ws = w_oihw[:, start:start + csrc]               # (Cout, csrc, 3, 3)
        ws = jnp.transpose(ws, (0, 2, 3, 1))             # (Cout, ky, kx, csrc)
        ws = ws.reshape(cout, 9 * csrc)
        if bsize > 9 * csrc:
            ws = jnp.concatenate(
                [ws, jnp.zeros((cout, bsize - 9 * csrc), ws.dtype)], axis=1)
        cols.append(ws)
        start += csrc
    return jnp.concatenate(cols, axis=1).astype(dtype)


@functools.partial(jax.jit, static_argnames=("compute_dtype",))
def residual_dense_block_out(params, x_nchw, *, compute_dtype=jnp.bfloat16):
    """ResidualDenseBlock_out forward. x: (N, Cin, H, W) -> (N, Cout, H, W)."""
    N, Cin, H, W = x_nchw.shape
    HW = H * W
    Cout = params["conv5"][0].shape[0]

    splits = (Cin, GC, GC, GC, GC)
    block_sizes = tuple(_round_up(9 * c, SUBLANE_PAD) for c in splits)
    block_starts = tuple(sum(block_sizes[:i]) for i in range(5))
    k_prefix = tuple(sum(block_sizes[:i + 1]) for i in range(5))
    K_total = k_prefix[-1]

    x_flat = x_nchw.reshape(N, Cin, HW)   # stays NCHW; no transpose needed

    args, w_specs = [], []
    for k in range(1, 6):
        w, b = params[f"conv{k}"]
        cout_k = w.shape[0]
        kk = k_prefix[k - 1]
        args += [_pack_conv_weight(w, splits[:k], block_sizes[:k], compute_dtype),
                 b.reshape(cout_k, 1).astype(jnp.float32)]
        w_specs += [pl.BlockSpec((cout_k, kk), lambda n: (0, 0)),
                    pl.BlockSpec((cout_k, 1), lambda n: (0, 0))]

    kernel = functools.partial(
        _rdb_fused_kernel, H=H, W=W, Cin=Cin,
        block_starts=block_starts, block_sizes=block_sizes, k_prefix=k_prefix)

    out = pl.pallas_call(
        kernel,
        out_shape=jax.ShapeDtypeStruct((N, Cout, HW), x_nchw.dtype),
        grid=(N,),
        in_specs=[pl.BlockSpec((None, Cin, HW), lambda n: (n, 0, 0))] + w_specs,
        out_specs=pl.BlockSpec((None, Cout, HW), lambda n: (n, 0, 0)),
        scratch_shapes=[
            pltpu.VMEM((max(Cin, GC), HW + 2 * (W + 1)), compute_dtype),  # shift buf
            pltpu.VMEM((K_total, HW), compute_dtype),                     # im2col
        ],
        compiler_params=pltpu.CompilerParams(
            dimension_semantics=("parallel",),
            vmem_limit_bytes=32 * 1024 * 1024),
    )(x_flat, *args)

    # (N, Cout, H*W) is already channel-major: reshape only, no transpose.
    return out.reshape(N, Cout, H, W)


# ------------------------- parameter init (deterministic) --------------------

def make_rdb_params(key, cin, cout, *, conv5_scale=0.0):
    def conv_param(k, c_in, c_out, scale=1.0, bias_scale=0.0):
        kw, kb = jax.random.split(k)
        std = (2.0 / (c_in * 9)) ** 0.5  # kaiming_normal_(a=0, fan_in), 3x3
        w = jax.random.normal(kw, (c_out, c_in, 3, 3), jnp.float32) * std * scale
        b = jax.random.normal(kb, (c_out,), jnp.float32) * bias_scale
        return w, b

    ks = jax.random.split(key, 5)
    p = {}
    p["conv1"] = conv_param(ks[0], cin, GC, bias_scale=0.05)
    p["conv2"] = conv_param(ks[1], cin + GC, GC, bias_scale=0.05)
    p["conv3"] = conv_param(ks[2], cin + 2 * GC, GC, bias_scale=0.05)
    p["conv4"] = conv_param(ks[3], cin + 3 * GC, GC, bias_scale=0.05)
    # initialize_weights([conv5], 0.0): weight * 0, bias zeroed.
    p["conv5"] = conv_param(ks[4], cin + 4 * GC, cout, scale=conv5_scale,
                            bias_scale=0.0)
    return p


# ------------------------- pure-JAX reference (validation) -------------------

def _conv3x3_ref(x_nhwc, w_oihw, b, *, apply_lrelu, compute_dtype):
    cout = w_oihw.shape[0]
    w_hwio = jnp.transpose(w_oihw, (2, 3, 1, 0)).astype(compute_dtype)
    y = lax.conv_general_dilated(
        x_nhwc.astype(compute_dtype), w_hwio,
        window_strides=(1, 1), padding=((1, 1), (1, 1)),
        dimension_numbers=("NHWC", "HWIO", "NHWC"),
        preferred_element_type=jnp.float32)
    y = y + b.reshape(1, 1, 1, cout)
    if apply_lrelu:
        y = jnp.where(y >= 0, y, NEG_SLOPE * y)
    return y


def _rdb_reference(params, x_nchw, *, compute_dtype):
    x = jnp.transpose(x_nchw, (0, 2, 3, 1)).astype(jnp.float32)
    cd = compute_dtype
    x1 = _conv3x3_ref(x, *params["conv1"], apply_lrelu=True, compute_dtype=cd)
    x2 = _conv3x3_ref(jnp.concatenate([x, x1], -1), *params["conv2"],
                      apply_lrelu=True, compute_dtype=cd)
    x3 = _conv3x3_ref(jnp.concatenate([x, x1, x2], -1), *params["conv3"],
                      apply_lrelu=True, compute_dtype=cd)
    x4 = _conv3x3_ref(jnp.concatenate([x, x1, x2, x3], -1), *params["conv4"],
                      apply_lrelu=True, compute_dtype=cd)
    x5 = _conv3x3_ref(jnp.concatenate([x, x1, x2, x3, x4], -1), *params["conv5"],
                      apply_lrelu=False, compute_dtype=cd)
    return jnp.transpose(x5, (0, 3, 1, 2))


# ------------------------- main -----------------------------------------------

if __name__ == "__main__":
    key = jax.random.PRNGKey(0)
    k_x, k_p = jax.random.split(key)

    N, C_IN, H, W = 2, 4, 16, 16
    C_OUT = 4
    x_nchw = jax.random.normal(k_x, (N, C_IN, H, W), jnp.float32)

    # Module-faithful parameters (conv5 zero-initialized, as in the PyTorch code).
    params = make_rdb_params(k_p, C_IN, C_OUT, conv5_scale=0.0)
    out = jax.block_until_ready(residual_dense_block_out(params, x_nchw))
    assert out.shape == (N, C_OUT, H, W)
    assert bool(jnp.all(out == 0.0))  # conv5 weight & bias are exactly zero

    # Validation with a non-zero conv5 so the whole dense chain is exercised.
    params_v = make_rdb_params(k_p, C_IN, C_OUT, conv5_scale=1.0)

    # f32 compute mode: tight check of the im2col / tap / channel re-indexing.
    out_f32 = residual_dense_block_out(params_v, x_nchw,
                                       compute_dtype=jnp.float32)
    ref_f32 = _rdb_reference(params_v, x_nchw, compute_dtype=jnp.float32)
    err_f32 = float(jnp.max(jnp.abs(out_f32 - ref_f32)))
    assert jnp.allclose(out_f32, ref_f32, atol=1e-2, rtol=1e-2), err_f32

    # bf16 compute mode (default / production). Looser tolerance: kernel and
    # lax.conv round the same intermediates to bf16 after slightly different
    # f32 accumulation orders, which can flip a few bf16 ulps down the chain.
    out_bf16 = residual_dense_block_out(params_v, x_nchw)
    ref_bf16 = _rdb_reference(params_v, x_nchw, compute_dtype=jnp.bfloat16)
    err_bf16 = float(jnp.max(jnp.abs(out_bf16 - ref_bf16)))
    assert jnp.allclose(out_bf16, ref_bf16, atol=5e-2, rtol=5e-2), err_bf16

    print("KERNEL_OK")
</pallas_src>

<mosaic_0001>
module attributes {stable_mosaic.version = 11 : i64} {
  func.func @_rdb_fused_kernel(%arg0: i32, %arg1: memref<1x4x256xf32, #tpu.memory_space<vmem>>, %arg2: memref<32x48xbf16, #tpu.memory_space<vmem>>, %arg3: memref<32x1xf32, #tpu.memory_space<vmem>>, %arg4: memref<32x336xbf16, #tpu.memory_space<vmem>>, %arg5: memref<32x1xf32, #tpu.memory_space<vmem>>, %arg6: memref<32x624xbf16, #tpu.memory_space<vmem>>, %arg7: memref<32x1xf32, #tpu.memory_space<vmem>>, %arg8: memref<32x912xbf16, #tpu.memory_space<vmem>>, %arg9: memref<32x1xf32, #tpu.memory_space<vmem>>, %arg10: memref<4x1200xbf16, #tpu.memory_space<vmem>>, %arg11: memref<4x1xf32, #tpu.memory_space<vmem>>, %arg12: memref<1x4x256xf32, #tpu.memory_space<vmem>>, %arg13: memref<32x290xbf16, #tpu.memory_space<vmem>>, %arg14: memref<1200x256xbf16, #tpu.memory_space<vmem>>) attributes {dimension_semantics = [#tpu.dimension_semantics<parallel>], iteration_bounds = array<i64: 2>, scalar_prefetch = 0 : i64, scratch_operands = 2 : i64, tpu.core_type = #tpu.core_type<tc>, window_params = [{transform_indices = @transform_0, window_bounds = array<i64: 1, 4, 256>}, {pipeline_mode = #tpu.pipeline_mode<synchronous>, transform_indices = @transform_1, window_bounds = array<i64: 32, 48>}, {pipeline_mode = #tpu.pipeline_mode<synchronous>, transform_indices = @transform_2, window_bounds = array<i64: 32, 1>}, {pipeline_mode = #tpu.pipeline_mode<synchronous>, transform_indices = @transform_3, window_bounds = array<i64: 32, 336>}, {pipeline_mode = #tpu.pipeline_mode<synchronous>, transform_indices = @transform_4, window_bounds = array<i64: 32, 1>}, {pipeline_mode = #tpu.pipeline_mode<synchronous>, transform_indices = @transform_5, window_bounds = array<i64: 32, 624>}, {pipeline_mode = #tpu.pipeline_mode<synchronous>, transform_indices = @transform_6, window_bounds = array<i64: 32, 1>}, {pipeline_mode = #tpu.pipeline_mode<synchronous>, transform_indices = @transform_7, window_bounds = array<i64: 32, 912>}, {pipeline_mode = #tpu.pipeline_mode<synchronous>, transform_indices = @transform_8, window_bounds = array<i64: 32, 1>}, {pipeline_mode = #tpu.pipeline_mode<synchronous>, transform_indices = @transform_9, window_bounds = array<i64: 4, 1200>}, {pipeline_mode = #tpu.pipeline_mode<synchronous>, transform_indices = @transform_10, window_bounds = array<i64: 4, 1>}, {transform_indices = @transform_11, window_bounds = array<i64: 1, 4, 256>}]} {
    %cst = arith.constant 0.000000e+00 : bf16
    %0 = vector.broadcast %cst : bf16 to vector<32x290xbf16>
    %c0 = arith.constant 0 : index
    %c0_0 = arith.constant 0 : index
    %1 = vector.load %arg13[%c0, %c0_0] : memref<32x290xbf16, #tpu.memory_space<vmem>>, vector<32x290xbf16>
    tpu.vector_store %arg13[%c0, %c0_0], %0 {strides = array<i32>} : memref<32x290xbf16, #tpu.memory_space<vmem>>, vector<32x290xbf16>,
    %cst_1 = arith.constant 0.000000e+00 : bf16
    %2 = vector.broadcast %cst_1 : bf16 to vector<12x256xbf16>
    %c36 = arith.constant 36 : index
    %c0_2 = arith.constant 0 : index
    %3 = vector.load %arg14[%c36, %c0_2] : memref<1200x256xbf16, #tpu.memory_space<vmem>>, vector<12x256xbf16>
    tpu.vector_store %arg14[%c36, %c0_2], %2 {strides = array<i32>} : memref<1200x256xbf16, #tpu.memory_space<vmem>>, vector<12x256xbf16>,
    %4 = tpu.iota {dimensions = array<i32: 1>} : vector<1x256xi32>
    %c16_i32 = arith.constant 16 : i32
    %c0_i32 = arith.constant 0 : i32
    %5 = arith.cmpi eq, %c16_i32, %c0_i32 : i32
    %c1_i32 = arith.constant 1 : i32
    %6 = arith.select %5, %c1_i32, %c16_i32 : i32
    %7 = vector.broadcast %6 : i32 to vector<1x256xi32>
    %8 = arith.remsi %4, %7 : vector<1x256xi32>
    %c0_i32_3 = arith.constant 0 : i32
    %9 = vector.broadcast %c0_i32_3 : i32 to vector<1x256xi32>
    %10 = arith.cmpi ne, %8, %9 : vector<1x256xi32>
    %c0_i32_4 = arith.constant 0 : i32
    %11 = vector.broadcast %c0_i32_4 : i32 to vector<1x256xi32>
    %12 = arith.cmpi slt, %8, %11 : vector<1x256xi32>
    %c0_i32_5 = arith.constant 0 : i32
    %13 = arith.cmpi slt, %6, %c0_i32_5 : i32
    %14 = vector.broadcast %13 : i1 to vector<1x256xi1>
    %15 = vector.broadcast %14 : vector<1x256xi1> to vector<1x256xi1>
    %16 = arith.xori %12, %15 : vector<1x256xi1>
    %17 = arith.andi %16, %10 : vector<1x256xi1>
    %18 = vector.broadcast %6 : i32 to vector<1x256xi32>
    %19 = arith.addi %8, %18 : vector<1x256xi32>
    %20 = arith.select %17, %19, %8 : vector<1x256xi1>, vector<1x256xi32>
    %c1_i32_6 = arith.constant 1 : i32
    %21 = vector.broadcast %c1_i32_6 : i32 to vector<1x256xi32>
    %22 = arith.cmpi sge, %20, %21 : vector<1x256xi32>
    %c14_i32 = arith.constant 14 : i32
    %23 = vector.broadcast %c14_i32 : i32 to vector<1x256xi32>
    %24 = arith.cmpi sle, %20, %23 : vector<1x256xi32>
    %c0_7 = arith.constant 0 : index
    %c0_8 = arith.constant 0 : index
    %c0_9 = arith.constant 0 : index
    %25 = vector.load %arg1[%c0_7, %c0_8, %c0_9] : memref<1x4x256xf32, #tpu.memory_space<vmem>>, vector<1x4x256xf32>
    %26 = vector.shape_cast %25 : vector<1x4x256xf32> to vector<4x256xf32>
    %27 = arith.truncf %26 : vector<4x256xf32> to vector<4x256xbf16>
    %c0_10 = arith.constant 0 : index
    %c17 = arith.constant 17 : index
    %28 = vector.load %arg13[%c0_10, %c17] : memref<32x290xbf16, #tpu.memory_space<vmem>>, vector<4x256xbf16>
    tpu.vector_store %arg13[%c0_10, %c17], %27 {strides = array<i32>} : memref<32x290xbf16, #tpu.memory_space<vmem>>, vector<4x256xbf16>,
    %c0_11 = arith.constant 0 : index
    %c0_12 = arith.constant 0 : index
    %29 = vector.load %arg13[%c0_11, %c0_12] : memref<32x290xbf16, #tpu.memory_space<vmem>>, vector<4x256xbf16>
    %c0_i32_13 = arith.constant 0 : i32
    %30 = arith.sitofp %c0_i32_13 : i32 to bf16
    %31 = vector.shape_cast %22 : vector<1x256xi1> to vector<1x256xi1>
    %32 = vector.broadcast %31 : vector<1x256xi1> to vector<4x256xi1>
    %33 = vector.broadcast %30 : bf16 to vector<4x256xbf16>
    %34 = arith.select %32, %29, %33 : vector<4x256xi1>, vector<4x256xbf16>
    %c0_14 = arith.constant 0 : index
    %c0_15 = arith.constant 0 : index
    %35 = vector.load %arg14[%c0_14, %c0_15] : memref<1200x256xbf16, #tpu.memory_space<vmem>>, vector<4x256xbf16>
    tpu.vector_store %arg14[%c0_14, %c0_15], %34 {strides = array<i32>} : memref<1200x256xbf16, #tpu.memory_space<vmem>>, vector<4x256xbf16>,
    %c0_16 = arith.constant 0 : index
    %c1 = arith.constant 1 : index
    %36 = vector.load %arg13[%c0_16, %c1] : memref<32x290xbf16, #tpu.memory_space<vmem>>, vector<4x256xbf16>
    %c4 = arith.constant 4 : index
    %c0_17 = arith.constant 0 : index
    %37 = vector.load %arg14[%c4, %c0_17] : memref<1200x256xbf16, #tpu.memory_space<vmem>>, vector<4x256xbf16>
    tpu.vector_store %arg14[%c4, %c0_17], %36 {strides = array<i32>} : memref<1200x256xbf16, #tpu.memory_space<vmem>>, vector<4x256xbf16>,
    %c0_18 = arith.constant 0 : index
    %c2 = arith.constant 2 : index
    %38 = vector.load %arg13[%c0_18, %c2] : memref<32x290xbf16, #tpu.memory_space<vmem>>, vector<4x256xbf16>
    %c0_i32_19 = arith.constant 0 : i32
    %39 = arith.sitofp %c0_i32_19 : i32 to bf16
    %40 = vector.shape_cast %24 : vector<1x256xi1> to vector<1x256xi1>
    %41 = vector.broadcast %40 : vector<1x256xi1> to vector<4x256xi1>
    %42 = vector.broadcast %39 : bf16 to vector<4x256xbf16>
    %43 = arith.select %41, %38, %42 : vector<4x256xi1>, vector<4x256xbf16>
    %c8 = arith.constant 8 : index
    %c0_20 = arith.constant 0 : index
    %44 = vector.load %arg14[%c8, %c0_20] : memref<1200x256xbf16, #tpu.memory_space<vmem>>, vector<4x256xbf16>
    tpu.vector_store %arg14[%c8, %c0_20], %43 {strides = array<i32>} : memref<1200x256xbf16, #tpu.memory_space<vmem>>, vector<4x256xbf16>,
    %c0_21 = arith.constant 0 : index
    %c16 = arith.constant 16 : index
    %45 = vector.load %arg13[%c0_21, %c16] : memref<32x290xbf16, #tpu.memory_space<vmem>>, vector<4x256xbf16>
    %c0_i32_22 = arith.constant 0 : i32
    %46 = arith.sitofp %c0_i32_22 : i32 to bf16
    %47 = vector.shape_cast %22 : vector<1x256xi1> to vector<1x256xi1>
    %48 = vector.broadcast %47 : vector<1x256xi1> to vector<4x256xi1>
    %49 = vector.broadcast %46 : bf16 to vector<4x256xbf16>
    %50 = arith.select %48, %45, %49 : vector<4x256xi1>, vector<4x256xbf16>
    %c12 = arith.constant 12 : index
    %c0_23 = arith.constant 0 : index
    %51 = vector.load %arg14[%c12, %c0_23] : memref<1200x256xbf16, #tpu.memory_space<vmem>>, vector<4x256xbf16>
    tpu.vector_store %arg14[%c12, %c0_23], %50 {strides = array<i32>} : memref<1200x256xbf16, #tpu.memory_space<vmem>>, vector<4x256xbf16>,
    %c0_24 = arith.constant 0 : index
    %c17_25 = arith.constant 17 : index
    %52 = vector.load %arg13[%c0_24, %c17_25] : memref<32x290xbf16, #tpu.memory_space<vmem>>, vector<4x256xbf16>
    %c16_26 = arith.constant 16 : index
    %c0_27 = arith.constant 0 : index
    %53 = vector.load %arg14[%c16_26, %c0_27] : memref<1200x256xbf16, #tpu.memory_space<vmem>>, vector<4x256xbf16>
    tpu.vector_store %arg14[%c16_26, %c0_27], %52 {strides = array<i32>} : memref<1200x256xbf16, #tpu.memory_space<vmem>>, vector<4x256xbf16>,
    %c0_28 = arith.constant 0 : index
    %c18 = arith.constant 18 : index
    %54 = vector.load %arg13[%c0_28, %c18] : memref<32x290xbf16, #tpu.memory_space<vmem>>, vector<4x256xbf16>
    %c0_i32_29 = arith.constant 0 : i32
    %55 = arith.sitofp %c0_i32_29 : i32 to bf16
    %56 = vector.shape_cast %24 : vector<1x256xi1> to vector<1x256xi1>
    %57 = vector.broadcast %56 : vector<1x256xi1> to vector<4x256xi1>
    %58 = vector.broadcast %55 : bf16 to vector<4x256xbf16>
    %59 = arith.select %57, %54, %58 : vector<4x256xi1>, vector<4x256xbf16>
    %c20 = arith.constant 20 : index
    %c0_30 = arith.constant 0 : index
    %60 = vector.load %arg14[%c20, %c0_30] : memref<1200x256xbf16, #tpu.memory_space<vmem>>, vector<4x256xbf16>
    tpu.vector_store %arg14[%c20, %c0_30], %59 {strides = array<i32>} : memref<1200x256xbf16, #tpu.memory_space<vmem>>, vector<4x256xbf16>,
    %c0_31 = arith.constant 0 : index
    %c32 = arith.constant 32 : index
    %61 = vector.load %arg13[%c0_31, %c32] : memref<32x290xbf16, #tpu.memory_space<vmem>>, vector<4x256xbf16>
    %c0_i32_32 = arith.constant 0 : i32
    %62 = arith.sitofp %c0_i32_32 : i32 to bf16
    %63 = vector.shape_cast %22 : vector<1x256xi1> to vector<1x256xi1>
    %64 = vector.broadcast %63 : vector<1x256xi1> to vector<4x256xi1>
    %65 = vector.broadcast %62 : bf16 to vector<4x256xbf16>
    %66 = arith.select %64, %61, %65 : vector<4x256xi1>, vector<4x256xbf16>
    %c24 = arith.constant 24 : index
    %c0_33 = arith.constant 0 : index
    %67 = vector.load %arg14[%c24, %c0_33] : memref<1200x256xbf16, #tpu.memory_space<vmem>>, vector<4x256xbf16>
    tpu.vector_store %arg14[%c24, %c0_33], %66 {strides = array<i32>} : memref<1200x256xbf16, #tpu.memory_space<vmem>>, vector<4x256xbf16>,
    %c0_34 = arith.constant 0 : index
    %c33 = arith.constant 33 : index
    %68 = vector.load %arg13[%c0_34, %c33] : memref<32x290xbf16, #tpu.memory_space<vmem>>, vector<4x256xbf16>
    %c28 = arith.constant 28 : index
    %c0_35 = arith.constant 0 : index
    %69 = vector.load %arg14[%c28, %c0_35] : memref<1200x256xbf16, #tpu.memory_space<vmem>>, vector<4x256xbf16>
    tpu.vector_store %arg14[%c28, %c0_35], %68 {strides = array<i32>} : memref<1200x256xbf16, #tpu.memory_space<vmem>>, vector<4x256xbf16>,
    %c0_36 = arith.constant 0 : index
    %c34 = arith.constant 34 : index
    %70 = vector.load %arg13[%c0_36, %c34] : memref<32x290xbf16, #tpu.memory_space<vmem>>, vector<4x256xbf16>
    %c0_i32_37 = arith.constant 0 : i32
    %71 = arith.sitofp %c0_i32_37 : i32 to bf16
    %72 = vector.shape_cast %24 : vector<1x256xi1> to vector<1x256xi1>
    %73 = vector.broadcast %72 : vector<1x256xi1> to vector<4x256xi1>
    %74 = vector.broadcast %71 : bf16 to vector<4x256xbf16>
    %75 = arith.select %73, %70, %74 : vector<4x256xi1>, vector<4x256xbf16>
    %c32_38 = arith.constant 32 : index
    %c0_39 = arith.constant 0 : index
    %76 = vector.load %arg14[%c32_38, %c0_39] : memref<1200x256xbf16, #tpu.memory_space<vmem>>, vector<4x256xbf16>
    tpu.vector_store %arg14[%c32_38, %c0_39], %75 {strides = array<i32>} : memref<1200x256xbf16, #tpu.memory_space<vmem>>, vector<4x256xbf16>,
    %c0_40 = arith.constant 0 : index
    %c0_41 = arith.constant 0 : index
    %77 = vector.load %arg2[%c0_40, %c0_41] : memref<32x48xbf16, #tpu.memory_space<vmem>>, vector<32x48xbf16>
    %c0_42 = arith.constant 0 : index
    %c0_43 = arith.constant 0 : index
    %78 = vector.load %arg14[%c0_42, %c0_43] : memref<1200x256xbf16, #tpu.memory_space<vmem>>, vector<48x256xbf16>
    %cst_44 = arith.constant dense<0.000000e+00> : vector<32x256xf32>
    %79 = tpu.matmul %77, %78, %cst_44 {dimension_numbers = #tpu.dot_dimension_numbers<[1], [0], [0], [1], [0, 0, 1, 1], [], []>} : vector<32x48xbf16>, vector<48x256xbf16>, vector<32x256xf32> -> vector<32x256xf32>
    %c0_45 = arith.constant 0 : index
    %c0_46 = arith.constant 0 : index
    %80 = vector.load %arg3[%c0_45, %c0_46] : memref<32x1xf32, #tpu.memory_space<vmem>>, vector<32x1xf32>
    %81 = vector.broadcast %80 : vector<32x1xf32> to vector<32x256xf32>
    %82 = arith.addf %79, %81 : vector<32x256xf32>
    %cst_47 = arith.constant 0.000000e+00 : f32
    %83 = vector.broadcast %cst_47 : f32 to vector<32x256xf32>
    %84 = arith.cmpf oge, %82, %83 : vector<32x256xf32>
    %cst_48 = arith.constant 0.00999999977 : f32
    %85 = vector.broadcast %cst_48 : f32 to vector<32x256xf32>
    %86 = arith.mulf %85, %82 : vector<32x256xf32>
    %87 = arith.select %84, %82, %86 : vector<32x256xi1>, vector<32x256xf32>
    %88 = arith.truncf %87 : vector<32x256xf32> to vector<32x256xbf16>
    %c0_49 = arith.constant 0 : index
    %c17_50 = arith.constant 17 : index
    %89 = vector.load %arg13[%c0_49, %c17_50] : memref<32x290xbf16, #tpu.memory_space<vmem>>, vector<32x256xbf16>
    tpu.vector_store %arg13[%c0_49, %c17_50], %88 {strides = array<i32>} : memref<32x290xbf16, #tpu.memory_space<vmem>>, vector<32x256xbf16>,
    %c0_51 = arith.constant 0 : index
    %c0_52 = arith.constant 0 : index
    %90 = vector.load %arg13[%c0_51, %c0_52] : memref<32x290xbf16, #tpu.memory_space<vmem>>, vector<32x256xbf16>
    %c0_i32_53 = arith.constant 0 : i32
    %91 = arith.sitofp %c0_i32_53 : i32 to bf16
    %92 = vector.shape_cast %22 : vector<1x256xi1> to vector<1x256xi1>
    %93 = vector.broadcast %92 : vector<1x256xi1> to vector<32x256xi1>
    %94 = vector.broadcast %91 : bf16 to vector<32x256xbf16>
    %95 = arith.select %93, %90, %94 : vector<32x256xi1>, vector<32x256xbf16>
    %c48 = arith.constant 48 : index
    %c0_54 = arith.constant 0 : index
    %96 = vector.load %arg14[%c48, %c0_54] : memref<1200x256xbf16, #tpu.memory_space<vmem>>, vector<32x256xbf16>
    tpu.vector_store %arg14[%c48, %c0_54], %95 {strides = array<i32>} : memref<1200x256xbf16, #tpu.memory_space<vmem>>, vector<32x256xbf16>,
    %c0_55 = arith.constant 0 : index
    %c1_56 = arith.constant 1 : index
    %97 = vector.load %arg13[%c0_55, %c1_56] : memref<32x290xbf16, #tpu.memory_space<vmem>>, vector<32x256xbf16>
    %c80 = arith.constant 80 : index
    %c0_57 = arith.constant 0 : index
    %98 = vector.load %arg14[%c80, %c0_57] : memref<1200x256xbf16, #tpu.memory_space<vmem>>, vector<32x256xbf16>
    tpu.vector_store %arg14[%c80, %c0_57], %97 {strides = array<i32>} : memref<1200x256xbf16, #tpu.memory_space<vmem>>, vector<32x256xbf16>,
    %c0_58 = arith.constant 0 : index
    %c2_59 = arith.constant 2 : index
    %99 = vector.load %arg13[%c0_58, %c2_59] : memref<32x290xbf16, #tpu.memory_space<vmem>>, vector<32x256xbf16>
    %c0_i32_60 = arith.constant 0 : i32
    %100 = arith.sitofp %c0_i32_60 : i32 to bf16
    %101 = vector.shape_cast %24 : vector<1x256xi1> to vector<1x256xi1>
    %102 = vector.broadcast %101 : vector<1x256xi1> to vector<32x256xi1>
    %103 = vector.broadcast %100 : bf16 to vector<32x256xbf16>
    %104 = arith.select %102, %99, %103 : vector<32x256xi1>, vector<32x256xbf16>
    %c112 = arith.constant 112 : index
    %c0_61 = arith.constant 0 : index
    %105 = vector.load %arg14[%c112, %c0_61] : memref<1200x256xbf16, #tpu.memory_space<vmem>>, vector<32x256xbf16>
    tpu.vector_store %arg14[%c112, %c0_61], %104 {strides = array<i32>} : memref<1200x256xbf16, #tpu.memory_space<vmem>>, vector<32x256xbf16>,
    %c0_62 = arith.constant 0 : index
    %c16_63 = arith.constant 16 : index
    %106 = vector.load %arg13[%c0_62, %c16_63] : memref<32x290xbf16, #tpu.memory_space<vmem>>, vector<32x256xbf16>
    %c0_i32_64 = arith.constant 0 : i32
    %107 = arith.sitofp %c0_i32_64 : i32 to bf16
    %108 = vector.shape_cast %22 : vector<1x256xi1> to vector<1x256xi1>
    %109 = vector.broadcast %108 : vector<1x256xi1> to vector<32x256xi1>
    %110 = vector.broadcast %107 : bf16 to vector<32x256xbf16>
    %111 = arith.select %109, %106, %110 : vector<32x256xi1>, vector<32x256xbf16>
    %c144 = arith.constant 144 : index
    %c0_65 = arith.constant 0 : index
    %112 = vector.load %arg14[%c144, %c0_65] : memref<1200x256xbf16, #tpu.memory_space<vmem>>, vector<32x256xbf16>
    tpu.vector_store %arg14[%c144, %c0_65], %111 {strides = array<i32>} : memref<1200x256xbf16, #tpu.memory_space<vmem>>, vector<32x256xbf16>,
    %c0_66 = arith.constant 0 : index
    %c17_67 = arith.constant 17 : index
    %113 = vector.load %arg13[%c0_66, %c17_67] : memref<32x290xbf16, #tpu.memory_space<vmem>>, vector<32x256xbf16>
    %c176 = arith.constant 176 : index
    %c0_68 = arith.constant 0 : index
    %114 = vector.load %arg14[%c176, %c0_68] : memref<1200x256xbf16, #tpu.memory_space<vmem>>, vector<32x256xbf16>
    tpu.vector_store %arg14[%c176, %c0_68], %113 {strides = array<i32>} : memref<1200x256xbf16, #tpu.memory_space<vmem>>, vector<32x256xbf16>,
    %c0_69 = arith.constant 0 : index
    %c18_70 = arith.constant 18 : index
    %115 = vector.load %arg13[%c0_69, %c18_70] : memref<32x290xbf16, #tpu.memory_space<vmem>>, vector<32x256xbf16>
    %c0_i32_71 = arith.constant 0 : i32
    %116 = arith.sitofp %c0_i32_71 : i32 to bf16
    %117 = vector.shape_cast %24 : vector<1x256xi1> to vector<1x256xi1>
    %118 = vector.broadcast %117 : vector<1x256xi1> to vector<32x256xi1>
    %119 = vector.broadcast %116 : bf16 to vector<32x256xbf16>
    %120 = arith.select %118, %115, %119 : vector<32x256xi1>, vector<32x256xbf16>
    %c208 = arith.constant 208 : index
    %c0_72 = arith.constant 0 : index
    %121 = vector.load %arg14[%c208, %c0_72] : memref<1200x256xbf16, #tpu.memory_space<vmem>>, vector<32x256xbf16>
    tpu.vector_store %arg14[%c208, %c0_72], %120 {strides = array<i32>} : memref<1200x256xbf16, #tpu.memory_space<vmem>>, vector<32x256xbf16>,
    %c0_73 = arith.constant 0 : index
    %c32_74 = arith.constant 32 : index
    %122 = vector.load %arg13[%c0_73, %c32_74] : memref<32x290xbf16, #tpu.memory_space<vmem>>, vector<32x256xbf16>
    %c0_i32_75 = arith.constant 0 : i32
    %123 = arith.sitofp %c0_i32_75 : i32 to bf16
    %124 = vector.shape_cast %22 : vector<1x256xi1> to vector<1x256xi1>
    %125 = vector.broadcast %124 : vector<1x256xi1> to vector<32x256xi1>
    %126 = vector.broadcast %123 : bf16 to vector<32x256xbf16>
    %127 = arith.select %125, %122, %126 : vector<32x256xi1>, vector<32x256xbf16>
    %c240 = arith.constant 240 : index
    %c0_76 = arith.constant 0 : index
    %128 = vector.load %arg14[%c240, %c0_76] : memref<1200x256xbf16, #tpu.memory_space<vmem>>, vector<32x256xbf16>
    tpu.vector_store %arg14[%c240, %c0_76], %127 {strides = array<i32>} : memref<1200x256xbf16, #tpu.memory_space<vmem>>, vector<32x256xbf16>,
    %c0_77 = arith.constant 0 : index
    %c33_78 = arith.constant 33 : index
    %129 = vector.load %arg13[%c0_77, %c33_78] : memref<32x290xbf16, #tpu.memory_space<vmem>>, vector<32x256xbf16>
    %c272 = arith.constant 272 : index
    %c0_79 = arith.constant 0 : index
    %130 = vector.load %arg14[%c272, %c0_79] : memref<1200x256xbf16, #tpu.memory_space<vmem>>, vector<32x256xbf16>
    tpu.vector_store %arg14[%c272, %c0_79], %129 {strides = array<i32>} : memref<1200x256xbf16, #tpu.memory_space<vmem>>, vector<32x256xbf16>,
    %c0_80 = arith.constant 0 : index
    %c34_81 = arith.constant 34 : index
    %131 = vector.load %arg13[%c0_80, %c34_81] : memref<32x290xbf16, #tpu.memory_space<vmem>>, vector<32x256xbf16>
    %c0_i32_82 = arith.constant 0 : i32
    %132 = arith.sitofp %c0_i32_82 : i32 to bf16
    %133 = vector.shape_cast %24 : vector<1x256xi1> to vector<1x256xi1>
    %134 = vector.broadcast %133 : vector<1x256xi1> to vector<32x256xi1>
    %135 = vector.broadcast %132 : bf16 to vector<32x256xbf16>
    %136 = arith.select %134, %131, %135 : vector<32x256xi1>, vector<32x256xbf16>
    %c304 = arith.constant 304 : index
    %c0_83 = arith.constant 0 : index
    %137 = vector.load %arg14[%c304, %c0_83] : memref<1200x256xbf16, #tpu.memory_space<vmem>>, vector<32x256xbf16>
    tpu.vector_store %arg14[%c304, %c0_83], %136 {strides = array<i32>} : memref<1200x256xbf16, #tpu.memory_space<vmem>>, vector<32x256xbf16>,
    %c0_84 = arith.constant 0 : index
    %c0_85 = arith.constant 0 : index
    %138 = vector.load %arg4[%c0_84, %c0_85] : memref<32x336xbf16, #tpu.memory_space<vmem>>, vector<32x336xbf16>
    %c0_86 = arith.constant 0 : index
    %c0_87 = arith.constant 0 : index
    %139 = vector.load %arg14[%c0_86, %c0_87] : memref<1200x256xbf16, #tpu.memory_space<vmem>>, vector<336x256xbf16>
    %cst_88 = arith.constant dense<0.000000e+00> : vector<32x256xf32>
    %140 = tpu.matmul %138, %139, %cst_88 {dimension_numbers = #tpu.dot_dimension_numbers<[1], [0], [0], [1], [0, 0, 1, 1], [], []>} : vector<32x336xbf16>, vector<336x256xbf16>, vector<32x256xf32> -> vector<32x256xf32>
    %c0_89 = arith.constant 0 : index
    %c0_90 = arith.constant 0 : index
    %141 = vector.load %arg5[%c0_89, %c0_90] : memref<32x1xf32, #tpu.memory_space<vmem>>, vector<32x1xf32>
    %142 = vector.broadcast %141 : vector<32x1xf32> to vector<32x256xf32>
    %143 = arith.addf %140, %142 : vector<32x256xf32>
    %cst_91 = arith.constant 0.000000e+00 : f32
    %144 = vector.broadcast %cst_91 : f32 to vector<32x256xf32>
    %145 = arith.cmpf oge, %143, %144 : vector<32x256xf32>
    %cst_92 = arith.constant 0.00999999977 : f32
    %146 = vector.broadcast %cst_92 : f32 to vector<32x256xf32>
    %147 = arith.mulf %146, %143 : vector<32x256xf32>
    %148 = arith.select %145, %143, %147 : vector<32x256xi1>, vector<32x256xf32>
    %149 = arith.truncf %148 : vector<32x256xf32> to vector<32x256xbf16>
    %c0_93 = arith.constant 0 : index
    %c17_94 = arith.constant 17 : index
    %150 = vector.load %arg13[%c0_93, %c17_94] : memref<32x290xbf16, #tpu.memory_space<vmem>>, vector<32x256xbf16>
    tpu.vector_store %arg13[%c0_93, %c17_94], %149 {strides = array<i32>} : memref<32x290xbf16, #tpu.memory_space<vmem>>, vector<32x256xbf16>,
    %c0_95 = arith.constant 0 : index
    %c0_96 = arith.constant 0 : index
    %151 = vector.load %arg13[%c0_95, %c0_96] : memref<32x290xbf16, #tpu.memory_space<vmem>>, vector<32x256xbf16>
    %c0_i32_97 = arith.constant 0 : i32
    %152 = arith.sitofp %c0_i32_97 : i32 to bf16
    %153 = vector.shape_cast %22 : vector<1x256xi1> to vector<1x256xi1>
    %154 = vector.broadcast %153 : vector<1x256xi1> to vector<32x256xi1>
    %155 = vector.broadcast %152 : bf16 to vector<32x256xbf16>
    %156 = arith.select %154, %151, %155 : vector<32x256xi1>, vector<32x256xbf16>
    %c336 = arith.constant 336 : index
    %c0_98 = arith.constant 0 : index
    %157 = vector.load %arg14[%c336, %c0_98] : memref<1200x256xbf16, #tpu.memory_space<vmem>>, vector<32x256xbf16>
    tpu.vector_store %arg14[%c336, %c0_98], %156 {strides = array<i32>} : memref<1200x256xbf16, #tpu.memory_space<vmem>>, vector<32x256xbf16>,
    %c0_99 = arith.constant 0 : index
    %c1_100 = arith.constant 1 : index
    %158 = vector.load %arg13[%c0_99, %c1_100] : memref<32x290xbf16, #tpu.memory_space<vmem>>, vector<32x256xbf16>
    %c368 = arith.constant 368 : index
    %c0_101 = arith.constant 0 : index
    %159 = vector.load %arg14[%c368, %c0_101] : memref<1200x256xbf16, #tpu.memory_space<vmem>>, vector<32x256xbf16>
    tpu.vector_store %arg14[%c368, %c0_101], %158 {strides = array<i32>} : memref<1200x256xbf16, #tpu.memory_space<vmem>>, vector<32x256xbf16>,
    %c0_102 = arith.constant 0 : index
    %c2_103 = arith.constant 2 : index
    %160 = vector.load %arg13[%c0_102, %c2_103] : memref<32x290xbf16, #tpu.memory_space<vmem>>, vector<32x256xbf16>
    %c0_i32_104 = arith.constant 0 : i32
    %161 = arith.sitofp %c0_i32_104 : i32 to bf16
    %162 = vector.shape_cast %24 : vector<1x256xi1> to vector<1x256xi1>
    %163 = vector.broadcast %162 : vector<1x256xi1> to vector<32x256xi1>
    %164 = vector.broadcast %161 : bf16 to vector<32x256xbf16>
    %165 = arith.select %163, %160, %164 : vector<32x256xi1>, vector<32x256xbf16>
    %c400 = arith.constant 400 : index
    %c0_105 = arith.constant 0 : index
    %166 = vector.load %arg14[%c400, %c0_105] : memref<1200x256xbf16, #tpu.memory_space<vmem>>, vector<32x256xbf16>
    tpu.vector_store %arg14[%c400, %c0_105], %165 {strides = array<i32>} : memref<1200x256xbf16, #tpu.memory_space<vmem>>, vector<32x256xbf16>,
    %c0_106 = arith.constant 0 : index
    %c16_107 = arith.constant 16 : index
    %167 = vector.load %arg13[%c0_106, %c16_107] : memref<32x290xbf16, #tpu.memory_space<vmem>>, vector<32x256xbf16>
    %c0_i32_108 = arith.constant 0 : i32
    %168 = arith.sitofp %c0_i32_108 : i32 to bf16
    %169 = vector.shape_cast %22 : vector<1x256xi1> to vector<1x256xi1>
    %170 = vector.broadcast %169 : vector<1x256xi1> to vector<32x256xi1>
    %171 = vector.broadcast %168 : bf16 to vector<32x256xbf16>
    %172 = arith.select %170, %167, %171 : vector<32x256xi1>, vector<32x256xbf16>
    %c432 = arith.constant 432 : index
    %c0_109 = arith.constant 0 : index
    %173 = vector.load %arg14[%c432, %c0_109] : memref<1200x256xbf16, #tpu.memory_space<vmem>>, vector<32x256xbf16>
    tpu.vector_store %arg14[%c432, %c0_109], %172 {strides = array<i32>} : memref<1200x256xbf16, #tpu.memory_space<vmem>>, vector<32x256xbf16>,
    %c0_110 = arith.constant 0 : index
    %c17_111 = arith.constant 17 : index
    %174 = vector.load %arg13[%c0_110, %c17_111] : memref<32x290xbf16, #tpu.memory_space<vmem>>, vector<32x256xbf16>
    %c464 = arith.constant 464 : index
    %c0_112 = arith.constant 0 : index
    %175 = vector.load %arg14[%c464, %c0_112] : memref<1200x256xbf16, #tpu.memory_space<vmem>>, vector<32x256xbf16>
    tpu.vector_store %arg14[%c464, %c0_112], %174 {strides = array<i32>} : memref<1200x256xbf16, #tpu.memory_space<vmem>>, vector<32x256xbf16>,
    %c0_113 = arith.constant 0 : index
    %c18_114 = arith.constant 18 : index
    %176 = vector.load %arg13[%c0_113, %c18_114] : memref<32x290xbf16, #tpu.memory_space<vmem>>, vector<32x256xbf16>
    %c0_i32_115 = arith.constant 0 : i32
    %177 = arith.sitofp %c0_i32_115 : i32 to bf16
    %178 = vector.shape_cast %24 : vector<1x256xi1> to vector<1x256xi1>
    %179 = vector.broadcast %178 : vector<1x256xi1> to vector<32x256xi1>
    %180 = vector.broadcast %177 : bf16 to vector<32x256xbf16>
    %181 = arith.select %179, %176, %180 : vector<32x256xi1>, vector<32x256xbf16>
    %c496 = arith.constant 496 : index
    %c0_116 = arith.constant 0 : index
    %182 = vector.load %arg14[%c496, %c0_116] : memref<1200x256xbf16, #tpu.memory_space<vmem>>, vector<32x256xbf16>
    tpu.vector_store %arg14[%c496, %c0_116], %181 {strides = array<i32>} : memref<1200x256xbf16, #tpu.memory_space<vmem>>, vector<32x256xbf16>,
    %c0_117 = arith.constant 0 : index
    %c32_118 = arith.constant 32 : index
    %183 = vector.load %arg13[%c0_117, %c32_118] : memref<32x290xbf16, #tpu.memory_space<vmem>>, vector<32x256xbf16>
    %c0_i32_119 = arith.constant 0 : i32
    %184 = arith.sitofp %c0_i32_119 : i32 to bf16
    %185 = vector.shape_cast %22 : vector<1x256xi1> to vector<1x256xi1>
    %186 = vector.broadcast %185 : vector<1x256xi1> to vector<32x256xi1>
    %187 = vector.broadcast %184 : bf16 to vector<32x256xbf16>
    %188 = arith.select %186, %183, %187 : vector<32x256xi1>, vector<32x256xbf16>
    %c528 = arith.constant 528 : index
    %c0_120 = arith.constant 0 : index
    %189 = vector.load %arg14[%c528, %c0_120] : memref<1200x256xbf16, #tpu.memory_space<vmem>>, vector<32x256xbf16>
    tpu.vector_store %arg14[%c528, %c0_120], %188 {strides = array<i32>} : memref<1200x256xbf16, #tpu.memory_space<vmem>>, vector<32x256xbf16>,
    %c0_121 = arith.constant 0 : index
    %c33_122 = arith.constant 33 : index
    %190 = vector.load %arg13[%c0_121, %c33_122] : memref<32x290xbf16, #tpu.memory_space<vmem>>, vector<32x256xbf16>
    %c560 = arith.constant 560 : index
    %c0_123 = arith.constant 0 : index
    %191 = vector.load %arg14[%c560, %c0_123] : memref<1200x256xbf16, #tpu.memory_space<vmem>>, vector<32x256xbf16>
    tpu.vector_store %arg14[%c560, %c0_123], %190 {strides = array<i32>} : memref<1200x256xbf16, #tpu.memory_space<vmem>>, vector<32x256xbf16>,
    %c0_124 = arith.constant 0 : index
    %c34_125 = arith.constant 34 : index
    %192 = vector.load %arg13[%c0_124, %c34_125] : memref<32x290xbf16, #tpu.memory_space<vmem>>, vector<32x256xbf16>
    %c0_i32_126 = arith.constant 0 : i32
    %193 = arith.sitofp %c0_i32_126 : i32 to bf16
    %194 = vector.shape_cast %24 : vector<1x256xi1> to vector<1x256xi1>
    %195 = vector.broadcast %194 : vector<1x256xi1> to vector<32x256xi1>
    %196 = vector.broadcast %193 : bf16 to vector<32x256xbf16>
    %197 = arith.select %195, %192, %196 : vector<32x256xi1>, vector<32x256xbf16>
    %c592 = arith.constant 592 : index
    %c0_127 = arith.constant 0 : index
    %198 = vector.load %arg14[%c592, %c0_127] : memref<1200x256xbf16, #tpu.memory_space<vmem>>, vector<32x256xbf16>
    tpu.vector_store %arg14[%c592, %c0_127], %197 {strides = array<i32>} : memref<1200x256xbf16, #tpu.memory_space<vmem>>, vector<32x256xbf16>,
    %c0_128 = arith.constant 0 : index
    %c0_129 = arith.constant 0 : index
    %199 = vector.load %arg6[%c0_128, %c0_129] : memref<32x624xbf16, #tpu.memory_space<vmem>>, vector<32x624xbf16>
    %c0_130 = arith.constant 0 : index
    %c0_131 = arith.constant 0 : index
    %200 = vector.load %arg14[%c0_130, %c0_131] : memref<1200x256xbf16, #tpu.memory_space<vmem>>, vector<624x256xbf16>
    %cst_132 = arith.constant dense<0.000000e+00> : vector<32x256xf32>
    %201 = tpu.matmul %199, %200, %cst_132 {dimension_numbers = #tpu.dot_dimension_numbers<[1], [0], [0], [1], [0, 0, 1, 1], [], []>} : vector<32x624xbf16>, vector<624x256xbf16>, vector<32x256xf32> -> vector<32x256xf32>
    %c0_133 = arith.constant 0 : index
    %c0_134 = arith.constant 0 : index
    %202 = vector.load %arg7[%c0_133, %c0_134] : memref<32x1xf32, #tpu.memory_space<vmem>>, vector<32x1xf32>
    %203 = vector.broadcast %202 : vector<32x1xf32> to vector<32x256xf32>
    %204 = arith.addf %201, %203 : vector<32x256xf32>
    %cst_135 = arith.constant 0.000000e+00 : f32
    %205 = vector.broadcast %cst_135 : f32 to vector<32x256xf32>
    %206 = arith.cmpf oge, %204, %205 : vector<32x256xf32>
    %cst_136 = arith.constant 0.00999999977 : f32
    %207 = vector.broadcast %cst_136 : f32 to vector<32x256xf32>
    %208 = arith.mulf %207, %204 : vector<32x256xf32>
    %209 = arith.select %206, %204, %208 : vector<32x256xi1>, vector<32x256xf32>
    %210 = arith.truncf %209 : vector<32x256xf32> to vector<32x256xbf16>
    %c0_137 = arith.constant 0 : index
    %c17_138 = arith.constant 17 : index
    %211 = vector.load %arg13[%c0_137, %c17_138] : memref<32x290xbf16, #tpu.memory_space<vmem>>, vector<32x256xbf16>
    tpu.vector_store %arg13[%c0_137, %c17_138], %210 {strides = array<i32>} : memref<32x290xbf16, #tpu.memory_space<vmem>>, vector<32x256xbf16>,
    %c0_139 = arith.constant 0 : index
    %c0_140 = arith.constant 0 : index
    %212 = vector.load %arg13[%c0_139, %c0_140] : memref<32x290xbf16, #tpu.memory_space<vmem>>, vector<32x256xbf16>
    %c0_i32_141 = arith.constant 0 : i32
    %213 = arith.sitofp %c0_i32_141 : i32 to bf16
    %214 = vector.shape_cast %22 : vector<1x256xi1> to vector<1x256xi1>
    %215 = vector.broadcast %214 : vector<1x256xi1> to vector<32x256xi1>
    %216 = vector.broadcast %213 : bf16 to vector<32x256xbf16>
    %217 = arith.select %215, %212, %216 : vector<32x256xi1>, vector<32x256xbf16>
    %c624 = arith.constant 624 : index
    %c0_142 = arith.constant 0 : index
    %218 = vector.load %arg14[%c624, %c0_142] : memref<1200x256xbf16, #tpu.memory_space<vmem>>, vector<32x256xbf16>
    tpu.vector_store %arg14[%c624, %c0_142], %217 {strides = array<i32>} : memref<1200x256xbf16, #tpu.memory_space<vmem>>, vector<32x256xbf16>,
    %c0_143 = arith.constant 0 : index
    %c1_144 = arith.constant 1 : index
    %219 = vector.load %arg13[%c0_143, %c1_144] : memref<32x290xbf16, #tpu.memory_space<vmem>>, vector<32x256xbf16>
    %c656 = arith.constant 656 : index
    %c0_145 = arith.constant 0 : index
    %220 = vector.load %arg14[%c656, %c0_145] : memref<1200x256xbf16, #tpu.memory_space<vmem>>, vector<32x256xbf16>
    tpu.vector_store %arg14[%c656, %c0_145], %219 {strides = array<i32>} : memref<1200x256xbf16, #tpu.memory_space<vmem>>, vector<32x256xbf16>,
    %c0_146 = arith.constant 0 : index
    %c2_147 = arith.constant 2 : index
    %221 = vector.load %arg13[%c0_146, %c2_147] : memref<32x290xbf16, #tpu.memory_space<vmem>>, vector<32x256xbf16>
    %c0_i32_148 = arith.constant 0 : i32
    %222 = arith.sitofp %c0_i32_148 : i32 to bf16
    %223 = vector.shape_cast %24 : vector<1x256xi1> to vector<1x256xi1>
    %224 = vector.broadcast %223 : vector<1x256xi1> to vector<32x256xi1>
    %225 = vector.broadcast %222 : bf16 to vector<32x256xbf16>
    %226 = arith.select %224, %221, %225 : vector<32x256xi1>, vector<32x256xbf16>
    %c688 = arith.constant 688 : index
    %c0_149 = arith.constant 0 : index
    %227 = vector.load %arg14[%c688, %c0_149] : memref<1200x256xbf16, #tpu.memory_space<vmem>>, vector<32x256xbf16>
    tpu.vector_store %arg14[%c688, %c0_149], %226 {strides = array<i32>} : memref<1200x256xbf16, #tpu.memory_space<vmem>>, vector<32x256xbf16>,
    %c0_150 = arith.constant 0 : index
    %c16_151 = arith.constant 16 : index
    %228 = vector.load %arg13[%c0_150, %c16_151] : memref<32x290xbf16, #tpu.memory_space<vmem>>, vector<32x256xbf16>
    %c0_i32_152 = arith.constant 0 : i32
    %229 = arith.sitofp %c0_i32_152 : i32 to bf16
    %230 = vector.shape_cast %22 : vector<1x256xi1> to vector<1x256xi1>
    %231 = vector.broadcast %230 : vector<1x256xi1> to vector<32x256xi1>
    %232 = vector.broadcast %229 : bf16 to vector<32x256xbf16>
    %233 = arith.select %231, %228, %232 : vector<32x256xi1>, vector<32x256xbf16>
    %c720 = arith.constant 720 : index
    %c0_153 = arith.constant 0 : index
    %234 = vector.load %arg14[%c720, %c0_153] : memref<1200x256xbf16, #tpu.memory_space<vmem>>, vector<32x256xbf16>
    tpu.vector_store %arg14[%c720, %c0_153], %233 {strides = array<i32>} : memref<1200x256xbf16, #tpu.memory_space<vmem>>, vector<32x256xbf16>,
    %c0_154 = arith.constant 0 : index
    %c17_155 = arith.constant 17 : index
    %235 = vector.load %arg13[%c0_154, %c17_155] : memref<32x290xbf16, #tpu.memory_space<vmem>>, vector<32x256xbf16>
    %c752 = arith.constant 752 : index
    %c0_156 = arith.constant 0 : index
    %236 = vector.load %arg14[%c752, %c0_156] : memref<1200x256xbf16, #tpu.memory_space<vmem>>, vector<32x256xbf16>
    tpu.vector_store %arg14[%c752, %c0_156], %235 {strides = array<i32>} : memref<1200x256xbf16, #tpu.memory_space<vmem>>, vector<32x256xbf16>,
    %c0_157 = arith.constant 0 : index
    %c18_158 = arith.constant 18 : index
    %237 = vector.load %arg13[%c0_157, %c18_158] : memref<32x290xbf16, #tpu.memory_space<vmem>>, vector<32x256xbf16>
    %c0_i32_159 = arith.constant 0 : i32
    %238 = arith.sitofp %c0_i32_159 : i32 to bf16
    %239 = vector.shape_cast %24 : vector<1x256xi1> to vector<1x256xi1>
    %240 = vector.broadcast %239 : vector<1x256xi1> to vector<32x256xi1>
    %241 = vector.broadcast %238 : bf16 to vector<32x256xbf16>
    %242 = arith.select %240, %237, %241 : vector<32x256xi1>, vector<32x256xbf16>
    %c784 = arith.constant 784 : index
    %c0_160 = arith.constant 0 : index
    %243 = vector.load %arg14[%c784, %c0_160] : memref<1200x256xbf16, #tpu.memory_space<vmem>>, vector<32x256xbf16>
    tpu.vector_store %arg14[%c784, %c0_160], %242 {strides = array<i32>} : memref<1200x256xbf16, #tpu.memory_space<vmem>>, vector<32x256xbf16>,
    %c0_161 = arith.constant 0 : index
    %c32_162 = arith.constant 32 : index
    %244 = vector.load %arg13[%c0_161, %c32_162] : memref<32x290xbf16, #tpu.memory_space<vmem>>, vector<32x256xbf16>
    %c0_i32_163 = arith.constant 0 : i32
    %245 = arith.sitofp %c0_i32_163 : i32 to bf16
    %246 = vector.shape_cast %22 : vector<1x256xi1> to vector<1x256xi1>
    %247 = vector.broadcast %246 : vector<1x256xi1> to vector<32x256xi1>
    %248 = vector.broadcast %245 : bf16 to vector<32x256xbf16>
    %249 = arith.select %247, %244, %248 : vector<32x256xi1>, vector<32x256xbf16>
    %c816 = arith.constant 816 : index
    %c0_164 = arith.constant 0 : index
    %250 = vector.load %arg14[%c816, %c0_164] : memref<1200x256xbf16, #tpu.memory_space<vmem>>, vector<32x256xbf16>
    tpu.vector_store %arg14[%c816, %c0_164], %249 {strides = array<i32>} : memref<1200x256xbf16, #tpu.memory_space<vmem>>, vector<32x256xbf16>,
    %c0_165 = arith.constant 0 : index
    %c33_166 = arith.constant 33 : index
    %251 = vector.load %arg13[%c0_165, %c33_166] : memref<32x290xbf16, #tpu.memory_space<vmem>>, vector<32x256xbf16>
    %c848 = arith.constant 848 : index
    %c0_167 = arith.constant 0 : index
    %252 = vector.load %arg14[%c848, %c0_167] : memref<1200x256xbf16, #tpu.memory_space<vmem>>, vector<32x256xbf16>
    tpu.vector_store %arg14[%c848, %c0_167], %251 {strides = array<i32>} : memref<1200x256xbf16, #tpu.memory_space<vmem>>, vector<32x256xbf16>,
    %c0_168 = arith.constant 0 : index
    %c34_169 = arith.constant 34 : index
    %253 = vector.load %arg13[%c0_168, %c34_169] : memref<32x290xbf16, #tpu.memory_space<vmem>>, vector<32x256xbf16>
    %c0_i32_170 = arith.constant 0 : i32
    %254 = arith.sitofp %c0_i32_170 : i32 to bf16
    %255 = vector.shape_cast %24 : vector<1x256xi1> to vector<1x256xi1>
    %256 = vector.broadcast %255 : vector<1x256xi1> to vector<32x256xi1>
    %257 = vector.broadcast %254 : bf16 to vector<32x256xbf16>
    %258 = arith.select %256, %253, %257 : vector<32x256xi1>, vector<32x256xbf16>
    %c880 = arith.constant 880 : index
    %c0_171 = arith.constant 0 : index
    %259 = vector.load %arg14[%c880, %c0_171] : memref<1200x256xbf16, #tpu.memory_space<vmem>>, vector<32x256xbf16>
    tpu.vector_store %arg14[%c880, %c0_171], %258 {strides = array<i32>} : memref<1200x256xbf16, #tpu.memory_space<vmem>>, vector<32x256xbf16>,
    %c0_172 = arith.constant 0 : index
    %c0_173 = arith.constant 0 : index
    %260 = vector.load %arg8[%c0_172, %c0_173] : memref<32x912xbf16, #tpu.memory_space<vmem>>, vector<32x912xbf16>
    %c0_174 = arith.constant 0 : index
    %c0_175 = arith.constant 0 : index
    %261 = vector.load %arg14[%c0_174, %c0_175] : memref<1200x256xbf16, #tpu.memory_space<vmem>>, vector<912x256xbf16>
    %cst_176 = arith.constant dense<0.000000e+00> : vector<32x256xf32>
    %262 = tpu.matmul %260, %261, %cst_176 {dimension_numbers = #tpu.dot_dimension_numbers<[1], [0], [0], [1], [0, 0, 1, 1], [], []>} : vector<32x912xbf16>, vector<912x256xbf16>, vector<32x256xf32> -> vector<32x256xf32>
    %c0_177 = arith.constant 0 : index
    %c0_178 = arith.constant 0 : index
    %263 = vector.load %arg9[%c0_177, %c0_178] : memref<32x1xf32, #tpu.memory_space<vmem>>, vector<32x1xf32>
    %264 = vector.broadcast %263 : vector<32x1xf32> to vector<32x256xf32>
    %265 = arith.addf %262, %264 : vector<32x256xf32>
    %cst_179 = arith.constant 0.000000e+00 : f32
    %266 = vector.broadcast %cst_179 : f32 to vector<32x256xf32>
    %267 = arith.cmpf oge, %265, %266 : vector<32x256xf32>
    %cst_180 = arith.constant 0.00999999977 : f32
    %268 = vector.broadcast %cst_180 : f32 to vector<32x256xf32>
    %269 = arith.mulf %268, %265 : vector<32x256xf32>
    %270 = arith.select %267, %265, %269 : vector<32x256xi1>, vector<32x256xf32>
    %271 = arith.truncf %270 : vector<32x256xf32> to vector<32x256xbf16>
    %c0_181 = arith.constant 0 : index
    %c17_182 = arith.constant 17 : index
    %272 = vector.load %arg13[%c0_181, %c17_182] : memref<32x290xbf16, #tpu.memory_space<vmem>>, vector<32x256xbf16>
    tpu.vector_store %arg13[%c0_181, %c17_182], %271 {strides = array<i32>} : memref<32x290xbf16, #tpu.memory_space<vmem>>, vector<32x256xbf16>,
    %c0_183 = arith.constant 0 : index
    %c0_184 = arith.constant 0 : index
    %273 = vector.load %arg13[%c0_183, %c0_184] : memref<32x290xbf16, #tpu.memory_space<vmem>>, vector<32x256xbf16>
    %c0_i32_185 = arith.constant 0 : i32
    %274 = arith.sitofp %c0_i32_185 : i32 to bf16
    %275 = vector.shape_cast %22 : vector<1x256xi1> to vector<1x256xi1>
    %276 = vector.broadcast %275 : vector<1x256xi1> to vector<32x256xi1>
    %277 = vector.broadcast %274 : bf16 to vector<32x256xbf16>
    %278 = arith.select %276, %273, %277 : vector<32x256xi1>, vector<32x256xbf16>
    %c912 = arith.constant 912 : index
    %c0_186 = arith.constant 0 : index
    %279 = vector.load %arg14[%c912, %c0_186] : memref<1200x256xbf16, #tpu.memory_space<vmem>>, vector<32x256xbf16>
    tpu.vector_store %arg14[%c912, %c0_186], %278 {strides = array<i32>} : memref<1200x256xbf16, #tpu.memory_space<vmem>>, vector<32x256xbf16>,
    %c0_187 = arith.constant 0 : index
    %c1_188 = arith.constant 1 : index
    %280 = vector.load %arg13[%c0_187, %c1_188] : memref<32x290xbf16, #tpu.memory_space<vmem>>, vector<32x256xbf16>
    %c944 = arith.constant 944 : index
    %c0_189 = arith.constant 0 : index
    %281 = vector.load %arg14[%c944, %c0_189] : memref<1200x256xbf16, #tpu.memory_space<vmem>>, vector<32x256xbf16>
    tpu.vector_store %arg14[%c944, %c0_189], %280 {strides = array<i32>} : memref<1200x256xbf16, #tpu.memory_space<vmem>>, vector<32x256xbf16>,
    %c0_190 = arith.constant 0 : index
    %c2_191 = arith.constant 2 : index
    %282 = vector.load %arg13[%c0_190, %c2_191] : memref<32x290xbf16, #tpu.memory_space<vmem>>, vector<32x256xbf16>
    %c0_i32_192 = arith.constant 0 : i32
    %283 = arith.sitofp %c0_i32_192 : i32 to bf16
    %284 = vector.shape_cast %24 : vector<1x256xi1> to vector<1x256xi1>
    %285 = vector.broadcast %284 : vector<1x256xi1> to vector<32x256xi1>
    %286 = vector.broadcast %283 : bf16 to vector<32x256xbf16>
    %287 = arith.select %285, %282, %286 : vector<32x256xi1>, vector<32x256xbf16>
    %c976 = arith.constant 976 : index
    %c0_193 = arith.constant 0 : index
    %288 = vector.load %arg14[%c976, %c0_193] : memref<1200x256xbf16, #tpu.memory_space<vmem>>, vector<32x256xbf16>
    tpu.vector_store %arg14[%c976, %c0_193], %287 {strides = array<i32>} : memref<1200x256xbf16, #tpu.memory_space<vmem>>, vector<32x256xbf16>,
    %c0_194 = arith.constant 0 : index
    %c16_195 = arith.constant 16 : index
    %289 = vector.load %arg13[%c0_194, %c16_195] : memref<32x290xbf16, #tpu.memory_space<vmem>>, vector<32x256xbf16>
    %c0_i32_196 = arith.constant 0 : i32
    %290 = arith.sitofp %c0_i32_196 : i32 to bf16
    %291 = vector.shape_cast %22 : vector<1x256xi1> to vector<1x256xi1>
    %292 = vector.broadcast %291 : vector<1x256xi1> to vector<32x256xi1>
    %293 = vector.broadcast %290 : bf16 to vector<32x256xbf16>
    %294 = arith.select %292, %289, %293 : vector<32x256xi1>, vector<32x256xbf16>
    %c1008 = arith.constant 1008 : index
    %c0_197 = arith.constant 0 : index
    %295 = vector.load %arg14[%c1008, %c0_197] : memref<1200x256xbf16, #tpu.memory_space<vmem>>, vector<32x256xbf16>
    tpu.vector_store %arg14[%c1008, %c0_197], %294 {strides = array<i32>} : memref<1200x256xbf16, #tpu.memory_space<vmem>>, vector<32x256xbf16>,
    %c0_198 = arith.constant 0 : index
    %c17_199 = arith.constant 17 : index
    %296 = vector.load %arg13[%c0_198, %c17_199] : memref<32x290xbf16, #tpu.memory_space<vmem>>, vector<32x256xbf16>
    %c1040 = arith.constant 1040 : index
    %c0_200 = arith.constant 0 : index
    %297 = vector.load %arg14[%c1040, %c0_200] : memref<1200x256xbf16, #tpu.memory_space<vmem>>, vector<32x256xbf16>
    tpu.vector_store %arg14[%c1040, %c0_200], %296 {strides = array<i32>} : memref<1200x256xbf16, #tpu.memory_space<vmem>>, vector<32x256xbf16>,
    %c0_201 = arith.constant 0 : index
    %c18_202 = arith.constant 18 : index
    %298 = vector.load %arg13[%c0_201, %c18_202] : memref<32x290xbf16, #tpu.memory_space<vmem>>, vector<32x256xbf16>
    %c0_i32_203 = arith.constant 0 : i32
    %299 = arith.sitofp %c0_i32_203 : i32 to bf16
    %300 = vector.shape_cast %24 : vector<1x256xi1> to vector<1x256xi1>
    %301 = vector.broadcast %300 : vector<1x256xi1> to vector<32x256xi1>
    %302 = vector.broadcast %299 : bf16 to vector<32x256xbf16>
    %303 = arith.select %301, %298, %302 : vector<32x256xi1>, vector<32x256xbf16>
    %c1072 = arith.constant 1072 : index
    %c0_204 = arith.constant 0 : index
    %304 = vector.load %arg14[%c1072, %c0_204] : memref<1200x256xbf16, #tpu.memory_space<vmem>>, vector<32x256xbf16>
    tpu.vector_store %arg14[%c1072, %c0_204], %303 {strides = array<i32>} : memref<1200x256xbf16, #tpu.memory_space<vmem>>, vector<32x256xbf16>,
    %c0_205 = arith.constant 0 : index
    %c32_206 = arith.constant 32 : index
    %305 = vector.load %arg13[%c0_205, %c32_206] : memref<32x290xbf16, #tpu.memory_space<vmem>>, vector<32x256xbf16>
    %c0_i32_207 = arith.constant 0 : i32
    %306 = arith.sitofp %c0_i32_207 : i32 to bf16
    %307 = vector.shape_cast %22 : vector<1x256xi1> to vector<1x256xi1>
    %308 = vector.broadcast %307 : vector<1x256xi1> to vector<32x256xi1>
    %309 = vector.broadcast %306 : bf16 to vector<32x256xbf16>
    %310 = arith.select %308, %305, %309 : vector<32x256xi1>, vector<32x256xbf16>
    %c1104 = arith.constant 1104 : index
    %c0_208 = arith.constant 0 : index
    %311 = vector.load %arg14[%c1104, %c0_208] : memref<1200x256xbf16, #tpu.memory_space<vmem>>, vector<32x256xbf16>
    tpu.vector_store %arg14[%c1104, %c0_208], %310 {strides = array<i32>} : memref<1200x256xbf16, #tpu.memory_space<vmem>>, vector<32x256xbf16>,
    %c0_209 = arith.constant 0 : index
    %c33_210 = arith.constant 33 : index
    %312 = vector.load %arg13[%c0_209, %c33_210] : memref<32x290xbf16, #tpu.memory_space<vmem>>, vector<32x256xbf16>
    %c1136 = arith.constant 1136 : index
    %c0_211 = arith.constant 0 : index
    %313 = vector.load %arg14[%c1136, %c0_211] : memref<1200x256xbf16, #tpu.memory_space<vmem>>, vector<32x256xbf16>
    tpu.vector_store %arg14[%c1136, %c0_211], %312 {strides = array<i32>} : memref<1200x256xbf16, #tpu.memory_space<vmem>>, vector<32x256xbf16>,
    %c0_212 = arith.constant 0 : index
    %c34_213 = arith.constant 34 : index
    %314 = vector.load %arg13[%c0_212, %c34_213] : memref<32x290xbf16, #tpu.memory_space<vmem>>, vector<32x256xbf16>
    %c0_i32_214 = arith.constant 0 : i32
    %315 = arith.sitofp %c0_i32_214 : i32 to bf16
    %316 = vector.shape_cast %24 : vector<1x256xi1> to vector<1x256xi1>
    %317 = vector.broadcast %316 : vector<1x256xi1> to vector<32x256xi1>
    %318 = vector.broadcast %315 : bf16 to vector<32x256xbf16>
    %319 = arith.select %317, %314, %318 : vector<32x256xi1>, vector<32x256xbf16>
    %c1168 = arith.constant 1168 : index
    %c0_215 = arith.constant 0 : index
    %320 = vector.load %arg14[%c1168, %c0_215] : memref<1200x256xbf16, #tpu.memory_space<vmem>>, vector<32x256xbf16>
    tpu.vector_store %arg14[%c1168, %c0_215], %319 {strides = array<i32>} : memref<1200x256xbf16, #tpu.memory_space<vmem>>, vector<32x256xbf16>,
    %c0_216 = arith.constant 0 : index
    %c0_217 = arith.constant 0 : index
    %321 = vector.load %arg10[%c0_216, %c0_217] : memref<4x1200xbf16, #tpu.memory_space<vmem>>, vector<4x1200xbf16>
    %c0_218 = arith.constant 0 : index
    %c0_219 = arith.constant 0 : index
    %322 = vector.load %arg14[%c0_218, %c0_219] : memref<1200x256xbf16, #tpu.memory_space<vmem>>, vector<1200x256xbf16>
    %cst_220 = arith.constant dense<0.000000e+00> : vector<4x256xf32>
    %323 = tpu.matmul %321, %322, %cst_220 {dimension_numbers = #tpu.dot_dimension_numbers<[1], [0], [0], [1], [0, 0, 1, 1], [], []>} : vector<4x1200xbf16>, vector<1200x256xbf16>, vector<4x256xf32> -> vector<4x256xf32>
    %c0_221 = arith.constant 0 : index
    %c0_222 = arith.constant 0 : index
    %324 = vector.load %arg11[%c0_221, %c0_222] : memref<4x1xf32, #tpu.memory_space<vmem>>, vector<4x1xf32>
    %325 = vector.broadcast %324 : vector<4x1xf32> to vector<4x256xf32>
    %326 = arith.addf %323, %325 : vector<4x256xf32>
    %c0_223 = arith.constant 0 : index
    %c0_224 = arith.constant 0 : index
    %c0_225 = arith.constant 0 : index
    %327 = vector.load %arg12[%c0_223, %c0_224, %c0_225] : memref<1x4x256xf32, #tpu.memory_space<vmem>>, vector<1x4x256xf32>
    %328 = vector.shape_cast %327 : vector<1x4x256xf32> to vector<4x256xf32>
    %329 = vector.shape_cast %326 : vector<4x256xf32> to vector<1x4x256xf32>
    tpu.vector_store %arg12[%c0_223, %c0_224, %c0_225], %329 {strides = array<i32>} : memref<1x4x256xf32, #tpu.memory_space<vmem>>, vector<1x4x256xf32>,
    return
  }
  func.func @transform_0(%arg0: i32) -> (i32, i32, i32) {
    %c0_i32 = arith.constant 0 : i32
    %c0_i32_0 = arith.constant 0 : i32
    %c0_i32_1 = arith.constant 0 : i32
    return %arg0, %c0_i32, %c0_i32_0 : i32, i32, i32
  }
  func.func @transform_1(%arg0: i32) -> (i32, i32) {
    %c0_i32 = arith.constant 0 : i32
    %c0_i32_0 = arith.constant 0 : i32
    %c0_i32_1 = arith.constant 0 : i32
    return %c0_i32, %c0_i32_0 : i32, i32
  }
  func.func @transform_2(%arg0: i32) -> (i32, i32) {
    %c0_i32 = arith.constant 0 : i32
    %c0_i32_0 = arith.constant 0 : i32
    %c0_i32_1 = arith.constant 0 : i32
    return %c0_i32, %c0_i32_0 : i32, i32
  }
  func.func @transform_3(%arg0: i32) -> (i32, i32) {
    %c0_i32 = arith.constant 0 : i32
    %c0_i32_0 = arith.constant 0 : i32
    %c0_i32_1 = arith.constant 0 : i32
    return %c0_i32, %c0_i32_0 : i32, i32
  }
  func.func @transform_4(%arg0: i32) -> (i32, i32) {
    %c0_i32 = arith.constant 0 : i32
    %c0_i32_0 = arith.constant 0 : i32
    %c0_i32_1 = arith.constant 0 : i32
    return %c0_i32, %c0_i32_0 : i32, i32
  }
  func.func @transform_5(%arg0: i32) -> (i32, i32) {
    %c0_i32 = arith.constant 0 : i32
    %c0_i32_0 = arith.constant 0 : i32
    %c0_i32_1 = arith.constant 0 : i32
    return %c0_i32, %c0_i32_0 : i32, i32
  }
  func.func @transform_6(%arg0: i32) -> (i32, i32) {
    %c0_i32 = arith.constant 0 : i32
    %c0_i32_0 = arith.constant 0 : i32
    %c0_i32_1 = arith.constant 0 : i32
    return %c0_i32, %c0_i32_0 : i32, i32
  }
  func.func @transform_7(%arg0: i32) -> (i32, i32) {
    %c0_i32 = arith.constant 0 : i32
    %c0_i32_0 = arith.constant 0 : i32
    %c0_i32_1 = arith.constant 0 : i32
    return %c0_i32, %c0_i32_0 : i32, i32
  }
  func.func @transform_8(%arg0: i32) -> (i32, i32) {
    %c0_i32 = arith.constant 0 : i32
    %c0_i32_0 = arith.constant 0 : i32
    %c0_i32_1 = arith.constant 0 : i32
    return %c0_i32, %c0_i32_0 : i32, i32
  }
  func.func @transform_9(%arg0: i32) -> (i32, i32) {
    %c0_i32 = arith.constant 0 : i32
    %c0_i32_0 = arith.constant 0 : i32
    %c0_i32_1 = arith.constant 0 : i32
    return %c0_i32, %c0_i32_0 : i32, i32
  }
  func.func @transform_10(%arg0: i32) -> (i32, i32) {
    %c0_i32 = arith.constant 0 : i32
    %c0_i32_0 = arith.constant 0 : i32
    %c0_i32_1 = arith.constant 0 : i32
    return %c0_i32, %c0_i32_0 : i32, i32
  }
  func.func @transform_11(%arg0: i32) -> (i32, i32, i32) {
    %c0_i32 = arith.constant 0 : i32
    %c0_i32_0 = arith.constant 0 : i32
    %c0_i32_1 = arith.constant 0 : i32
    return %arg0, %c0_i32, %c0_i32_0 : i32, i32, i32
  }
}

</mosaic_0001>

<bundles_post_ra>
// kernel: residual_dense_block_out.1
= control target key start
LH: loop header
LB: loop body
LE: loop exit
PB: predicated region body
PF: predicated region fallthrough
CT: control target
= control target key end

     0   :  { %s4139_s17 = smov 0   ;;  %s5890_s0 = inlined_call_operand.vmem [shape: f32[2,4,256], index: 0, kind: input, shape index: {}]   ;;  %s5891_s1 = inlined_call_operand.vmem [shape: bf16[32,48], index: 1, kind: input, shape index: {}]   ;;  %s5892_s2 = inlined_call_operand.vmem [shape: f32[32,1], index: 2, kind: input, shape index: {}]   ;;  %s5893_s3 = inlined_call_operand.vmem [shape: bf16[32,336], index: 3, kind: input, shape index: {}]   ;;  %s5894_s4 = inlined_call_operand.vmem [shape: f32[32,1], index: 4, kind: input, shape index: {}]   ;;  %s5895_s5 = inlined_call_operand.vmem [shape: bf16[32,624], index: 5, kind: input, shape index: {}]   ;;  %s5896_s6 = inlined_call_operand.vmem [shape: f32[32,1], index: 6, kind: input, shape index: {}]   ;;  %s5897_s7 = inlined_call_operand.vmem [shape: bf16[32,912], index: 7, kind: input, shape index: {}]   ;;  %s5898_s8 = inlined_call_operand.vmem [shape: f32[32,1], index: 8, kind: input, shape index: {}]   ;;  %s5899_s9 = inlined_call_operand.vmem [shape: bf16[4,1200], index: 9, kind: input, shape index: {}]   ;;  %s5900_s10 = inlined_call_operand.vmem [shape: f32[4,1], index: 10, kind: input, shape index: {}]   ;;  %s5901_s11 = inlined_call_operand.vmem [shape: f32[2,4,256], index: 11, kind: output, shape index: {}]  }
   0x1 LB: > { %s3839_s18 = sadd.s32 4294967295, %s4061_s17   ;;  %p3843_p0 = scmp.ge.s32.totalorder %s4061_s17, 1  ;;  %s4061_s17 = sphi %s4139_s17, %s21_s17  }
   0x2   : > { %p337_p1 = scmp.lt.s32.totalorder %s4061_s17, 3 }
   0x4   : > { %p338_p2 = pnand %p3843_p0, %p337_p1 }
   0x6   : > { %341 = sbr.rel (%p338_p2) target bundleno = 2761 (0xac9), region = 64 }
   0xd   : > { %p377_p3 = scmp.lt.s32.totalorder %s3839_s18, 1  ;;  %v399_v0 = vlaneseq  ;;  %vm392_vm0 = vcmask 277504   ;;  %v5925_v1 = vmov 0   ;;  %s4064_s23 = smov 17   ;;  %vm447_vm7 = vcmask 1041544  }
   0xe   : > { %390 = vst [vmem:[#allocation2] sm:$0xff] %v5925_v1  ;;  %391 = vst [vmem:[#allocation2 + $0x8] sm:$0xff] %v5925_v1  ;;  %801 = vmatprep.mubr.bf16.mxu1 %v5925_v1  ;;  %4011 = vset.pattern.permute.xlu1 %v5925_v1  ;;  %s4065_s24 = smov 2   ;;  %s4066_s25 = smov 16   ;;  %vm442_vm8 = vcmask 138240   ;;  %vm450_vm9 = vcmask 132096  }
   0xf   : > { %394 = vst [vmem:[#allocation2 + $0x18] sm:$0xff] %v5925_v1  ;;  %397 = vst [vmem:[#allocation3 + $0x20] sm:$0xfc] %v5925_v1  ;;  %s6159_s18 = smov (!%p377_p3, %s3839_s18), 1  ;;  %v400_v2 = vand.u32 127, %v399_v0  ;;  %v4160_v3 = vshrl.u32 %v399_v0, 7  ;;  %4010 = vset.pattern.permute.xlu0 %v5925_v1 }
  0x10   : > { %398 = vst [vmem:[#allocation3 + $0x28] sm:$0xfc] %v5925_v1  ;;  %393 = vst.msk [vmem:[#allocation2 + $0x10] sm:$0xff] %vm392_vm0, %v5925_v1  ;;  %s5905_s19 = sshll.u32 %s6159_s18, 3  ;;  %s4067_s26 = smov 18  }
  0x11   : > { %396 = vst.msk [vmem:[#allocation2 + $0x28] sm:$0xff] %vm392_vm0, %v5925_v1  ;;  %5944 = vst [vmem:[#allocation4_spill] sm:$0xff] %v4160_v3  ;;  %v401_v4 = vadd.s32 128, %v400_v2  ;;  %v406_v5 = vand.u32 15, %v400_v2  ;;  %s381_s22 = scalar_lea.vmem %s5890_s0, %s5905_s19  ;;  %v462_v8 = vsub.s32 0, %v4160_v3  ;;  %v466_v12 = vsub.s32 4, %v4160_v3 }
  0x12   : > { %v430_v6 = vld [vmem:[%s381_s22] sm:$0xff]  ;;  %s4068_s27 = smov 32   ;;  %s4069_s28 = smov 34  }
  0x13   : > { %v413_v7 = vand.u32 15, %v401_v4  ;;  %vm428_vm1 = vcmp.le.s32.totalorder %v406_v5, 14  ;;  %v434_v9 = vpack.c.bf16 %v430_v6, %v430_v6  ;;  %v432_v10 = vcombine.high %v430_v6, %v430_v6  ;;  %s4070_s29 = smov 111   ;;  %s4071_s30 = smov 127  }
  0x14   : > { %vm426_vm2 = vcmp.ge.s32.totalorder %v406_v5, 1  ;;  %s4072_s12 = smov 126   ;;  %s4073_s13 = smov 112  }
  0x15   : > { %vm429_vm3 = vcmp.le.s32.totalorder %v413_v7, 14  ;;  %vm427_vm4 = vcmp.ge.s32.totalorder %v413_v7, 1  ;;  %438 = vrot.lane.b32.xlu0 %v434_v9, %s4064_s23  ;;  %v435_v11 = vpack.c.bf16 %v432_v10, %v432_v10  ;;  %s4074_s14 = smov 96   ;;  %s4075_s15 = smov 110  }
  0x16   : > { %vm503_vm5 = vmpackc.low %vm429_vm3, %vm428_vm1  ;;  %vm604_vm3 = vcmask 146432   ;;  %s4076_s16 = smov 95   ;;  %s4077_s20 = smov 94  }
  0x17   : > { %v504_v13 = vsel %vm503_vm5, 65537, %v5925_v1  ;;  %vm458_vm6 = vmpackc.low %vm427_vm4, %vm426_vm2  ;;  %vm517_vm5 = vcmask 15360  }
  0x18   : > { %v508_v14 = vrot.slane %v504_v13, %v462_v8  ;;  %v459_v15 = vsel %vm458_vm6, 65537, %v5925_v1  ;;  %v512_v16 = vrot.slane %v504_v13, %v466_v12  ;;  %vm638_vm6 = vcmask 261120  }
  0x19   : > { %440 = vrot.lane.b32.xlu0 %v435_v11, %s4064_s23  ;;  %v4175_v17 = vrot.slane %v459_v15, %v462_v8  ;;  %v4178_v18 = vrot.slane %v459_v15, %v466_v12 }
  0x1a   : > { %513 = vrot.lane.b32.xlu1 %v508_v14, %s4065_s24 }
  0x1b   : > { %vm469_vm15 = vcmp.ne.s16.totalorder %v4178_v18, 0  ;;  %vm468_vm1 = vcmp.ne.s16.totalorder %v4175_v17, 0 }
  0x1d   : > { %547 = vrot.lane.b32.xlu0 %v4175_v17, %s4066_s25 }
  0x1e   : > { %515 = vrot.lane.b32.xlu1 %v512_v16, %s4065_s24 }
  0x21   : > { %600 = vrot.lane.b32.xlu0 %v508_v14, %s4067_s26 }
  0x22   : > { %549 = vrot.lane.b32.xlu1 %v4178_v18, %s4066_s25 }
  0x25   : > { %634 = vrot.lane.b32.xlu0 %v4175_v17, %s4068_s27 }
  0x26   : > { %602 = vrot.lane.b32.xlu1 %v512_v16, %s4067_s26 }
  0x29   : > { %690 = vrot.lane.b32.xlu0 %v508_v14, %s4069_s28 }
  0x2a   : > { %636 = vrot.lane.b32.xlu1 %v4178_v18, %s4068_s27 }
  0x2e   : > { %692 = vrot.lane.b32.xlu1 %v512_v16, %s4069_s28 }
  0x87   : > { %v439_v19 = vpop.permute.xlu0 %438 }
  0x88   : > { %448 = vst.msk [vmem:[#allocation2] sm:$0x3] %vm447_vm7, %v439_v19 }
  0x8b   : > { %v441_v21 = vpop.permute.xlu0 %440 }
  0x8c   : > { %v4183_v20 = vpop.permute.xlu1 %513  ;;  %v443_v22 = vsel %vm442_vm8, %v439_v19, %v441_v21  ;;  %451 = vst.msk [vmem:[#allocation2 + $0x10] sm:$0x3] %vm450_vm9, %v441_v21  ;;  %vm5903_vm9 = vcmask 130048  }
  0x8d   : > { %449 = vst [vmem:[#allocation2 + $0x8] sm:$0x3] %v443_v22  ;;  %vm519_vm10 = vcmp.ne.s16.totalorder %v4183_v20, 0 }
  0x8f   : > { %v4187_v23 = vpop.permute.xlu0 %547  ;;  %v578_v24 = vld [vmem:[#allocation2] sm:$0x3] }
  0x90   : > { %v474_v25 = vld [vmem:[#allocation2] sm:$0x3]  ;;  %584 = vrot.lane.b32.xlu1 %v578_v24, %s4070_s29  ;;  %v4190_v28 = vpop.permute.xlu1 %515  ;;  %vm553_vm11 = vcmp.ne.s16.totalorder %v4187_v23, 0 }
  0x91   : > { %v496_v26 = vld [vmem:[#allocation2] sm:$0x3]  ;;  %v480_v27 = vrot.slane %v474_v25, 6  ;;  %vm521_vm14 = vcmp.ne.s16.totalorder %v4190_v28, 0  ;;  %v4246_v4 = vsel %vm517_vm5, %v4183_v20, %v4190_v28 }
  0x92   : > { %v522_v29 = vsel %vm519_vm10, %v496_v26, 0  ;;  %v544_v31 = vld [vmem:[#allocation2] sm:$0x3] }
  0x93   : > { %483 = vrot.lane.b32.xlu0 %v480_v27, %s4071_s30  ;;  %v528_v30 = vrot.slane %v522_v29, 4  ;;  %v4196_v32 = vpop.permute.xlu0 %600  ;;  %v580_v33 = vld [vmem:[#allocation2 + $0x10] sm:$0x3]  ;;  %v556_v34 = vsel %vm553_vm11, %v544_v31, 0  ;;  %v631_v39 = vld [vmem:[#allocation2] sm:$0x3] }
  0x94   : > { %5945 = vst [vmem:[#allocation5_spill] sm:$0xff] %v4196_v32  ;;  %vm5912_vm12 = vcmp.ne.s16.totalorder %v4196_v32, 0  ;;  %v4203_v35 = vpop.permute.xlu1 %549  ;;  %v579_v37 = vld [vmem:[#allocation2 + $0x8] sm:$0x3]  ;;  %v562_v38 = vrot.slane %v556_v34, 2 }
  0x95   : > { %531 = vrot.lane.b32.xlu1 %v528_v30, %s4072_s12  ;;  %v597_v40 = vld [vmem:[#allocation2] sm:$0x3]  ;;  %v476_v44 = vld [vmem:[#allocation2 + $0x10] sm:$0x3]  ;;  %v453_v51 = vld [vmem:[#allocation2 + $0x8] sm:$0x3]  ;;  %v4261_v13 = vsel %vm5903_vm9, %v4187_v23, %v4203_v35 }
  0x96   : > { %v609_v42 = vsel %vm5912_vm12, %v597_v40, 0  ;;  %v498_v46 = vld [vmem:[#allocation2 + $0x10] sm:$0x3]  ;;  %v482_v49 = vrot.slane %v476_v44, 6  ;;  %v452_v52 = vld [vmem:[#allocation2] sm:$0x3] }
  0x97   : > { %588 = vrot.lane.b32.xlu0 %v580_v33, %s4070_s29  ;;  %v4205_v36 = vpop.permute.xlu0 %634  ;;  %v615_v45 = vrot.slane %v609_v42, 6  ;;  %v667_v48 = vld [vmem:[#allocation2 + $0x10] sm:$0x3]  ;;  %v524_v50 = vsel %vm521_vm14, %v498_v46, 0  ;;  %vm555_vm2 = vcmp.ne.s16.totalorder %v4203_v35, 0  ;;  %v471_v55 = vsel %vm469_vm15, %v453_v51, 0 }
  0x98   : > { %5946 = vst [vmem:[#allocation6_spill] sm:$0xff] %v4205_v36  ;;  %vm5902_vm13 = vcmp.ne.s16.totalorder %v4205_v36, 0  ;;  %v4217_v47 = vpop.permute.xlu1 %602  ;;  %v673_v53 = vrot.slane %v667_v48, 2  ;;  %v546_v54 = vld [vmem:[#allocation2 + $0x10] sm:$0x3]  ;;  %v470_v57 = vsel %vm468_vm1, %v452_v52, 0 }
  0x99   : > { %586 = vrot.lane.b32.xlu1 %v579_v37, %s4070_s29  ;;  %v643_v41 = vsel %vm5902_vm13, %v631_v39, 0  ;;  %5947 = vst [vmem:[#allocation7_spill] sm:$0xff] %v4217_v47  ;;  %v475_v56 = vld [vmem:[#allocation2 + $0x8] sm:$0x3]  ;;  %473 = vst [vmem:[#allocation3 + $0x8] sm:$0x3] %v471_v55  ;;  %v4238_v63 = vsel %vm604_vm3, %v4196_v32, %v4217_v47 }
  0x9a   : > { %v649_v43 = vrot.slane %v643_v41, 4  ;;  %vm5923_vm4 = vcmp.ne.s16.totalorder %v4217_v47, 0  ;;  %v530_v58 = vrot.slane %v524_v50, 4  ;;  %472 = vst [vmem:[#allocation3] sm:$0x3] %v470_v57  ;;  %v558_v60 = vsel %vm555_vm2, %v546_v54, 0 }
  0x9b   : > { %565 = vrot.lane.b32.xlu0 %v562_v38, %s4073_s13  ;;  %v481_v61 = vrot.slane %v475_v56, 6  ;;  %v599_v62 = vld [vmem:[#allocation2 + $0x10] sm:$0x3]  ;;  %5949 = vst [vmem:[#allocation9_spill] sm:$0xff] %v4238_v63  ;;  %v564_v2 = vrot.slane %v558_v60, 2  ;;  %vm5924_vm13 = vcmp.ne.s16.totalorder %v4238_v63, 0  ;;  %v4275_v26 = vpop.permute.xlu0 %690 }
  0x9c   : > { %v4231_v59 = vpop.permute.xlu1 %636  ;;  %v611_v0 = vsel %vm5923_vm4, %v599_v62, 0  ;;  %v666_v5 = vld [vmem:[#allocation2 + $0x8] sm:$0x3]  ;;  %v633_v7 = vld [vmem:[#allocation2 + $0x10] sm:$0x3]  ;;  %vm520_vm3 = vcmp.ne.s16.totalorder %v4246_v4, 0 }
  0x9d   : > { %652 = vrot.lane.b32.xlu1 %v649_v43, %s4074_s14  ;;  %5948 = vst [vmem:[#allocation8_spill] sm:$0xff] %v4231_v59  ;;  %vm5910_vm7 = vcmp.ne.s16.totalorder %v4231_v59, 0  ;;  %v617_v6 = vrot.slane %v611_v0, 6  ;;  %v4252_v8 = vsel %vm638_vm6, %v4205_v36, %v4231_v59  ;;  %v672_v10 = vrot.slane %v666_v5, 2  ;;  %v598_v11 = vld [vmem:[#allocation2 + $0x8] sm:$0x3] }
  0x9e   : > { %5950 = vst [vmem:[#allocation10_spill] sm:$0xff] %v4252_v8  ;;  %v645_v9 = vsel %vm5910_vm7, %v633_v7, 0  ;;  %v497_v12 = vld [vmem:[#allocation2 + $0x8] sm:$0x3]  ;;  %v610_v14 = vsel %vm5924_vm13, %v598_v11, 0  ;;  %vm5904_vm5 = vcmp.ne.s16.totalorder %v4252_v8, 0 }
  0x9f   : > { %618 = vrot.lane.b32.xlu0 %v615_v45, %s4075_s15  ;;  %v651_v15 = vrot.slane %v645_v9, 4  ;;  %v523_v16 = vsel %vm520_vm3, %v497_v12, 0  ;;  %vm5943_vm6 = vcmp.ne.s16.totalorder %v4261_v13, 0  ;;  %v616_v21 = vrot.slane %v610_v14, 6  ;;  %v632_v22 = vld [vmem:[#allocation2 + $0x8] sm:$0x3] }
  0xa0   : > { %v4270_v19 = vpop.permute.xlu1 %692  ;;  %v545_v24 = vld [vmem:[#allocation2 + $0x8] sm:$0x3]  ;;  %v644_v25 = vsel %vm5904_vm5, %v632_v22, 0  ;;  %5952 = vst [vmem:[#allocation12_spill] sm:$0xff] %v4275_v26  ;;  %v529_v27 = vrot.slane %v523_v16, 4  ;;  %v728_v44 = vld [vmem:[%s5892_s2] sm:$0xff] }
  0xa1   : > { %487 = vrot.lane.b32.xlu1 %v482_v49, %s4071_s30  ;;  %5951 = vst [vmem:[#allocation11_spill] sm:$0xff] %v4270_v19  ;;  %v4281_v29 = vsel %vm392_vm0, %v4275_v26, %v4270_v19  ;;  %v557_v30 = vsel %vm5943_vm6, %v545_v24, 0  ;;  %v650_v31 = vrot.slane %v644_v25, 4  ;;  %v665_v34 = vld [vmem:[#allocation2] sm:$0x3]  ;;  %vm5906_vm0 = vcmp.ne.s16.totalorder %v4275_v26, 0 }
  0xa2   : > { %5953 = vst [vmem:[#allocation13_spill] sm:$0xff] %v4281_v29  ;;  %vm5908_vm9 = vcmp.ne.s16.totalorder %v4281_v29, 0  ;;  %v563_v33 = vrot.slane %v557_v30, 2  ;;  %v688_v37 = vld [vmem:[#allocation2 + $0x8] sm:$0x3]  ;;  %v671_v39 = vrot.slane %v665_v34, 2 }
  0xa3   : > { %678 = vrot.lane.b32.xlu0 %v673_v53, %s4076_s16  ;;  %v700_v38 = vsel %vm5908_vm9, %v688_v37, 0  ;;  %vm5907_vm5 = vcmp.ne.s16.totalorder %v4270_v19, 0  ;;  %v687_v40 = vld [vmem:[#allocation2] sm:$0x3]  ;;  %v689_v42 = vld [vmem:[#allocation2 + $0x10] sm:$0x3] }
  0xa4   : > { %v699_v41 = vsel %vm5906_vm0, %v687_v40, 0  ;;  %v701_v43 = vsel %vm5907_vm5, %v689_v42, 0  ;;  %v729_v45 = vld [vmem:[%s5892_s2 + $0x8] sm:$0xff]  ;;  %v731_v46 = vld [vmem:[%s5892_s2 + $0x18] sm:$0xff]  ;;  %v730_v48 = vld [vmem:[%s5892_s2 + $0x10] sm:$0xff]  ;;  %vm5909_vm0 = vcmask 908288  }
  0xa5   : > { %535 = vrot.lane.b32.xlu1 %v530_v58, %s4072_s12  ;;  %vm5911_vm5 = vcmask 1039360   ;;  %vm5915_vm9 = vcmask 777216   ;;  %vm5918_vm7 = vcmask 1031168   ;;  %vm5917_vm12 = vcmask 916480  }
  0xa7   : > { %485 = vrot.lane.b32.xlu0 %v481_v61, %s4071_s30 }
  0xa9   : > { %569 = vrot.lane.b32.xlu1 %v564_v2, %s4073_s13 }
  0xab   : > { %622 = vrot.lane.b32.xlu0 %v617_v6, %s4075_s15 }
  0xad   : > { %676 = vrot.lane.b32.xlu1 %v672_v10, %s4076_s16 }
  0xaf   : > { %656 = vrot.lane.b32.xlu0 %v651_v15, %s4074_s14 }
  0xb1   : > { %620 = vrot.lane.b32.xlu1 %v616_v21, %s4075_s15 }
  0xb3   : > { %533 = vrot.lane.b32.xlu0 %v529_v27, %s4072_s12 }
  0xb5   : > { %654 = vrot.lane.b32.xlu1 %v650_v31, %s4074_s14 }
  0xb7   : > { %567 = vrot.lane.b32.xlu0 %v563_v33, %s4073_s13 }
  0xb9   : > { %707 = vrot.lane.b32.xlu1 %v700_v38, %s4077_s20 }
  0xbb   : > { %674 = vrot.lane.b32.xlu0 %v671_v39, %s4076_s16 }
  0xbd   : > { %705 = vrot.lane.b32.xlu1 %v699_v41, %s4077_s20 }
  0xbf   : > { %709 = vrot.lane.b32.xlu0 %v701_v43, %s4077_s20 }
  0xc1   : > { %739 = vperm.xlu1 %4011, %v729_v45  }
  0xc3   : > { %734 = vperm.xlu0 %4010, %v728_v44  }
  0xc5   : > { %744 = vperm.xlu1 %4011, %v730_v48  }
  0xc7   : > { %749 = vperm.xlu0 %4010, %v731_v46  }
 0x102   : > { %v585_v49 = vpop.permute.xlu1 %584 }
 0x105   : > { %v484_v50 = vpop.permute.xlu0 %483 }
 0x107   : > { %v532_v51 = vpop.permute.xlu1 %531 }
 0x109   : > { %v589_v52 = vpop.permute.xlu0 %588 }
 0x10b   : > { %v587_v53 = vpop.permute.xlu1 %586 }
 0x10c   : > { %v591_v54 = vsel %vm5909_vm0, %v585_v49, %v587_v53  ;;  %v592_v55 = vsel %vm5909_vm0, %v587_v53, %v589_v52  ;;  %vm5913_vm0 = vcmask 900096  }
 0x10d   : > { %595 = vst [vmem:[#allocation3 + $0x10] sm:$0x3] %v591_v54  ;;  %596 = vst [vmem:[#allocation3 + $0x18] sm:$0x3] %v592_v55  ;;  %v566_v56 = vpop.permute.xlu0 %565 }
 0x10f   : > { %v653_v57 = vpop.permute.xlu1 %652 }
 0x111   : > { %v619_v58 = vpop.permute.xlu0 %618 }
 0x113   : > { %v488_v60 = vpop.permute.xlu1 %487 }
 0x115   : > { %v679_v61 = vpop.permute.xlu0 %678 }
 0x117   : > { %v536_v62 = vpop.permute.xlu1 %535 }
 0x119   : > { %v486_v0 = vpop.permute.xlu0 %485 }
 0x11a   : > { %v490_v2 = vsel %vm5911_vm5, %v484_v50, %v486_v0  ;;  %v491_v5 = vsel %vm5911_vm5, %v486_v0, %v488_v60  ;;  %vm5916_vm5 = vcmask 785408   ;;  %v4013_v50 = vld [vmem:[%s5891_s1] sm:$0xff]  }
 0x11b   : > { %494 = vst [vmem:[#allocation3] sm:$0xc] %v490_v2  ;;  %495 = vst [vmem:[#allocation3 + $0x8] sm:$0xc] %v491_v5  ;;  %v570_v6 = vpop.permute.xlu1 %569 }
 0x11d   : > { %v623_v7 = vpop.permute.xlu0 %622 }
 0x11f   : > { %v677_v9 = vpop.permute.xlu1 %676 }
 0x120   : > { %v682_v10 = vsel %vm5915_vm9, %v677_v9, %v679_v61 }
 0x121   : > { %686 = vst [vmem:[#allocation3 + $0x18] sm:$0xc0] %v682_v10  ;;  %v657_v11 = vpop.permute.xlu0 %656 }
 0x123   : > { %v621_v12 = vpop.permute.xlu1 %620 }
 0x124   : > { %v625_v14 = vsel %vm5913_vm0, %v619_v58, %v621_v12  ;;  %v626_v15 = vsel %vm5913_vm0, %v621_v12, %v623_v7  ;;  %vm5914_vm0 = vcmask 769024  }
 0x125   : > { %629 = vst [vmem:[#allocation3 + $0x10] sm:$0xc] %v625_v14  ;;  %630 = vst [vmem:[#allocation3 + $0x18] sm:$0xc] %v626_v15  ;;  %v534_v16 = vpop.permute.xlu0 %533 }
 0x126   : > { %v538_v21 = vsel %vm5918_vm7, %v532_v51, %v534_v16  ;;  %v539_v22 = vsel %vm5918_vm7, %v534_v16, %v536_v62  ;;  %v4014_v51 = vld [vmem:[%s5891_s1 + $0x8] sm:$0xff]  }
 0x127   : > { %542 = vst [vmem:[#allocation3] sm:$0x30] %v538_v21  ;;  %543 = vst [vmem:[#allocation3 + $0x8] sm:$0x30] %v539_v22  ;;  %v655_v24 = vpop.permute.xlu1 %654 }
 0x128   : > { %v659_v25 = vsel %vm5916_vm5, %v653_v57, %v655_v24  ;;  %v660_v27 = vsel %vm5916_vm5, %v655_v24, %v657_v11 }
 0x129   : > { %663 = vst [vmem:[#allocation3 + $0x10] sm:$0x30] %v659_v25  ;;  %664 = vst [vmem:[#allocation3 + $0x18] sm:$0x30] %v660_v27  ;;  %v568_v30 = vpop.permute.xlu0 %567 }
 0x12a   : > { %v572_v31 = vsel %vm5917_vm12, %v566_v56, %v568_v30  ;;  %v573_v33 = vsel %vm5917_vm12, %v568_v30, %v570_v6 }
 0x12b   : > { %576 = vst [vmem:[#allocation3] sm:$0xc0] %v572_v31  ;;  %577 = vst [vmem:[#allocation3 + $0x8] sm:$0xc0] %v573_v33  ;;  %v708_v34 = vpop.permute.xlu1 %707 }
 0x12d   : > { %v675_v37 = vpop.permute.xlu0 %674 }
 0x12e   : > { %v681_v38 = vsel %vm5915_vm9, %v675_v37, %v677_v9 }
 0x12f   : > { %685 = vst [vmem:[#allocation3 + $0x10] sm:$0xc0] %v681_v38  ;;  %v706_v39 = vpop.permute.xlu1 %705 }
 0x130   : > { %v712_v40 = vsel %vm5914_vm0, %v706_v39, %v708_v34  ;;  %v4335_v45 = vld [vmem:[#allocation3 + $0x18] sm:$0xff] }
 0x131   : > { %716 = vst [vmem:[#allocation3 + $0x20] sm:$0x3] %v712_v40  ;;  %v710_v41 = vpop.permute.xlu0 %709 }
 0x132   : > { %v713_v42 = vsel %vm5914_vm0, %v708_v34, %v710_v41  ;;  %v4329_v43 = vld [vmem:[#allocation3 + $0x8] sm:$0xff]  ;;  %v4331_v44 = vld [vmem:[#allocation3] sm:$0xff]  ;;  %vm5919_vm0 = vcmask 392192  }
 0x133   : > { %717 = vst [vmem:[#allocation3 + $0x28] sm:$0x3] %v713_v42  ;;  %769 = vmatprep.subr.bf16.mxu1 %v4329_v43 }
 0x134   : > { %770 = vmatpush1.bf16.msra.mxu1 %v4331_v44 }
 0x135   : > { %771 = vmatprep.subr.bf16.mxu1 %v4335_v45 }
 0x136   : > { %v4338_v46 = vld [vmem:[#allocation3 + $0x10] sm:$0xff] }
 0x138   : > { %772 = vmatpush1.bf16.msra.mxu1 %v4338_v46  ;;  %v4344_v49 = vld [vmem:[#allocation3 + $0x20] sm:$0xff] }
 0x13a   : > { %v4341_v48 = vld [vmem:[#allocation3 + $0x28] sm:$0xff] }
 0x13b   : > { %773 = vmatprep.subr.bf16.mxu1 %v4341_v48 }
 0x13c   : > { %774 = vmatpush1.bf16.msra.mxu1 %v4344_v49 }
 0x13d   : > { %1319 = vmatprep.subr.bf16.mxu1 %v4329_v43 }
 0x13f   : > { %3850 = vmatmul.mubr.msk.bf16.vlgmr.msra.gmra.mrb[0].mxu1 %vm5919_vm0, %v4013_v50 }
 0x140   : > { %1320 = vmatpush1.bf16.msra.mxu1 %v4331_v44  ;;  %811 = vmatprep.mubr.bf16.mxu1 %v5925_v1  ;;  %v740_v56 = vpop.permute.xlu1 %739 }
 0x141   : > { %1321 = vmatprep.subr.bf16.mxu1 %v4335_v45 }
 0x142   : > { %v735_v52 = vpop.permute.xlu0 %734 }
 0x144   : > { %1322 = vmatpush1.bf16.msra.mxu1 %v4338_v46  ;;  %v745_v10 = vpop.permute.xlu1 %744 }
 0x145   : > { %1323 = vmatprep.subr.bf16.mxu1 %v4341_v48 }
 0x146   : > { %v750_v24 = vpop.permute.xlu0 %749 }
 0x147   : > { %3851 = vmatmul.mubr.msk.bf16.gmra.mrb[4].mxu1 %vm5919_vm0, %v4014_v51 }
 0x148   : > { %1324 = vmatpush1.bf16.msra.mxu1 %v4344_v49 }
 0x212   : > { %v803_v53 = vpop.f32.mrb[0].mxu1 }
 0x213   : > { %v804_v54 = vadd.f32 %v803_v53, %v735_v52  ;;  %v805_v55 = vpop.f32.mrb[1].mxu1 }
 0x214   : > { %v806_v57 = vadd.f32 %v805_v55, %v735_v52  ;;  %v807_v58 = vpop.f32.mrb[2].mxu1 }
 0x215   : > { %v830_v60 = vmul.f32 0.01, %v804_v54  ;;  %v808_v61 = vadd.f32 %v807_v58, %v740_v56  ;;  %v809_v62 = vpop.f32.mrb[3].mxu1  ;;  %vm822_vm9 = vcmp.ge.f32.partialorder %v804_v54, 0.0 }
 0x216   : > { %v831_v0 = vmul.f32 0.01, %v806_v57  ;;  %v810_v2 = vadd.f32 %v809_v62, %v740_v56  ;;  %vm823_vm5 = vcmp.ge.f32.partialorder %v806_v57, 0.0 }
 0x217   : > { %vm824_vm12 = vcmp.ge.f32.partialorder %v808_v61, 0.0  ;;  %v832_v5 = vmul.f32 0.01, %v808_v61  ;;  %v838_v7 = vsel %vm822_vm9, %v804_v54, %v830_v60 }
 0x218   : > { %vm825_vm7 = vcmp.ge.f32.partialorder %v810_v2, 0.0  ;;  %v833_v6 = vmul.f32 0.01, %v810_v2  ;;  %v839_v14 = vsel %vm823_vm5, %v806_v57, %v831_v0  ;;  %vm870_vm5 = vcmask 1047688  }
 0x219   : > { %v840_v9 = vsel %vm824_vm12, %v808_v61, %v832_v5 }
 0x21a   : > { %v813_v11 = vpop.f32.mrb[4].mxu1  ;;  %v846_v12 = vpack.c.bf16 %v840_v9, %v838_v7  ;;  %v841_v15 = vsel %vm825_vm7, %v810_v2, %v833_v6 }
 0x21b   : > { %v814_v16 = vadd.f32 %v813_v11, %v745_v10  ;;  %v815_v21 = vpop.f32.mrb[5].mxu1  ;;  %v847_v22 = vpack.c.bf16 %v841_v15, %v839_v14 }
 0x21c   : > { %v816_v25 = vadd.f32 %v815_v21, %v745_v10  ;;  %v817_v27 = vpop.f32.mrb[6].mxu1  ;;  %854 = vrot.lane.b32.xlu1 %v846_v12, %s4064_s23 }
 0x21d   : > { %v834_v30 = vmul.f32 0.01, %v814_v16  ;;  %v818_v31 = vadd.f32 %v817_v27, %v750_v24  ;;  %v819_v33 = vpop.f32.mrb[7].mxu1  ;;  %856 = vrot.lane.b32.xlu0 %v847_v22, %s4064_s23  ;;  %vm826_vm9 = vcmp.ge.f32.partialorder %v814_v16, 0.0 }
 0x21e   : > { %v835_v34 = vmul.f32 0.01, %v816_v25  ;;  %v820_v37 = vadd.f32 %v819_v33, %v750_v24  ;;  %vm827_vm12 = vcmp.ge.f32.partialorder %v816_v25, 0.0 }
 0x21f   : > { %vm828_vm0 = vcmp.ge.f32.partialorder %v818_v31, 0.0  ;;  %v836_v38 = vmul.f32 0.01, %v818_v31  ;;  %v842_v40 = vsel %vm826_vm9, %v814_v16, %v834_v30 }
 0x220   : > { %vm829_vm7 = vcmp.ge.f32.partialorder %v820_v37, 0.0  ;;  %v837_v39 = vmul.f32 0.01, %v820_v37  ;;  %v843_v50 = vsel %vm827_vm12, %v816_v25, %v835_v34  ;;  %vm5956_vm12 = vcmp.ne.s16.totalorder %v4231_v59, 0 }
 0x221   : > { %v844_v41 = vsel %vm828_vm0, %v818_v31, %v836_v38  ;;  %vm5954_vm0 = vcmp.ne.s16.totalorder %v4196_v32, 0 }
 0x222   : > { %v848_v42 = vpack.c.bf16 %v844_v41, %v842_v40  ;;  %v845_v51 = vsel %vm829_vm7, %v820_v37, %v837_v39  ;;  %vm5955_vm9 = vmmov %vm5954_vm0  ;;  %vm5957_vm7 = vcmp.ne.s16.totalorder %v4252_v8, 0 }
 0x223   : > { %v849_v52 = vpack.c.bf16 %v845_v51, %v843_v50 }
 0x224   : > { %858 = vrot.lane.b32.xlu1 %v848_v42, %s4064_s23 }
 0x225   : > { %860 = vrot.lane.b32.xlu0 %v849_v52, %s4064_s23  ;;  %v4017_v52 = vld [vmem:[%s5893_s3 + $0x4] ss:$12 sps:$4 sm:$0xff]  }
 0x226   : > { %1351 = vmatprep.mubr.bf16.mxu1 %v4017_v52 }
 0x28e   : > { %v855_v53 = vpop.permute.xlu1 %854 }
 0x28f   : > { %v857_v54 = vpop.permute.xlu0 %856  ;;  %871 = vst.msk [vmem:[#allocation2] sm:$0xff] %vm870_vm5, %v855_v53 }
 0x290   : > { %v4368_v55 = vsel %vm442_vm8, %v855_v53, %v857_v54  ;;  %874 = vst.msk [vmem:[#allocation2 + $0x10] sm:$0xff] %vm442_vm8, %v857_v54 }
 0x291   : > { %v883_v56 = vsel %vm469_vm15, %v4368_v55, 0  ;;  %4038 = vmatprep.subr.msk.bf16.mxu1 %vm469_vm15, %v4368_v55  ;;  %v933_v12 = vsel %vm520_vm3, %v4368_v55, 0  ;;  %v975_v15 = vsel %vm5943_vm6, %v4368_v55, 0  ;;  %v1053_v21 = vsel %vm5924_vm13, %v4368_v55, 0 }
 0x292   : > { %887 = vst [vmem:[#allocation3 + $0x38] sm:$0xff] %v883_v56  ;;  %v1095_v39 = vsel %vm5957_vm7, %v4368_v55, 0 }
 0x296   : > { %v859_v57 = vpop.permute.xlu1 %858  ;;  %v4377_v58 = vld [vmem:[#allocation2] sm:$0xff] }
 0x297   : > { %875 = vst.msk [vmem:[#allocation2 + $0x18] sm:$0xff] %vm870_vm5, %v859_v57  ;;  %902 = vrot.lane.b32.xlu1 %v4377_v58, %s4071_s30  ;;  %v861_v60 = vpop.permute.xlu0 %860  ;;  %v4382_v61 = vld [vmem:[#allocation2 + $0x10] sm:$0xff]  ;;  %v4387_v62 = vsel %vm468_vm1, %v4377_v58, 0  ;;  %v932_v6 = vsel %vm519_vm10, %v4377_v58, 0  ;;  %v974_v10 = vsel %vm553_vm11, %v4377_v58, 0  ;;  %v1052_v33 = vsel %vm5954_vm0, %v4377_v58, 0 }
 0x298   : > { %v4390_v0 = vsel %vm442_vm8, %v859_v57, %v861_v60  ;;  %877 = vst.msk [vmem:[#allocation2 + $0x28] sm:$0xff] %vm442_vm8, %v861_v60  ;;  %906 = vrot.lane.b32.xlu0 %v4382_v61, %s4071_s30  ;;  %886 = vst [vmem:[#allocation3 + $0x30] sm:$0xff] %v4387_v62  ;;  %1326 = vmatpush1.bf16.msra.mxu1 %v4387_v62  ;;  %v934_v7 = vsel %vm521_vm14, %v4382_v61, 0  ;;  %v976_v11 = vsel %vm555_vm2, %v4382_v61, 0  ;;  %v1054_v27 = vsel %vm5923_vm4, %v4382_v61, 0 }
 0x299   : > { %v885_v2 = vsel %vm469_vm15, %v4390_v0, 0  ;;  %4039 = vmatprep.subr.msk.bf16.mxu1 %vm469_vm15, %v4390_v0  ;;  %v936_v24 = vsel %vm520_vm3, %v4390_v0, 0  ;;  %v978_v31 = vsel %vm5943_vm6, %v4390_v0, 0  ;;  %v1096_v38 = vsel %vm5956_vm12, %v4382_v61, 0 }
 0x29a   : > { %889 = vst [vmem:[#allocation3 + $0x48] sm:$0xff] %v885_v2  ;;  %vm5958_vm0 = vcmp.ne.s16.totalorder %v4205_v36, 0  ;;  %v1056_v42 = vsel %vm5924_vm13, %v4390_v0, 0  ;;  %v1098_v51 = vsel %vm5957_vm7, %v4390_v0, 0  ;;  %v1259_v2 = vld [vmem:[%s5894_s4 + $0x8] sm:$0xff] }
 0x29b   : > { %1022 = vrot.lane.b32.xlu1 %v4377_v58, %s4070_s29 }
 0x29c   : > { %1026 = vrot.lane.b32.xlu0 %v4382_v61, %s4070_s29 }
 0x29e   : > { %v4407_v5 = vld [vmem:[#allocation2 + $0x18] sm:$0xff] }
 0x29f   : > { %944 = vrot.lane.b32.xlu1 %v932_v6, %s4072_s12  ;;  %v4419_v9 = vsel %vm468_vm1, %v4407_v5, 0  ;;  %v935_v14 = vsel %vm519_vm10, %v4407_v5, 0  ;;  %v977_v16 = vsel %vm553_vm11, %v4407_v5, 0  ;;  %v895_v22 = vld [vmem:[#allocation2 + $0x28] sm:$0xff]  ;;  %v1055_v34 = vsel %vm5955_vm9, %v4407_v5, 0  ;;  %vm5959_vm9 = vmmov %vm5958_vm0  ;;  %v1260_v6 = vld [vmem:[%s5894_s4 + $0x10] sm:$0xff] }
 0x2a0   : > { %948 = vrot.lane.b32.xlu0 %v934_v7, %s4072_s12  ;;  %888 = vst [vmem:[#allocation3 + $0x40] sm:$0xff] %v4419_v9  ;;  %1328 = vmatpush1.bf16.msra.mxu1 %v4419_v9  ;;  %v937_v25 = vsel %vm521_vm14, %v895_v22, 0  ;;  %v979_v30 = vsel %vm555_vm2, %v895_v22, 0  ;;  %v1057_v37 = vsel %vm5923_vm4, %v895_v22, 0  ;;  %v1097_v40 = vsel %vm5958_vm0, %v4407_v5, 0 }
 0x2a1   : > { %v1094_v41 = vsel %vm5959_vm9, %v4377_v58, 0  ;;  %v1099_v50 = vsel %vm5956_vm12, %v895_v22, 0  ;;  %vm5960_vm0 = vcmp.ne.s16.totalorder %v4281_v29, 0  ;;  %vm5961_vm9 = vcmp.ne.s16.totalorder %v4270_v19, 0 }
 0x2a2   : > { %v1173_v53 = vsel %vm5960_vm0, %v4368_v55, 0  ;;  %v1174_v54 = vsel %vm5961_vm9, %v4382_v61, 0  ;;  %vm5962_vm12 = vcmp.ne.s16.totalorder %v4275_v26, 0  ;;  %vm5963_vm7 = vmmov %vm5960_vm0 }
 0x2a3   : > { %986 = vrot.lane.b32.xlu1 %v974_v10, %s4073_s13  ;;  %v1172_v56 = vsel %vm5962_vm12, %v4377_v58, 0  ;;  %v1176_v57 = vsel %vm5963_vm7, %v4390_v0, 0  ;;  %vm5964_vm0 = vmmov %vm5961_vm9 }
 0x2a4   : > { %990 = vrot.lane.b32.xlu0 %v976_v11, %s4073_s13  ;;  %v1177_v60 = vsel %vm5964_vm0, %v895_v22, 0  ;;  %vm5965_vm9 = vmmov %vm5962_vm12  ;;  %vm5966_vm12 = vcmask 1039360   ;;  %vm5968_vm0 = vcmask 908288  }
 0x2a5   : > { %vm5967_vm7 = vmmov %vm5966_vm12 }
 0x2a7   : > { %904 = vrot.lane.b32.xlu1 %v4368_v55, %s4071_s30 }
 0x2a8   : > { %908 = vrot.lane.b32.xlu0 %v4407_v5, %s4071_s30 }
 0x2ab   : > { %1024 = vrot.lane.b32.xlu1 %v4368_v55, %s4070_s29 }
 0x2ac   : > { %1028 = vrot.lane.b32.xlu0 %v4407_v5, %s4070_s29 }
 0x2af   : > { %946 = vrot.lane.b32.xlu1 %v933_v12, %s4072_s12 }
 0x2b0   : > { %950 = vrot.lane.b32.xlu0 %v935_v14, %s4072_s12 }
 0x2b3   : > { %988 = vrot.lane.b32.xlu1 %v975_v15, %s4073_s13 }
 0x2b4   : > { %992 = vrot.lane.b32.xlu0 %v977_v16, %s4073_s13 }
 0x2b7   : > { %1066 = vrot.lane.b32.xlu1 %v1053_v21, %s4075_s15 }
 0x2b8   : > { %910 = vrot.lane.b32.xlu0 %v4390_v0, %s4071_s30 }
 0x2bb   : > { %912 = vrot.lane.b32.xlu1 %v895_v22, %s4071_s30 }
 0x2bc   : > { %1030 = vrot.lane.b32.xlu0 %v4390_v0, %s4070_s29 }
 0x2bf   : > { %1032 = vrot.lane.b32.xlu1 %v895_v22, %s4070_s29 }
 0x2c0   : > { %952 = vrot.lane.b32.xlu0 %v936_v24, %s4072_s12 }
 0x2c3   : > { %954 = vrot.lane.b32.xlu1 %v937_v25, %s4072_s12 }
 0x2c4   : > { %1068 = vrot.lane.b32.xlu0 %v1054_v27, %s4075_s15 }
 0x2c7   : > { %996 = vrot.lane.b32.xlu1 %v979_v30, %s4073_s13 }
 0x2c8   : > { %994 = vrot.lane.b32.xlu0 %v978_v31, %s4073_s13 }
 0x2cb   : > { %1064 = vrot.lane.b32.xlu1 %v1052_v33, %s4075_s15 }
 0x2cc   : > { %1070 = vrot.lane.b32.xlu0 %v1055_v34, %s4075_s15 }
 0x2cf   : > { %1074 = vrot.lane.b32.xlu1 %v1057_v37, %s4075_s15 }
 0x2d0   : > { %1110 = vrot.lane.b32.xlu0 %v1096_v38, %s4074_s14 }
 0x2d3   : > { %1108 = vrot.lane.b32.xlu1 %v1095_v39, %s4074_s14 }
 0x2d4   : > { %1112 = vrot.lane.b32.xlu0 %v1097_v40, %s4074_s14 }
 0x2d7   : > { %1106 = vrot.lane.b32.xlu1 %v1094_v41, %s4074_s14 }
 0x2d8   : > { %1072 = vrot.lane.b32.xlu0 %v1056_v42, %s4075_s15 }
 0x2db   : > { %1116 = vrot.lane.b32.xlu1 %v1099_v50, %s4074_s14 }
 0x2dc   : > { %1146 = vrot.lane.b32.xlu0 %v4382_v61, %s4076_s16  ;;  %v1175_v61 = vsel %vm5965_vm9, %v4407_v5, 0  ;;  %vm5969_vm9 = vmmov %vm5968_vm0 }
 0x2df   : > { %1144 = vrot.lane.b32.xlu1 %v4368_v55, %s4076_s16 }
 0x2e0   : > { %1114 = vrot.lane.b32.xlu0 %v1098_v51, %s4074_s14 }
 0x2e3   : > { %1142 = vrot.lane.b32.xlu1 %v4377_v58, %s4076_s16  ;;  %v1258_v58 = vld [vmem:[%s5894_s4] sm:$0xff] }
 0x2e4   : > { %1150 = vrot.lane.b32.xlu0 %v4390_v0, %s4076_s16 }
 0x2e7   : > { %1152 = vrot.lane.b32.xlu1 %v895_v22, %s4076_s16 }
 0x2e8   : > { %1148 = vrot.lane.b32.xlu0 %v4407_v5, %s4076_s16  ;;  %v1261_v5 = vld [vmem:[%s5894_s4 + $0x18] sm:$0xff] }
 0x2eb   : > { %1186 = vrot.lane.b32.xlu1 %v1173_v53, %s4077_s20 }
 0x2ec   : > { %1188 = vrot.lane.b32.xlu0 %v1174_v54, %s4077_s20 }
 0x2ef   : > { %1184 = vrot.lane.b32.xlu1 %v1172_v56, %s4077_s20 }
 0x2f0   : > { %1192 = vrot.lane.b32.xlu0 %v1176_v57, %s4077_s20 }
 0x2f3   : > { %1194 = vrot.lane.b32.xlu1 %v1177_v60, %s4077_s20 }
 0x2f4   : > { %1190 = vrot.lane.b32.xlu0 %v1175_v61, %s4077_s20 }
 0x2f7   : > { %1264 = vperm.xlu1 %4011, %v1258_v58  }
 0x2f8   : > { %1269 = vperm.xlu0 %4010, %v1259_v2  }
 0x2fb   : > { %1274 = vperm.xlu1 %4011, %v1260_v6  }
 0x2fc   : > { %1279 = vperm.xlu0 %4010, %v1261_v5  }
 0x309   : > { %v903_v7 = vpop.permute.xlu1 %902 }
 0x30a   : > { %v907_v10 = vpop.permute.xlu0 %906 }
 0x30d   : > { %v1023_v11 = vpop.permute.xlu1 %1022 }
 0x30e   : > { %v1027_v12 = vpop.permute.xlu0 %1026 }
 0x311   : > { %v945_v14 = vpop.permute.xlu1 %944 }
 0x312   : > { %v949_v15 = vpop.permute.xlu0 %948 }
 0x315   : > { %v987_v16 = vpop.permute.xlu1 %986 }
 0x316   : > { %v991_v21 = vpop.permute.xlu0 %990 }
 0x319   : > { %v905_v22 = vpop.permute.xlu1 %904 }
 0x31a   : > { %v4572_v24 = vsel %vm5966_vm12, %v903_v7, %v905_v22  ;;  %v4575_v25 = vsel %vm5967_vm7, %v905_v22, %v907_v10  ;;  %v909_v27 = vpop.permute.xlu0 %908  ;;  %vm5970_vm12 = vcmask 1031168  }
 0x31b   : > { %922 = vst [vmem:[#allocation3 + $0x50] sm:$0xff] %v4572_v24  ;;  %923 = vst [vmem:[#allocation3 + $0x58] sm:$0xff] %v4575_v25  ;;  %1329 = vmatprep.subr.bf16.mxu1 %v4575_v25 }
 0x31c   : > { %1330 = vmatpush1.bf16.msra.mxu1 %v4572_v24  ;;  %vm5971_vm7 = vmmov %vm5970_vm12 }
 0x31d   : > { %v1025_v30 = vpop.permute.xlu1 %1024 }
 0x31e   : > { %v4582_v31 = vsel %vm5968_vm0, %v1023_v11, %v1025_v30  ;;  %v4585_v33 = vsel %vm5969_vm9, %v1025_v30, %v1027_v12  ;;  %v1029_v34 = vpop.permute.xlu0 %1028  ;;  %vm5972_vm0 = vcmask 916480  }
 0x31f   : > { %1042 = vst [vmem:[#allocation3 + $0xb0] sm:$0xff] %v4582_v31  ;;  %1043 = vst [vmem:[#allocation3 + $0xb8] sm:$0xff] %v4585_v33 }
 0x320   : > { %vm5973_vm9 = vmmov %vm5972_vm0 }
 0x321   : > { %v947_v37 = vpop.permute.xlu1 %946 }
 0x322   : > { %v4590_v38 = vsel %vm5970_vm12, %v945_v14, %v947_v37  ;;  %v4593_v39 = vsel %vm5971_vm7, %v947_v37, %v949_v15  ;;  %v951_v40 = vpop.permute.xlu0 %950  ;;  %vm5974_vm12 = vcmask 1039360  }
 0x323   : > { %964 = vst [vmem:[#allocation3 + $0x70] sm:$0xff] %v4590_v38  ;;  %965 = vst [vmem:[#allocation3 + $0x78] sm:$0xff] %v4593_v39 }
 0x324   : > { %vm5975_vm7 = vmmov %vm5974_vm12 }
 0x325   : > { %v989_v41 = vpop.permute.xlu1 %988 }
 0x326   : > { %v4598_v42 = vsel %vm5972_vm0, %v987_v16, %v989_v41  ;;  %v4601_v50 = vsel %vm5973_vm9, %v989_v41, %v991_v21  ;;  %v993_v51 = vpop.permute.xlu0 %992  ;;  %vm5976_vm0 = vcmask 908288  }
 0x327   : > { %1006 = vst [vmem:[#allocation3 + $0x90] sm:$0xff] %v4598_v42  ;;  %1007 = vst [vmem:[#allocation3 + $0x98] sm:$0xff] %v4601_v50 }
 0x328   : > { %vm5977_vm9 = vmmov %vm5976_vm0 }
 0x329   : > { %v1067_v52 = vpop.permute.xlu1 %1066 }
 0x32a   : > { %v911_v53 = vpop.permute.xlu0 %910 }
 0x32b   : > { %v4606_v54 = vsel %vm5974_vm12, %v909_v27, %v911_v53  ;;  %vm5978_vm12 = vcmask 1031168  }
 0x32c   : > { %924 = vst [vmem:[#allocation3 + $0x60] sm:$0xff] %v4606_v54 }
 0x32d   : > { %v913_v56 = vpop.permute.xlu1 %912 }
 0x32e   : > { %v4610_v57 = vsel %vm5975_vm7, %v911_v53, %v913_v56  ;;  %v1031_v60 = vpop.permute.xlu0 %1030  ;;  %vm5979_vm7 = vmmov %vm5978_vm12 }
 0x32f   : > { %925 = vst [vmem:[#allocation3 + $0x68] sm:$0xff] %v4610_v57  ;;  %v4614_v61 = vsel %vm5976_vm0, %v1029_v34, %v1031_v60  ;;  %1331 = vmatprep.subr.bf16.mxu1 %v4610_v57  ;;  %vm5980_vm0 = vcmask 900096  }
 0x330   : > { %1044 = vst [vmem:[#allocation3 + $0xc0] sm:$0xff] %v4614_v61  ;;  %1332 = vmatpush1.bf16.msra.mxu1 %v4606_v54 }
 0x331   : > { %v1033_v58 = vpop.permute.xlu1 %1032  ;;  %1333 = vmatprep.subr.bf16.mxu1 %v4593_v39 }
 0x332   : > { %v4621_v2 = vsel %vm5977_vm9, %v1031_v60, %v1033_v58  ;;  %v953_v6 = vpop.permute.xlu0 %952  ;;  %vm5981_vm9 = vcmask 916480  }
 0x333   : > { %1045 = vst [vmem:[#allocation3 + $0xc8] sm:$0xff] %v4621_v2  ;;  %v4625_v5 = vsel %vm5978_vm12, %v951_v40, %v953_v6  ;;  %vm5982_vm12 = vmmov %vm5981_vm9 }
 0x334   : > { %966 = vst [vmem:[#allocation3 + $0x80] sm:$0xff] %v4625_v5  ;;  %1334 = vmatpush1.bf16.msra.mxu1 %v4590_v38 }
 0x335   : > { %v955_v7 = vpop.permute.xlu1 %954 }
 0x336   : > { %v4630_v10 = vsel %vm5979_vm7, %v953_v6, %v955_v7  ;;  %v1069_v11 = vpop.permute.xlu0 %1068  ;;  %vm5983_vm7 = vmmov %vm5980_vm0  ;;  %v3374_v63 = vld [vmem:[#allocation3 + $0x68] sm:$0xff] }
 0x337   : > { %967 = vst [vmem:[#allocation3 + $0x88] sm:$0xff] %v4630_v10  ;;  %v4634_v12 = vsel %vm5980_vm0, %v1067_v52, %v1069_v11  ;;  %1335 = vmatprep.subr.bf16.mxu1 %v4630_v10  ;;  %vm5984_vm0 = vcmask 785408  }
 0x338   : > { %1085 = vst [vmem:[#allocation3 + $0xd8] sm:$0xff] %v4634_v12  ;;  %1336 = vmatpush1.bf16.msra.mxu1 %v4625_v5 }
 0x339   : > { %v997_v14 = vpop.permute.xlu1 %996  ;;  %1337 = vmatprep.subr.bf16.mxu1 %v4601_v50 }
 0x33a   : > { %v995_v15 = vpop.permute.xlu0 %994 }
 0x33b   : > { %v4641_v16 = vsel %vm5981_vm9, %v993_v51, %v995_v15  ;;  %v4644_v21 = vsel %vm5982_vm12, %v995_v15, %v997_v14  ;;  %vm5985_vm9 = vmmov %vm5984_vm0 }
 0x33c   : > { %1008 = vst [vmem:[#allocation3 + $0xa0] sm:$0xff] %v4641_v16  ;;  %1009 = vst [vmem:[#allocation3 + $0xa8] sm:$0xff] %v4644_v21  ;;  %1338 = vmatpush1.bf16.msra.mxu1 %v4598_v42 }
 0x33d   : > { %v1065_v22 = vpop.permute.xlu1 %1064  ;;  %1339 = vmatprep.subr.bf16.mxu1 %v4644_v21  ;;  %vm5986_vm12 = vmmov %vm5983_vm7 }
 0x33e   : > { %v4651_v27 = vsel %vm5983_vm7, %v1065_v22, %v1067_v52  ;;  %v1071_v30 = vpop.permute.xlu0 %1070 }
 0x33f   : > { %1084 = vst [vmem:[#allocation3 + $0xd0] sm:$0xff] %v4651_v27 }
 0x340   : > { %1340 = vmatpush1.bf16.msra.mxu1 %v4641_v16 }
 0x341   : > { %v1075_v34 = vpop.permute.xlu1 %1074  ;;  %1341 = vmatprep.subr.bf16.mxu1 %v4585_v33 }
 0x342   : > { %v1111_v37 = vpop.permute.xlu0 %1110 }
 0x344   : > { %1342 = vmatpush1.bf16.msra.mxu1 %v4582_v31 }
 0x345   : > { %v1109_v40 = vpop.permute.xlu1 %1108  ;;  %1343 = vmatprep.subr.bf16.mxu1 %v4621_v2 }
 0x346   : > { %v4659_v41 = vsel %vm5984_vm0, %v1109_v40, %v1111_v37  ;;  %v1113_v51 = vpop.permute.xlu0 %1112  ;;  %vm5987_vm0 = vcmask 777216   ;;  %v4018_v37 = vld [vmem:[%s5893_s3 + $0x1c] ss:$12 sps:$4 sm:$0xff]  }
 0x347   : > { %1127 = vst [vmem:[#allocation3 + $0xf8] sm:$0xff] %v4659_v41 }
 0x348   : > { %1344 = vmatpush1.bf16.msra.mxu1 %v4614_v61 }
 0x349   : > { %v1107_v52 = vpop.permute.xlu1 %1106  ;;  %1345 = vmatprep.subr.bf16.mxu1 %v4634_v12 }
 0x34a   : > { %v4665_v53 = vsel %vm5985_vm9, %v1107_v52, %v1109_v40  ;;  %v1073_v56 = vpop.permute.xlu0 %1072 }
 0x34b   : > { %1126 = vst [vmem:[#allocation3 + $0xf0] sm:$0xff] %v4665_v53  ;;  %v4669_v60 = vsel %vm5986_vm12, %v1071_v30, %v1073_v56  ;;  %v4672_v58 = vsel %vm5983_vm7, %v1073_v56, %v1075_v34  ;;  %vm5988_vm12 = vmmov %vm5985_vm9  ;;  %v4015_v34 = vld [vmem:[%s5893_s3] ss:$12 sps:$4 sm:$0xff]  }
 0x34c   : > { %1086 = vst [vmem:[#allocation3 + $0xe0] sm:$0xff] %v4669_v60  ;;  %1087 = vst [vmem:[#allocation3 + $0xe8] sm:$0xff] %v4672_v58  ;;  %1346 = vmatpush1.bf16.msra.mxu1 %v4651_v27 }
 0x34d   : > { %v1117_v6 = vpop.permute.xlu1 %1116  ;;  %1347 = vmatprep.subr.bf16.mxu1 %v4672_v58  ;;  %vm5989_vm7 = vmmov %vm5987_vm0 }
 0x34e   : > { %v1147_v7 = vpop.permute.xlu0 %1146 }
 0x350   : > { %1348 = vmatpush1.bf16.msra.mxu1 %v4669_v60 }
 0x351   : > { %v1145_v11 = vpop.permute.xlu1 %1144  ;;  %1349 = vmatprep.subr.bf16.mxu1 %v4659_v41 }
 0x352   : > { %v4681_v14 = vsel %vm5987_vm0, %v1145_v11, %v1147_v7  ;;  %v1115_v15 = vpop.permute.xlu0 %1114 }
 0x353   : > { %1163 = vst [vmem:[#allocation3 + $0x118] sm:$0xff] %v4681_v14  ;;  %v4685_v22 = vsel %vm5985_vm9, %v1113_v51, %v1115_v15  ;;  %v4688_v30 = vsel %vm5988_vm12, %v1115_v15, %v1117_v6  ;;  %vm5990_vm9 = vmmov %vm5987_vm0  ;;  %v4020_v15 = vld [vmem:[%s5893_s3 + $0x18] ss:$12 sps:$4 sm:$0xff]   ;;  %vm5991_vm12 = vcmask 769024  }
 0x354   : > { %1128 = vst [vmem:[#allocation3 + $0x100] sm:$0xff] %v4685_v22  ;;  %1129 = vst [vmem:[#allocation3 + $0x108] sm:$0xff] %v4688_v30  ;;  %1350 = vmatpush1.bf16.msra.mxu1 %v4665_v53  ;;  %2033 = vmatprep.subr.bf16.mxu0 %v4688_v30 }
 0x355   : > { %v1143_v40 = vpop.permute.xlu1 %1142  ;;  %1372 = vmatprep.subr.bf16.mxu1 %v4688_v30  ;;  %2034 = vmatpush1.bf16.msra.mxu0 %v4685_v22 }
 0x356   : > { %v4703_v51 = vsel %vm5989_vm7, %v1143_v40, %v1145_v11  ;;  %v1151_v52 = vpop.permute.xlu0 %1150  ;;  %2035 = vmatprep.subr.bf16.mxu0 %v4681_v14  ;;  %vm5992_vm7 = vmmov %vm5991_vm12 }
 0x357   : > { %1162 = vst [vmem:[#allocation3 + $0x110] sm:$0xff] %v4703_v51  ;;  %1352 = vmatmul.mubr.bf16.vlgmr.msra.gmra.mrb[8].mxu1 %v4015_v34 }
 0x358   : > { %1373 = vmatpush1.bf16.msra.mxu1 %v4685_v22  ;;  %1361 = vmatprep.mubr.bf16.mxu1 %v4018_v37 }
 0x359   : > { %v1153_v56 = vpop.permute.xlu1 %1152  ;;  %1374 = vmatprep.subr.bf16.mxu1 %v4681_v14  ;;  %2036 = vmatpush1.bf16.msra.mxu0 %v4703_v51 }
 0x35a   : > { %v4711_v6 = vsel %vm5987_vm0, %v1151_v52, %v1153_v56  ;;  %v1149_v7 = vpop.permute.xlu0 %1148  ;;  %vm5993_vm0 = vmmov %vm5992_vm7 }
 0x35b   : > { %1165 = vst [vmem:[#allocation3 + $0x128] sm:$0xff] %v4711_v6  ;;  %v4715_v11 = vsel %vm5990_vm9, %v1149_v7, %v1151_v52  ;;  %2037 = vmatprep.subr.bf16.mxu0 %v4711_v6  ;;  %vm5994_vm9 = vmmov %vm5993_vm0 }
 0x35c   : > { %1164 = vst [vmem:[#allocation3 + $0x120] sm:$0xff] %v4715_v11  ;;  %1375 = vmatpush1.bf16.msra.mxu1 %v4703_v51 }
 0x35d   : > { %v1187_v34 = vpop.permute.xlu1 %1186  ;;  %1376 = vmatprep.subr.bf16.mxu1 %v4711_v6  ;;  %2038 = vmatpush1.bf16.msra.mxu0 %v4715_v11 }
 0x35e   : > { %v1189_v37 = vpop.permute.xlu0 %1188 }
 0x35f   : > { %v4726_v40 = vsel %vm5991_vm12, %v1187_v34, %v1189_v37  ;;  %1362 = vmatmul.mubr.bf16.gmra.mrb[12].mxu1 %v4020_v15  ;;  %vm1312_vm12 = vcmask 654336  }
 0x360   : > { %1205 = vst [vmem:[#allocation3 + $0x138] sm:$0xff] %v4726_v40  ;;  %1377 = vmatpush1.bf16.msra.mxu1 %v4715_v11  ;;  %2039 = vmatprep.subr.bf16.mxu0 %v4726_v40 }
 0x361   : > { %v1185_v52 = vpop.permute.xlu1 %1184  ;;  %1378 = vmatprep.subr.bf16.mxu1 %v4726_v40  ;;  %1404 = vmatprep.mubr.bf16.mxu1 %v5925_v1 }
 0x362   : > { %v4734_v56 = vsel %vm5992_vm7, %v1185_v52, %v1187_v34  ;;  %v1193_v7 = vpop.permute.xlu0 %1192  ;;  %v4021_v34 = vld [vmem:[%s5893_s3 + $0x8] ss:$12 sps:$4 sm:$0xff]   ;;  %v4025_v52 = vld [vmem:[%s5895_s5 + $0x4] ss:$20 sps:$4 sm:$0xff]  }
 0x363   : > { %1204 = vst [vmem:[#allocation3 + $0x130] sm:$0xff] %v4734_v56  ;;  %2040 = vmatpush1.bf16.msra.mxu0 %v4734_v56 }
 0x364   : > { %1379 = vmatpush1.bf16.msra.mxu1 %v4734_v56 }
 0x365   : > { %v1195_v15 = vpop.permute.xlu1 %1194 }
 0x366   : > { %v4740_v37 = vsel %vm5993_vm0, %v1193_v7, %v1195_v15  ;;  %v1191_v3 = vpop.permute.xlu0 %1190  ;;  %v2541_v15 = vld [vmem:[#allocation3 + $0x10] sm:$0xff] }
 0x367   : > { %1207 = vst [vmem:[#allocation3 + $0x148] sm:$0xff] %v4740_v37  ;;  %v4744_v26 = vsel %vm5994_vm9, %v1191_v3, %v1193_v7  ;;  %1380 = vmatprep.subr.bf16.mxu1 %v4740_v37  ;;  %2041 = vmatprep.subr.bf16.mxu0 %v4740_v37  ;;  %v4022_v3 = vld [vmem:[%s5893_s3 + $0x20] ss:$12 sps:$4 sm:$0xff]  }
 0x368   : > { %1206 = vst [vmem:[#allocation3 + $0x140] sm:$0xff] %v4744_v26  ;;  %1381 = vmatpush1.bf16.msra.mxu1 %v4744_v26  ;;  %2042 = vmatpush1.bf16.msra.mxu0 %v4744_v26  ;;  %v2527_v7 = vld [vmem:[%s5897_s7 + $0x20] sm:$0xff] }
 0x369   : > { %1980 = vmatprep.subr.bf16.mxu1 %v4329_v43  ;;  %v4023_v43 = vld [vmem:[%s5895_s5] ss:$20 sps:$4 sm:$0xff]  }
 0x36b   : > { %3858 = vmatmul.mubr.msk.bf16.vlgmr.msra.gmra.mrb[8].mxu1 %vm1312_vm12, %v4021_v34  ;;  %v4028_v34 = vld [vmem:[%s5895_s5 + $0x28] ss:$20 sps:$4 sm:$0xff]  }
 0x36c   : > { %1981 = vmatpush1.bf16.msra.mxu1 %v4331_v44  ;;  %1414 = vmatprep.mubr.bf16.mxu1 %v5925_v1  ;;  %v2540_v44 = vld [vmem:[#allocation3 + $0x8] sm:$0xff] }
 0x36d   : > { %1982 = vmatprep.subr.bf16.mxu1 %v4335_v45  ;;  %v4026_v45 = vld [vmem:[%s5895_s5 + $0x2c] ss:$20 sps:$4 sm:$0xff]  }
 0x370   : > { %1983 = vmatpush1.bf16.msra.mxu1 %v4338_v46  ;;  %v2539_v46 = vld [vmem:[#allocation3] sm:$0xff] }
 0x371   : > { %1984 = vmatprep.subr.bf16.mxu1 %v4341_v48  ;;  %v2542_v48 = vld [vmem:[#allocation3 + $0x18] sm:$0xff] }
 0x373   : > { %3859 = vmatmul.mubr.msk.bf16.gmra.mrb[12].mxu1 %vm1312_vm12, %v4022_v3  ;;  %v2544_v3 = vld [vmem:[#allocation3 + $0x28] sm:$0xff] }
 0x374   : > { %1985 = vmatpush1.bf16.msra.mxu1 %v4344_v49  ;;  %2012 = vmatprep.mubr.bf16.mxu1 %v4025_v52  ;;  %v2523_v49 = vld [vmem:[%s5897_s7] sm:$0xff] }
 0x375   : > { %4040 = vmatprep.subr.msk.bf16.mxu1 %vm469_vm15, %v4368_v55  ;;  %v3873_v52 = vcombine.high %v2523_v49, %v2527_v7 }
 0x378   : > { %1987 = vmatpush1.bf16.msra.mxu1 %v4387_v62 }
 0x379   : > { %4041 = vmatprep.subr.msk.bf16.mxu1 %vm469_vm15, %v4390_v0 }
 0x37c   : > { %1989 = vmatpush1.bf16.msra.mxu1 %v4419_v9 }
 0x37d   : > { %1990 = vmatprep.subr.bf16.mxu1 %v4575_v25 }
 0x380   : > { %1991 = vmatpush1.bf16.msra.mxu1 %v4572_v24 }
 0x381   : > { %1992 = vmatprep.subr.bf16.mxu1 %v4610_v57 }
 0x384   : > { %1993 = vmatpush1.bf16.msra.mxu1 %v4606_v54 }
 0x385   : > { %1994 = vmatprep.subr.bf16.mxu1 %v4593_v39 }
 0x388   : > { %1995 = vmatpush1.bf16.msra.mxu1 %v4590_v38 }
 0x389   : > { %1996 = vmatprep.subr.bf16.mxu1 %v4630_v10 }
 0x38c   : > { %1997 = vmatpush1.bf16.msra.mxu1 %v4625_v5 }
 0x38d   : > { %1998 = vmatprep.subr.bf16.mxu1 %v4601_v50 }
 0x390   : > { %1999 = vmatpush1.bf16.msra.mxu1 %v4598_v42 }
 0x391   : > { %2000 = vmatprep.subr.bf16.mxu1 %v4644_v21 }
 0x394   : > { %2001 = vmatpush1.bf16.msra.mxu1 %v4641_v16 }
 0x395   : > { %2002 = vmatprep.subr.bf16.mxu1 %v4585_v33 }
 0x398   : > { %2003 = vmatpush1.bf16.msra.mxu1 %v4582_v31 }
 0x399   : > { %2004 = vmatprep.subr.bf16.mxu1 %v4621_v2 }
 0x39c   : > { %2005 = vmatpush1.bf16.msra.mxu1 %v4614_v61 }
 0x39d   : > { %2006 = vmatprep.subr.bf16.mxu1 %v4634_v12 }
 0x3a0   : > { %2007 = vmatpush1.bf16.msra.mxu1 %v4651_v27 }
 0x3a1   : > { %2008 = vmatprep.subr.bf16.mxu1 %v4672_v58 }
 0x3a4   : > { %2009 = vmatpush1.bf16.msra.mxu1 %v4669_v60 }
 0x3a5   : > { %2010 = vmatprep.subr.bf16.mxu1 %v4659_v41 }
 0x3a8   : > { %2011 = vmatpush1.bf16.msra.mxu1 %v4665_v53 }
 0x3a9   : > { %2762 = vmatprep.subr.bf16.mxu1 %v2540_v44 }
 0x3ab   : > { %2013 = vmatmul.mubr.bf16.vlgmr.msra.gmra.mrb[16].mxu1 %v4023_v43  ;;  %v2543_v43 = vld [vmem:[#allocation3 + $0x20] sm:$0xff] }
 0x3ac   : > { %2763 = vmatpush1.bf16.msra.mxu1 %v2539_v46  ;;  %2022 = vmatprep.mubr.bf16.mxu1 %v4026_v45 }
 0x3ad   : > { %2764 = vmatprep.subr.bf16.mxu1 %v2542_v48 }
 0x3b0   : > { %2765 = vmatpush1.bf16.msra.mxu1 %v2541_v15 }
 0x3b1   : > { %2766 = vmatprep.subr.bf16.mxu1 %v2544_v3 }
 0x3b3   : > { %2023 = vmatmul.mubr.bf16.gmra.mrb[20].mxu1 %v4028_v34 }
 0x3b4   : > { %2767 = vmatpush1.bf16.msra.mxu1 %v2543_v43  ;;  %2794 = vmatprep.mubr.bf16.mxu1 %v3873_v52 }
 0x3b5   : > { %4042 = vmatprep.subr.msk.bf16.mxu1 %vm469_vm15, %v4368_v55  ;;  %v3872_v55 = vcombine.low %v2523_v49, %v2527_v7 }
 0x3b8   : > { %2769 = vmatpush1.bf16.msra.mxu1 %v4387_v62  ;;  %v1265_v62 = vpop.permute.xlu1 %1264 }
 0x3b9   : > { %4043 = vmatprep.subr.msk.bf16.mxu1 %vm469_vm15, %v4390_v0 }
 0x3bc   : > { %2771 = vmatpush1.bf16.msra.mxu1 %v4419_v9 }
 0x3bd   : > { %2772 = vmatprep.subr.bf16.mxu1 %v4575_v25  ;;  %v1270_v25 = vpop.permute.xlu0 %1269 }
 0x3c0   : > { %2773 = vmatpush1.bf16.msra.mxu1 %v4572_v24 }
 0x3c1   : > { %2774 = vmatprep.subr.bf16.mxu1 %v4610_v57 }
 0x3c4   : > { %2775 = vmatpush1.bf16.msra.mxu1 %v4606_v54 }
 0x3c5   : > { %2776 = vmatprep.subr.bf16.mxu1 %v4593_v39 }
 0x3c8   : > { %2777 = vmatpush1.bf16.msra.mxu1 %v4590_v38 }
 0x3c9   : > { %2778 = vmatprep.subr.bf16.mxu1 %v4630_v10 }
 0x3cc   : > { %2779 = vmatpush1.bf16.msra.mxu1 %v4625_v5  ;;  %v1275_v5 = vpop.permute.xlu1 %1274 }
 0x3cd   : > { %2780 = vmatprep.subr.bf16.mxu1 %v4601_v50 }
 0x3d0   : > { %2781 = vmatpush1.bf16.msra.mxu1 %v4598_v42 }
 0x3d1   : > { %2782 = vmatprep.subr.bf16.mxu1 %v4644_v21 }
 0x3d4   : > { %2783 = vmatpush1.bf16.msra.mxu1 %v4641_v16 }
 0x3d5   : > { %2784 = vmatprep.subr.bf16.mxu1 %v4585_v33 }
 0x3d8   : > { %2785 = vmatpush1.bf16.msra.mxu1 %v4582_v31 }
 0x3d9   : > { %2786 = vmatprep.subr.bf16.mxu1 %v4621_v2 }
 0x3dc   : > { %2787 = vmatpush1.bf16.msra.mxu1 %v4614_v61 }
 0x3dd   : > { %2788 = vmatprep.subr.bf16.mxu1 %v4634_v12 }
 0x3e0   : > { %2789 = vmatpush1.bf16.msra.mxu1 %v4651_v27 }
 0x3e1   : > { %2790 = vmatprep.subr.bf16.mxu1 %v4672_v58 }
 0x3e4   : > { %2791 = vmatpush1.bf16.msra.mxu1 %v4669_v60  ;;  %v1280_v60 = vpop.permute.xlu0 %1279 }
 0x3e5   : > { %2792 = vmatprep.subr.bf16.mxu1 %v4659_v41 }
 0x3e8   : > { %2793 = vmatpush1.bf16.msra.mxu1 %v4665_v53 }
 0x3e9   : > { %2815 = vmatprep.subr.bf16.mxu1 %v4688_v30 }
 0x3eb   : > { %2795 = vmatmul.mubr.bf16.vlgmr.msra.gmra.mrb[24].mxu1 %v3872_v55 }
 0x3ec   : > { %2816 = vmatpush1.bf16.msra.mxu1 %v4685_v22 }
 0x3ed   : > { %2817 = vmatprep.subr.bf16.mxu1 %v4681_v14 }
 0x3f0   : > { %2818 = vmatpush1.bf16.msra.mxu1 %v4703_v51 }
 0x3f1   : > { %2819 = vmatprep.subr.bf16.mxu1 %v4711_v6 }
 0x3f4   : > { %2820 = vmatpush1.bf16.msra.mxu1 %v4715_v11 }
 0x3f5   : > { %2821 = vmatprep.subr.bf16.mxu1 %v4726_v40 }
 0x3f8   : > { %2822 = vmatpush1.bf16.msra.mxu1 %v4734_v56 }
 0x3f9   : > { %2823 = vmatprep.subr.bf16.mxu1 %v4740_v37 }
 0x3fc   : > { %2824 = vmatpush1.bf16.msra.mxu1 %v4744_v26 }
 0x43e   : > { %v1406_v0 = vpop.f32.mrb[8].mxu1 }
 0x43f   : > { %v3896_v9 = vadd.f32 %v1406_v0, %v1265_v62  ;;  %v1408_v24 = vpop.f32.mrb[9].mxu1 }
 0x440   : > { %v3897_v31 = vadd.f32 %v1408_v24, %v1265_v62  ;;  %v1410_v33 = vpop.f32.mrb[10].mxu1 }
 0x441   : > { %v1433_v38 = vmul.f32 0.01, %v3896_v9  ;;  %v3898_v39 = vadd.f32 %v1410_v33, %v1270_v25  ;;  %v1412_v42 = vpop.f32.mrb[11].mxu1  ;;  %vm1425_vm7 = vcmp.ge.f32.partialorder %v3896_v9, 0.0 }
 0x442   : > { %v1434_v50 = vmul.f32 0.01, %v3897_v31  ;;  %v3899_v54 = vadd.f32 %v1412_v42, %v1270_v25  ;;  %vm1426_vm0 = vcmp.ge.f32.partialorder %v3897_v31, 0.0 }
 0x443   : > { %vm1427_vm9 = vcmp.ge.f32.partialorder %v3898_v39, 0.0  ;;  %v1435_v57 = vmul.f32 0.01, %v3898_v39  ;;  %v1441_v2 = vsel %vm1425_vm7, %v3896_v9, %v1433_v38 }
 0x444   : > { %vm1428_vm12 = vcmp.ge.f32.partialorder %v3899_v54, 0.0  ;;  %v1436_v61 = vmul.f32 0.01, %v3899_v54  ;;  %v1442_v16 = vsel %vm1426_vm0, %v3897_v31, %v1434_v50 }
 0x445   : > { %v1443_v26 = vsel %vm1427_vm9, %v3898_v39, %v1435_v57 }
 0x446   : > { %v1416_v10 = vpop.f32.mrb[12].mxu1  ;;  %v1449_v12 = vpack.c.bf16 %v1443_v26, %v1441_v2  ;;  %v1444_v21 = vsel %vm1428_vm12, %v3899_v54, %v1436_v61  ;;  %vm5996_vm12 = vcmp.ne.s16.totalorder %v4196_v32, 0  ;;  %v3369_v32 = vld [vmem:[#allocation3 + $0x40] sm:$0xff] }
 0x447   : > { %v3900_v27 = vadd.f32 %v1416_v10, %v1275_v5  ;;  %v1418_v41 = vpop.f32.mrb[13].mxu1  ;;  %v1450_v53 = vpack.c.bf16 %v1444_v21, %v1442_v16 }
 0x448   : > { %v3901_v58 = vadd.f32 %v1418_v41, %v1275_v5  ;;  %v1420_v14 = vpop.f32.mrb[14].mxu1  ;;  %1457 = vrot.lane.b32.xlu1 %v1449_v12, %s4064_s23 }
 0x449   : > { %v1437_v22 = vmul.f32 0.01, %v3900_v27  ;;  %v3902_v30 = vadd.f32 %v1420_v14, %v1280_v60  ;;  %v1422_v51 = vpop.f32.mrb[15].mxu1  ;;  %1459 = vrot.lane.b32.xlu0 %v1450_v53, %s4064_s23  ;;  %vm1429_vm7 = vcmp.ge.f32.partialorder %v3900_v27, 0.0  ;;  %v2531_v53 = vld [vmem:[%s5897_s7 + $0x40] sm:$0xff] }
 0x44a   : > { %v1438_v6 = vmul.f32 0.01, %v3901_v58  ;;  %v3903_v11 = vadd.f32 %v1422_v51, %v1280_v60  ;;  %vm1430_vm9 = vcmp.ge.f32.partialorder %v3901_v58, 0.0  ;;  %v2535_v60 = vld [vmem:[%s5897_s7 + $0x60] sm:$0xff] }
 0x44b   : > { %vm1431_vm4 = vcmp.ge.f32.partialorder %v3902_v30, 0.0  ;;  %v1439_v40 = vmul.f32 0.01, %v3902_v30  ;;  %v1445_v37 = vsel %vm1429_vm7, %v3900_v27, %v1437_v22  ;;  %vm5997_vm7 = vmmov %vm5996_vm12  ;;  %v3881_v14 = vcombine.high %v2531_v53, %v2535_v60 }
 0x44c   : > { %vm1432_vm0 = vcmp.ge.f32.partialorder %v3903_v11, 0.0  ;;  %v1440_v56 = vmul.f32 0.01, %v3903_v11  ;;  %v1446_v45 = vsel %vm1430_vm9, %v3901_v58, %v1438_v6  ;;  %v3880_v22 = vcombine.low %v2531_v53, %v2535_v60 }
 0x44d   : > { %v1447_v44 = vsel %vm1431_vm4, %v3902_v30, %v1439_v40  ;;  %vm5995_vm4 = vcmp.ne.s16.totalorder %v4217_v47, 0  ;;  %2804 = vmatprep.mubr.bf16.mxu1 %v3881_v14  ;;  %v4031_v40 = vld [vmem:[%s5895_s5 + $0xc] ss:$20 sps:$4 sm:$0xff]  }
 0x44e   : > { %v1451_v46 = vpack.c.bf16 %v1447_v44, %v1445_v37  ;;  %v1448_v48 = vsel %vm1432_vm0, %v3903_v11, %v1440_v56  ;;  %vm5998_vm9 = vmmov %vm5995_vm4  ;;  %vm5999_vm0 = vcmp.ne.s16.totalorder %v4231_v59, 0  ;;  %2805 = vmatmul.mubr.bf16.gmra.mrb[28].mxu1 %v3880_v22  ;;  %v5022_v56 = vld [vmem:[%s5897_s7 + $0x8] sm:$0xff]  ;;  %2065 = vmatprep.mubr.bf16.mxu0 %v4031_v40  ;;  %v3367_v59 = vld [vmem:[#allocation3 + $0x30] sm:$0xff] }
 0x44f   : > { %v1452_v49 = vpack.c.bf16 %v1448_v48, %v1446_v45  ;;  %v5028_v37 = vld [vmem:[%s5897_s7 + $0x28] sm:$0xff] }
 0x450   : > { %1461 = vrot.lane.b32.xlu1 %v1451_v46, %s4064_s23  ;;  %v3874_v44 = vcombine.low %v5022_v56, %v5028_v37  ;;  %v3875_v45 = vcombine.high %v5022_v56, %v5028_v37  ;;  %v4034_v37 = vld [vmem:[%s5895_s5 + $0x30] ss:$20 sps:$4 sm:$0xff]   ;;  %v3372_v47 = vld [vmem:[#allocation3 + $0x58] sm:$0xff] }
 0x451   : > { %1463 = vrot.lane.b32.xlu0 %v1452_v49, %s4064_s23 }
 0x452   : > { %2847 = vmatprep.mubr.bf16.mxu1 %v3875_v45 }
 0x4ba   : > { %v1458_v7 = vpop.permute.xlu1 %1457 }
 0x4bb   : > { %1473 = vst.msk [vmem:[#allocation2] sm:$0xff] %vm870_vm5, %v1458_v7  ;;  %v1460_v15 = vpop.permute.xlu0 %1459 }
 0x4bc   : > { %v4858_v34 = vsel %vm442_vm8, %v1458_v7, %v1460_v15  ;;  %1475 = vst.msk [vmem:[#allocation2 + $0x10] sm:$0xff] %vm442_vm8, %v1460_v15  ;;  %v5061_v15 = vpop.f32.mrb[16].mxu1 }
 0x4bd   : > { %v1484_v3 = vsel %vm469_vm15, %v4858_v34, 0  ;;  %4044 = vmatprep.subr.msk.bf16.mxu0 %vm469_vm15, %v4858_v34  ;;  %4045 = vmatprep.subr.msk.bf16.mxu1 %vm469_vm15, %v4858_v34  ;;  %v1534_v42 = vsel %vm520_vm3, %v4858_v34, 0  ;;  %v1576_v54 = vsel %vm5943_vm6, %v4858_v34, 0  ;;  %v1654_v61 = vsel %vm5924_vm13, %v4858_v34, 0 }
 0x4be   : > { %1488 = vst [vmem:[#allocation3 + $0x158] sm:$0xff] %v1484_v3  ;;  %v5064_v3 = vpop.f32.mrb[17].mxu1 }
 0x4c2   : > { %v1462_v52 = vpop.permute.xlu1 %1461  ;;  %v4870_v43 = vld [vmem:[#allocation2] sm:$0xff] }
 0x4c3   : > { %1476 = vst.msk [vmem:[#allocation2 + $0x18] sm:$0xff] %vm870_vm5, %v1462_v52  ;;  %1503 = vrot.lane.b32.xlu1 %v4870_v43, %s4071_s30  ;;  %v1464_v55 = vpop.permute.xlu0 %1463  ;;  %v4875_v62 = vld [vmem:[#allocation2 + $0x10] sm:$0xff]  ;;  %v1483_v0 = vsel %vm468_vm1, %v4870_v43, 0  ;;  %v1533_v24 = vsel %vm519_vm10, %v4870_v43, 0  ;;  %v1575_v38 = vsel %vm553_vm11, %v4870_v43, 0  ;;  %v1653_v21 = vsel %vm5996_vm12, %v4870_v43, 0 }
 0x4c4   : > { %v4881_v9 = vsel %vm442_vm8, %v1462_v52, %v1464_v55  ;;  %1478 = vst.msk [vmem:[#allocation2 + $0x28] sm:$0xff] %vm442_vm8, %v1464_v55  ;;  %1507 = vrot.lane.b32.xlu0 %v4875_v62, %s4071_s30  ;;  %1487 = vst [vmem:[#allocation3 + $0x150] sm:$0xff] %v1483_v0  ;;  %2044 = vmatpush1.bf16.msra.mxu0 %v1483_v0  ;;  %v1535_v31 = vsel %vm521_vm14, %v4875_v62, 0  ;;  %v1577_v39 = vsel %vm555_vm2, %v4875_v62, 0  ;;  %v1655_v10 = vsel %vm5995_vm4, %v4875_v62, 0  ;;  %v5066_v52 = vpop.f32.mrb[18].mxu1 }
 0x4c5   : > { %2826 = vmatpush1.bf16.msra.mxu1 %v1483_v0  ;;  %4046 = vmatprep.subr.msk.bf16.mxu0 %vm469_vm15, %v4881_v9  ;;  %v1537_v26 = vsel %vm520_vm3, %v4881_v9, 0  ;;  %v1579_v16 = vsel %vm5943_vm6, %v4881_v9, 0  ;;  %v1697_v58 = vsel %vm5999_vm0, %v4875_v62, 0  ;;  %vm6000_vm4 = vcmp.ne.s16.totalorder %v4252_v8, 0  ;;  %v6007_v55 = vld [vmem:[#allocation12_spill] sm:$0xff] }
 0x4c6   : > { %4047 = vmatprep.subr.msk.bf16.mxu1 %vm469_vm15, %v4881_v9  ;;  %v1696_v30 = vsel %vm6000_vm4, %v4858_v34, 0  ;;  %vm6001_vm12 = vcmp.ne.s16.totalorder %v4205_v36, 0  ;;  %v1657_v11 = vsel %vm5924_vm13, %v4881_v9, 0  ;;  %v6044_v36 = vmov 0  }
 0x4c7   : > { %1623 = vrot.lane.b32.xlu1 %v4870_v43, %s4070_s29 }
 0x4c8   : > { %1627 = vrot.lane.b32.xlu0 %v4875_v62, %s4070_s29 }
 0x4ca   : > { %v4899_v25 = vld [vmem:[#allocation2 + $0x18] sm:$0xff] }
 0x4cb   : > { %1545 = vrot.lane.b32.xlu1 %v1533_v24, %s4072_s12  ;;  %v4908_v33 = vsel %vm468_vm1, %v4899_v25, 0  ;;  %v1536_v50 = vsel %vm519_vm10, %v4899_v25, 0  ;;  %v1578_v57 = vsel %vm553_vm11, %v4899_v25, 0  ;;  %v4951_v2 = vld [vmem:[#allocation2 + $0x28] sm:$0xff]  ;;  %v1656_v27 = vsel %vm5997_vm7, %v4899_v25, 0  ;;  %vm6002_vm7 = vmmov %vm6001_vm12 }
 0x4cc   : > { %1549 = vrot.lane.b32.xlu0 %v1535_v31, %s4072_s12  ;;  %2046 = vmatpush1.bf16.msra.mxu0 %v4908_v33  ;;  %v1538_v5 = vsel %vm521_vm14, %v4951_v2, 0  ;;  %v1580_v12 = vsel %vm555_vm2, %v4951_v2, 0  ;;  %v1658_v41 = vsel %vm5998_vm9, %v4951_v2, 0  ;;  %v1698_v51 = vsel %vm6001_vm12, %v4899_v25, 0  ;;  %vm6003_vm9 = vmmov %vm5999_vm0  ;;  %v1900_v31 = vld [vmem:[%s5896_s6 + $0x8] sm:$0xff] }
 0x4cd   : > { %2828 = vmatpush1.bf16.msra.mxu1 %v4908_v33  ;;  %v1695_v6 = vsel %vm6002_vm7, %v4870_v43, 0  ;;  %v1700_v46 = vsel %vm6003_vm9, %v4951_v2, 0  ;;  %vm6004_vm0 = vmmov %vm6000_vm4  ;;  %vm6005_vm4 = vcmp.ne.s16.totalorder %v4281_v29, 0  ;;  %vm6006_vm12 = vcmp.ne.s16.totalorder %v4270_v19, 0  ;;  %v3364_v29 = vld [vmem:[#allocation3 + $0x18] sm:$0xff] }
 0x4ce   : > { %v1699_v48 = vsel %vm6004_vm0, %v4881_v9, 0  ;;  %v1774_v49 = vsel %vm6005_vm4, %v4858_v34, 0  ;;  %v1775_v7 = vsel %vm6006_vm12, %v4875_v62, 0  ;;  %vm6008_vm7 = vcmp.ne.s16.totalorder %v6007_v55, 0  ;;  %vm6009_vm9 = vmmov %vm6005_vm4 }
 0x4cf   : > { %1587 = vrot.lane.b32.xlu1 %v1575_v38, %s4073_s13  ;;  %v1773_v0 = vsel %vm6008_vm7, %v4870_v43, 0  ;;  %vm6010_vm0 = vmmov %vm6006_vm12  ;;  %v5090_v38 = vpop.f32.mrb[19].mxu1  ;;  %vm6012_vm12 = vcmask 1039360  }
 0x4d0   : > { %1591 = vrot.lane.b32.xlu0 %v1577_v39, %s4073_s13  ;;  %vm6011_vm4 = vmmov %vm6008_vm7  ;;  %v5092_v39 = vpop.f32.mrb[20].mxu1 }
 0x4d1   : > { %v1776_v24 = vsel %vm6011_vm4, %v4899_v25, 0  ;;  %vm6013_vm7 = vmmov %vm6012_vm12  ;;  %vm6016_vm4 = vcmask 1031168  }
 0x4d3   : > { %1505 = vrot.lane.b32.xlu1 %v4858_v34, %s4071_s30 }
 0x4d4   : > { %1509 = vrot.lane.b32.xlu0 %v4899_v25, %s4071_s30 }
 0x4d7   : > { %1625 = vrot.lane.b32.xlu1 %v4858_v34, %s4070_s29 }
 0x4d8   : > { %1629 = vrot.lane.b32.xlu0 %v4899_v25, %s4070_s29 }
 0x4db   : > { %1547 = vrot.lane.b32.xlu1 %v1534_v42, %s4072_s12  ;;  %v5097_v42 = vpop.f32.mrb[21].mxu1 }
 0x4dc   : > { %1551 = vrot.lane.b32.xlu0 %v1536_v50, %s4072_s12  ;;  %v1902_v50 = vld [vmem:[%s5896_s6 + $0x18] sm:$0xff] }
 0x4df   : > { %1589 = vrot.lane.b32.xlu1 %v1576_v54, %s4073_s13  ;;  %v5102_v54 = vpop.f32.mrb[22].mxu1 }
 0x4e0   : > { %1593 = vrot.lane.b32.xlu0 %v1578_v57, %s4073_s13  ;;  %v5104_v57 = vpop.f32.mrb[23].mxu1 }
 0x4e3   : > { %1667 = vrot.lane.b32.xlu1 %v1654_v61, %s4075_s15 }
 0x4e4   : > { %1511 = vrot.lane.b32.xlu0 %v4881_v9, %s4071_s30 }
 0x4e7   : > { %1513 = vrot.lane.b32.xlu1 %v4951_v2, %s4071_s30 }
 0x4e8   : > { %1631 = vrot.lane.b32.xlu0 %v4881_v9, %s4070_s29 }
 0x4eb   : > { %1633 = vrot.lane.b32.xlu1 %v4951_v2, %s4070_s29 }
 0x4ec   : > { %1553 = vrot.lane.b32.xlu0 %v1537_v26, %s4072_s12 }
 0x4ef   : > { %1555 = vrot.lane.b32.xlu1 %v1538_v5, %s4072_s12 }
 0x4f0   : > { %1669 = vrot.lane.b32.xlu0 %v1655_v10, %s4075_s15 }
 0x4f3   : > { %1597 = vrot.lane.b32.xlu1 %v1580_v12, %s4073_s13 }
 0x4f4   : > { %1595 = vrot.lane.b32.xlu0 %v1579_v16, %s4073_s13 }
 0x4f7   : > { %1665 = vrot.lane.b32.xlu1 %v1653_v21, %s4075_s15 }
 0x4f8   : > { %1671 = vrot.lane.b32.xlu0 %v1656_v27, %s4075_s15 }
 0x4fb   : > { %1675 = vrot.lane.b32.xlu1 %v1658_v41, %s4075_s15 }
 0x4fc   : > { %1711 = vrot.lane.b32.xlu0 %v1697_v58, %s4074_s14 }
 0x4ff   : > { %1709 = vrot.lane.b32.xlu1 %v1696_v30, %s4074_s14 }
 0x500   : > { %1713 = vrot.lane.b32.xlu0 %v1698_v51, %s4074_s14 }
 0x503   : > { %1707 = vrot.lane.b32.xlu1 %v1695_v6, %s4074_s14 }
 0x504   : > { %1673 = vrot.lane.b32.xlu0 %v1657_v11, %s4075_s15 }
 0x507   : > { %1717 = vrot.lane.b32.xlu1 %v1700_v46, %s4074_s14 }
 0x508   : > { %1747 = vrot.lane.b32.xlu0 %v4875_v62, %s4076_s16  ;;  %v1778_v62 = vsel %vm6010_vm0, %v4951_v2, 0 }
 0x50b   : > { %1745 = vrot.lane.b32.xlu1 %v4858_v34, %s4076_s16  ;;  %v1777_v34 = vsel %vm6009_vm9, %v4881_v9, 0  ;;  %vm6014_vm9 = vcmask 908288  }
 0x50c   : > { %1715 = vrot.lane.b32.xlu0 %v1699_v48, %s4074_s14  ;;  %vm6015_vm0 = vmmov %vm6014_vm9 }
 0x50f   : > { %1743 = vrot.lane.b32.xlu1 %v4870_v43, %s4076_s16  ;;  %v1899_v43 = vld [vmem:[%s5896_s6] sm:$0xff] }
 0x510   : > { %1751 = vrot.lane.b32.xlu0 %v4881_v9, %s4076_s16 }
 0x513   : > { %1753 = vrot.lane.b32.xlu1 %v4951_v2, %s4076_s16 }
 0x514   : > { %1749 = vrot.lane.b32.xlu0 %v4899_v25, %s4076_s16  ;;  %v1901_v25 = vld [vmem:[%s5896_s6 + $0x10] sm:$0xff] }
 0x517   : > { %1787 = vrot.lane.b32.xlu1 %v1774_v49, %s4077_s20 }
 0x518   : > { %1789 = vrot.lane.b32.xlu0 %v1775_v7, %s4077_s20 }
 0x51b   : > { %1785 = vrot.lane.b32.xlu1 %v1773_v0, %s4077_s20 }
 0x51c   : > { %1793 = vrot.lane.b32.xlu0 %v1777_v34, %s4077_s20 }
 0x51f   : > { %1795 = vrot.lane.b32.xlu1 %v1778_v62, %s4077_s20 }
 0x520   : > { %1791 = vrot.lane.b32.xlu0 %v1776_v24, %s4077_s20 }
 0x523   : > { %1905 = vperm.xlu1 %4011, %v1899_v43  }
 0x524   : > { %1910 = vperm.xlu0 %4010, %v1900_v31  }
 0x527   : > { %1915 = vperm.xlu1 %4011, %v1901_v25  }
 0x528   : > { %1920 = vperm.xlu0 %4010, %v1902_v50  }
 0x535   : > { %v1504_v61 = vpop.permute.xlu1 %1503 }
 0x536   : > { %v1508_v2 = vpop.permute.xlu0 %1507 }
 0x539   : > { %v1624_v26 = vpop.permute.xlu1 %1623 }
 0x53a   : > { %v1628_v5 = vpop.permute.xlu0 %1627 }
 0x53d   : > { %v1546_v10 = vpop.permute.xlu1 %1545 }
 0x53e   : > { %v1550_v12 = vpop.permute.xlu0 %1549 }
 0x541   : > { %v1588_v16 = vpop.permute.xlu1 %1587 }
 0x542   : > { %v1592_v21 = vpop.permute.xlu0 %1591 }
 0x545   : > { %v1506_v27 = vpop.permute.xlu1 %1505 }
 0x546   : > { %v5107_v41 = vsel %vm6012_vm12, %v1504_v61, %v1506_v27  ;;  %v5110_v53 = vsel %vm6013_vm7, %v1506_v27, %v1508_v2  ;;  %v1510_v60 = vpop.permute.xlu0 %1509  ;;  %vm6017_vm12 = vmmov %vm6016_vm4  ;;  %vm6018_vm7 = vcmask 916480  }
 0x547   : > { %2047 = vmatprep.subr.bf16.mxu0 %v5110_v53  ;;  %2829 = vmatprep.subr.bf16.mxu1 %v5110_v53  ;;  %vm6019_vm13 = vmmov %vm6018_vm7 }
 0x548   : > { %2048 = vmatpush1.bf16.msra.mxu0 %v5107_v41  ;;  %2830 = vmatpush1.bf16.msra.mxu1 %v5107_v41 }
 0x549   : > { %v1626_v58 = vpop.permute.xlu1 %1625 }
 0x54a   : > { %v5117_v14 = vsel %vm6014_vm9, %v1624_v26, %v1626_v58  ;;  %v5120_v22 = vsel %vm6015_vm0, %v1626_v58, %v1628_v5  ;;  %v1630_v30 = vpop.permute.xlu0 %1629  ;;  %vm6020_vm9 = vcmask 1039360  }
 0x54b   : > { %vm6021_vm0 = vmmov %vm6020_vm9 }
 0x54d   : > { %v1548_v51 = vpop.permute.xlu1 %1547 }
 0x54e   : > { %v5123_v6 = vsel %vm6016_vm4, %v1546_v10, %v1548_v51  ;;  %v5126_v11 = vsel %vm6017_vm12, %v1548_v51, %v1550_v12  ;;  %v1552_v40 = vpop.permute.xlu0 %1551  ;;  %vm6022_vm4 = vcmask 908288  }
 0x551   : > { %v1590_v45 = vpop.permute.xlu1 %1589 }
 0x552   : > { %v5129_v46 = vsel %vm6018_vm7, %v1588_v16, %v1590_v45  ;;  %v5132_v48 = vsel %vm6019_vm13, %v1590_v45, %v1592_v21  ;;  %v1594_v49 = vpop.permute.xlu0 %1593  ;;  %vm6023_vm13 = vmmov %vm6022_vm4 }
 0x553   : > { %vm6024_vm7 = vmmov %vm6017_vm12 }
 0x555   : > { %v1668_v7 = vpop.permute.xlu1 %1667 }
 0x556   : > { %v1512_v0 = vpop.permute.xlu0 %1511 }
 0x557   : > { %v5135_v34 = vsel %vm6020_vm9, %v1510_v60, %v1512_v0  ;;  %vm6025_vm9 = vcmask 900096  }
 0x559   : > { %v1514_v62 = vpop.permute.xlu1 %1513 }
 0x55a   : > { %v5138_v24 = vsel %vm6021_vm0, %v1512_v0, %v1514_v62  ;;  %v1632_v43 = vpop.permute.xlu0 %1631  ;;  %vm6026_vm0 = vcmask 916480  }
 0x55b   : > { %v5141_v31 = vsel %vm6022_vm4, %v1630_v30, %v1632_v43  ;;  %2049 = vmatprep.subr.bf16.mxu0 %v5138_v24  ;;  %2831 = vmatprep.subr.bf16.mxu1 %v5138_v24  ;;  %vm6027_vm4 = vmmov %vm6026_vm0 }
 0x55c   : > { %2050 = vmatpush1.bf16.msra.mxu0 %v5135_v34  ;;  %2832 = vmatpush1.bf16.msra.mxu1 %v5135_v34 }
 0x55d   : > { %v1634_v25 = vpop.permute.xlu1 %1633  ;;  %2051 = vmatprep.subr.bf16.mxu0 %v5126_v11  ;;  %2833 = vmatprep.subr.bf16.mxu1 %v5126_v11 }
 0x55e   : > { %v5150_v50 = vsel %vm6023_vm13, %v1632_v43, %v1634_v25  ;;  %v1554_v61 = vpop.permute.xlu0 %1553  ;;  %vm6028_vm13 = vmmov %vm6025_vm9 }
 0x55f   : > { %v5153_v2 = vsel %vm6017_vm12, %v1552_v40, %v1554_v61  ;;  %vm6029_vm12 = vcmask 785408  }
 0x560   : > { %2052 = vmatpush1.bf16.msra.mxu0 %v5123_v6  ;;  %2834 = vmatpush1.bf16.msra.mxu1 %v5123_v6 }
 0x561   : > { %v1556_v26 = vpop.permute.xlu1 %1555 }
 0x562   : > { %v5158_v5 = vsel %vm6024_vm7, %v1554_v61, %v1556_v26  ;;  %v1670_v10 = vpop.permute.xlu0 %1669  ;;  %vm6030_vm7 = vmmov %vm6029_vm12 }
 0x563   : > { %v5161_v12 = vsel %vm6025_vm9, %v1668_v7, %v1670_v10  ;;  %2053 = vmatprep.subr.bf16.mxu0 %v5158_v5  ;;  %2835 = vmatprep.subr.bf16.mxu1 %v5158_v5  ;;  %v4029_v10 = vld [vmem:[%s5895_s5 + $0x8] ss:$20 sps:$4 sm:$0xff]  }
 0x564   : > { %2054 = vmatpush1.bf16.msra.mxu0 %v5153_v2  ;;  %2836 = vmatpush1.bf16.msra.mxu1 %v5153_v2 }
 0x565   : > { %v1598_v16 = vpop.permute.xlu1 %1597  ;;  %2055 = vmatprep.subr.bf16.mxu0 %v5132_v48  ;;  %2837 = vmatprep.subr.bf16.mxu1 %v5132_v48 }
 0x566   : > { %v1596_v21 = vpop.permute.xlu0 %1595 }
 0x567   : > { %v5170_v27 = vsel %vm6026_vm0, %v1594_v49, %v1596_v21  ;;  %v5173_v60 = vsel %vm6027_vm4, %v1596_v21, %v1598_v16  ;;  %vm6031_vm0 = vmmov %vm6025_vm9  ;;  %vm6032_vm4 = vcmask 777216  }
 0x568   : > { %2056 = vmatpush1.bf16.msra.mxu0 %v5129_v46  ;;  %2838 = vmatpush1.bf16.msra.mxu1 %v5129_v46 }
 0x569   : > { %v1666_v58 = vpop.permute.xlu1 %1665  ;;  %2057 = vmatprep.subr.bf16.mxu0 %v5173_v60  ;;  %2839 = vmatprep.subr.bf16.mxu1 %v5173_v60 }
 0x56a   : > { %v5180_v30 = vsel %vm6028_vm13, %v1666_v58, %v1668_v7  ;;  %v1672_v51 = vpop.permute.xlu0 %1671  ;;  %v4032_v58 = vld [vmem:[%s5895_s5 + $0x34] ss:$20 sps:$4 sm:$0xff]   ;;  %vm6033_vm13 = vmmov %vm6030_vm7 }
 0x56c   : > { %2058 = vmatpush1.bf16.msra.mxu0 %v5170_v27  ;;  %2840 = vmatpush1.bf16.msra.mxu1 %v5170_v27 }
 0x56d   : > { %v1676_v40 = vpop.permute.xlu1 %1675  ;;  %2059 = vmatprep.subr.bf16.mxu0 %v5120_v22  ;;  %2841 = vmatprep.subr.bf16.mxu1 %v5120_v22 }
 0x56e   : > { %v1712_v45 = vpop.permute.xlu0 %1711 }
 0x570   : > { %2060 = vmatpush1.bf16.msra.mxu0 %v5117_v14  ;;  %2842 = vmatpush1.bf16.msra.mxu1 %v5117_v14 }
 0x571   : > { %v1710_v49 = vpop.permute.xlu1 %1709  ;;  %2061 = vmatprep.subr.bf16.mxu0 %v5150_v50  ;;  %2843 = vmatprep.subr.bf16.mxu1 %v5150_v50 }
 0x572   : > { %v5191_v7 = vsel %vm6029_vm12, %v1710_v49, %v1712_v45  ;;  %v1714_v0 = vpop.permute.xlu0 %1713  ;;  %vm6034_vm12 = vmmov %vm6030_vm7 }
 0x574   : > { %2062 = vmatpush1.bf16.msra.mxu0 %v5141_v31  ;;  %2844 = vmatpush1.bf16.msra.mxu1 %v5141_v31 }
 0x575   : > { %v1708_v62 = vpop.permute.xlu1 %1707  ;;  %2063 = vmatprep.subr.bf16.mxu0 %v5161_v12  ;;  %2845 = vmatprep.subr.bf16.mxu1 %v5161_v12 }
 0x576   : > { %v5198_v43 = vsel %vm6030_vm7, %v1708_v62, %v1710_v49  ;;  %v1674_v25 = vpop.permute.xlu0 %1673  ;;  %vm6035_vm7 = vmmov %vm6032_vm4 }
 0x577   : > { %v5201_v61 = vsel %vm6025_vm9, %v1672_v51, %v1674_v25  ;;  %v5204_v26 = vsel %vm6031_vm0, %v1674_v25, %v1676_v40  ;;  %vm6036_vm9 = vmmov %vm6032_vm4 }
 0x578   : > { %2064 = vmatpush1.bf16.msra.mxu0 %v5180_v30  ;;  %2846 = vmatpush1.bf16.msra.mxu1 %v5180_v30  ;;  %vm6037_vm0 = vmmov %vm6032_vm4 }
 0x579   : > { %v1718_v16 = vpop.permute.xlu1 %1717  ;;  %2086 = vmatprep.subr.bf16.mxu0 %v5204_v26  ;;  %2868 = vmatprep.subr.bf16.mxu1 %v5204_v26 }
 0x57a   : > { %v1748_v21 = vpop.permute.xlu0 %1747 }
 0x57b   : > { %2066 = vmatmul.mubr.bf16.vlgmr.msra.gmra.mrb[0].mxu0 %v4029_v10  ;;  %2848 = vmatmul.mubr.bf16.vlgmr.msra.gmra.mrb[24].mxu1 %v3874_v44 }
 0x57c   : > { %2087 = vmatpush1.bf16.msra.mxu0 %v5201_v61  ;;  %2869 = vmatpush1.bf16.msra.mxu1 %v5201_v61 }
 0x57d   : > { %v1746_v51 = vpop.permute.xlu1 %1745  ;;  %2088 = vmatprep.subr.bf16.mxu0 %v5191_v7  ;;  %2870 = vmatprep.subr.bf16.mxu1 %v5191_v7 }
 0x57e   : > { %v5224_v40 = vsel %vm6032_vm4, %v1746_v51, %v1748_v21  ;;  %v1716_v45 = vpop.permute.xlu0 %1715  ;;  %2075 = vmatprep.mubr.bf16.mxu0 %v4032_v58  ;;  %vm6038_vm4 = vcmask 769024  }
 0x57f   : > { %v5227_v49 = vsel %vm6033_vm13, %v1714_v0, %v1716_v45  ;;  %v5230_v56 = vsel %vm6034_vm12, %v1716_v45, %v1718_v16  ;;  %vm6039_vm13 = vmmov %vm6038_vm4 }
 0x580   : > { %2089 = vmatpush1.bf16.msra.mxu0 %v5198_v43  ;;  %2871 = vmatpush1.bf16.msra.mxu1 %v5198_v43  ;;  %vm6040_vm12 = vmmov %vm6038_vm4 }
 0x581   : > { %v1744_v44 = vpop.permute.xlu1 %1743  ;;  %2090 = vmatprep.subr.bf16.mxu0 %v5230_v56  ;;  %2872 = vmatprep.subr.bf16.mxu1 %v5230_v56 }
 0x582   : > { %v5240_v62 = vsel %vm6035_vm7, %v1744_v44, %v1746_v51  ;;  %v1752_v0 = vpop.permute.xlu0 %1751  ;;  %vm6041_vm7 = vmmov %vm6038_vm4 }
 0x583   : > { %2076 = vmatmul.mubr.bf16.gmra.mrb[4].mxu0 %v4034_v37  ;;  %v4078_v37 = vmov 1983009808  }
 0x584   : > { %2091 = vmatpush1.bf16.msra.mxu0 %v5227_v49  ;;  %2873 = vmatpush1.bf16.msra.mxu1 %v5227_v49  ;;  %v3522_v44 = vunpack.c.l.s4 %v4078_v37 }
 0x585   : > { %v1754_v25 = vpop.permute.xlu1 %1753  ;;  %2092 = vmatprep.subr.bf16.mxu0 %v5224_v40  ;;  %2874 = vmatprep.subr.bf16.mxu1 %v5224_v40 }
 0x586   : > { %v5247_v10 = vsel %vm6036_vm9, %v1752_v0, %v1754_v25  ;;  %v1750_v16 = vpop.permute.xlu0 %1749  ;;  %2118 = vmatprep.mubr.bf16.mxu0 %v5925_v1  ;;  %vm6043_vm9 = vcmask 916480  }
 0x587   : > { %v5251_v21 = vsel %vm6037_vm0, %v1750_v16, %v1752_v0  ;;  %vm6045_vm0 = vmmov %vm6043_vm9 }
 0x588   : > { %2093 = vmatpush1.bf16.msra.mxu0 %v5240_v62  ;;  %2875 = vmatpush1.bf16.msra.mxu1 %v5240_v62 }
 0x589   : > { %v1788_v58 = vpop.permute.xlu1 %1787  ;;  %2094 = vmatprep.subr.bf16.mxu0 %v5247_v10  ;;  %2876 = vmatprep.subr.bf16.mxu1 %v5247_v10 }
 0x58a   : > { %v1790_v51 = vpop.permute.xlu0 %1789 }
 0x58b   : > { %v5258_v45 = vsel %vm6038_vm4, %v1788_v58, %v1790_v51  ;;  %v3523_v51 = vunpack.c.0.s8 %v3522_v44  ;;  %v3362_v44 = vld [vmem:[#allocation3 + $0x8] sm:$0xff] }
 0x58c   : > { %2095 = vmatpush1.bf16.msra.mxu0 %v5251_v21  ;;  %2877 = vmatpush1.bf16.msra.mxu1 %v5251_v21 }
 0x58d   : > { %v1786_v0 = vpop.permute.xlu1 %1785  ;;  %2096 = vmatprep.subr.bf16.mxu0 %v5258_v45  ;;  %2878 = vmatprep.subr.bf16.mxu1 %v5258_v45 }
 0x58e   : > { %v5265_v25 = vsel %vm6039_vm13, %v1786_v0, %v1788_v58  ;;  %v1794_v16 = vpop.permute.xlu0 %1793  ;;  %v4035_v58 = vld [vmem:[%s5895_s5 + $0x10] ss:$20 sps:$4 sm:$0xff]  }
 0x58f   : > { %v6042_v0 = vld [vmem:[#allocation4_spill] sm:$0xff] }
 0x590   : > { %2097 = vmatpush1.bf16.msra.mxu0 %v5265_v25  ;;  %2879 = vmatpush1.bf16.msra.mxu1 %v5265_v25 }
 0x591   : > { %v1796_v1 = vpop.permute.xlu1 %1795 }
 0x592   : > { %v5270_v55 = vsel %vm6040_vm12, %v1794_v16, %v1796_v1  ;;  %v1792_v19 = vpop.permute.xlu0 %1791  ;;  %v5283_v1 = vsub.s32 %v3523_v51, %v6042_v0  ;;  %v3363_v51 = vld [vmem:[#allocation3 + $0x10] sm:$0xff]  ;;  %v3366_v0 = vld [vmem:[#allocation3 + $0x28] sm:$0xff] }
 0x593   : > { %v5273_v37 = vsel %vm6041_vm7, %v1792_v19, %v1794_v16  ;;  %2098 = vmatprep.subr.bf16.mxu0 %v5270_v55  ;;  %2880 = vmatprep.subr.bf16.mxu1 %v5270_v55  ;;  %v5288_v19 = vld [vmem:[%s5899_s9] sm:$0xff]  ;;  %v3361_v16 = vld [vmem:[#allocation3] sm:$0xff] }
 0x594   : > { %2099 = vmatpush1.bf16.msra.mxu0 %v5273_v37  ;;  %2881 = vmatpush1.bf16.msra.mxu1 %v5273_v37  ;;  %v5294_v8 = vrot.slane %v5288_v19, %v5283_v1 }
 0x595   : > { %3574 = vmatprep.subr.bf16.mxu0 %v3362_v44  ;;  %v4036_v44 = vld [vmem:[%s5895_s5 + $0x38] ss:$20 sps:$4 sm:$0xff]  }
 0x597   : > { %3870 = vmatmul.mubr.msk.bf16.vlgmr.msra.gmra.mrb[0].mxu0 %vm6043_vm9, %v4035_v58  ;;  %v3535_v58 = vcombine.high %v5294_v8, %v5294_v8 }
 0x598   : > { %3575 = vmatpush1.bf16.msra.mxu0 %v3361_v16  ;;  %2128 = vmatprep.mubr.bf16.mxu0 %v6044_v36  ;;  %v3365_v16 = vld [vmem:[#allocation3 + $0x20] sm:$0xff]  ;;  %v3368_v36 = vld [vmem:[#allocation3 + $0x38] sm:$0xff] }
 0x599   : > { %3576 = vmatprep.subr.bf16.mxu0 %v3364_v29  ;;  %v3370_v29 = vld [vmem:[#allocation3 + $0x48] sm:$0xff] }
 0x59c   : > { %3577 = vmatpush1.bf16.msra.mxu0 %v3363_v51  ;;  %v3371_v51 = vld [vmem:[#allocation3 + $0x50] sm:$0xff] }
 0x59d   : > { %3578 = vmatprep.subr.bf16.mxu0 %v3366_v0  ;;  %v3373_v0 = vld [vmem:[#allocation3 + $0x60] sm:$0xff] }
 0x59f   : > { %3871 = vmatmul.mubr.msk.bf16.gmra.mrb[4].mxu0 %vm6045_vm0, %v4036_v44  ;;  %v3376_v44 = vld [vmem:[#allocation3 + $0x78] sm:$0xff] }
 0x5a0   : > { %3579 = vmatpush1.bf16.msra.mxu0 %v3365_v16  ;;  %3606 = vmatprep.mubr.bf16.mxu0 %v3535_v58  ;;  %v3375_v16 = vld [vmem:[#allocation3 + $0x70] sm:$0xff]  ;;  %v3378_v58 = vld [vmem:[#allocation3 + $0x88] sm:$0xff] }
 0x5a1   : > { %3580 = vmatprep.subr.bf16.mxu0 %v3368_v36  ;;  %v3377_v36 = vld [vmem:[#allocation3 + $0x80] sm:$0xff] }
 0x5a4   : > { %3581 = vmatpush1.bf16.msra.mxu0 %v3367_v59  ;;  %v3380_v59 = vld [vmem:[#allocation3 + $0x98] sm:$0xff] }
 0x5a5   : > { %3582 = vmatprep.subr.bf16.mxu0 %v3370_v29  ;;  %v3379_v29 = vld [vmem:[#allocation3 + $0x90] sm:$0xff] }
 0x5a8   : > { %3583 = vmatpush1.bf16.msra.mxu0 %v3369_v32  ;;  %v3382_v32 = vld [vmem:[#allocation3 + $0xa8] sm:$0xff] }
 0x5a9   : > { %3584 = vmatprep.subr.bf16.mxu0 %v3372_v47  ;;  %v3381_v47 = vld [vmem:[#allocation3 + $0xa0] sm:$0xff] }
 0x5ac   : > { %3585 = vmatpush1.bf16.msra.mxu0 %v3371_v51  ;;  %v3384_v51 = vld [vmem:[#allocation3 + $0xb8] sm:$0xff] }
 0x5ad   : > { %3586 = vmatprep.subr.bf16.mxu0 %v3374_v63  ;;  %v3383_v63 = vld [vmem:[#allocation3 + $0xb0] sm:$0xff] }
 0x5b0   : > { %3587 = vmatpush1.bf16.msra.mxu0 %v3373_v0  ;;  %v3386_v0 = vld [vmem:[#allocation3 + $0xc8] sm:$0xff] }
 0x5b1   : > { %3588 = vmatprep.subr.bf16.mxu0 %v3376_v44  ;;  %v3385_v44 = vld [vmem:[#allocation3 + $0xc0] sm:$0xff] }
 0x5b4   : > { %3589 = vmatpush1.bf16.msra.mxu0 %v3375_v16  ;;  %v3388_v16 = vld [vmem:[#allocation3 + $0xd8] sm:$0xff] }
 0x5b5   : > { %3590 = vmatprep.subr.bf16.mxu0 %v3378_v58  ;;  %v3387_v58 = vld [vmem:[#allocation3 + $0xd0] sm:$0xff] }
 0x5b8   : > { %3591 = vmatpush1.bf16.msra.mxu0 %v3377_v36  ;;  %v3390_v36 = vld [vmem:[#allocation3 + $0xe8] sm:$0xff] }
 0x5b9   : > { %3592 = vmatprep.subr.bf16.mxu0 %v3380_v59  ;;  %v3520_v59 = vcombine.high %v5288_v19, %v5288_v19  ;;  %v3395_v19 = vld [vmem:[#allocation3 + $0x110] sm:$0xff] }
 0x5bc   : > { %3593 = vmatpush1.bf16.msra.mxu0 %v3379_v29  ;;  %v3389_v29 = vld [vmem:[#allocation3 + $0xe0] sm:$0xff] }
 0x5bd   : > { %3594 = vmatprep.subr.bf16.mxu0 %v3382_v32  ;;  %v3392_v32 = vld [vmem:[#allocation3 + $0xf8] sm:$0xff] }
 0x5c0   : > { %3595 = vmatpush1.bf16.msra.mxu0 %v3381_v47  ;;  %v3534_v47 = vrot.slane %v3520_v59, %v5283_v1  ;;  %v3400_v59 = vld [vmem:[#allocation3 + $0x138] sm:$0xff] }
 0x5c1   : > { %3596 = vmatprep.subr.bf16.mxu0 %v3384_v51  ;;  %v3391_v51 = vld [vmem:[#allocation3 + $0xf0] sm:$0xff] }
 0x5c4   : > { %3597 = vmatpush1.bf16.msra.mxu0 %v3383_v63  ;;  %v3394_v63 = vld [vmem:[#allocation3 + $0x108] sm:$0xff] }
 0x5c5   : > { %3598 = vmatprep.subr.bf16.mxu0 %v3386_v0  ;;  %v3536_v0 = vcombine.high %v3534_v47, %v3534_v47 }
 0x5c8   : > { %3599 = vmatpush1.bf16.msra.mxu0 %v3385_v44  ;;  %v3393_v44 = vld [vmem:[#allocation3 + $0x100] sm:$0xff] }
 0x5c9   : > { %3600 = vmatprep.subr.bf16.mxu0 %v3388_v16  ;;  %v3396_v16 = vld [vmem:[#allocation3 + $0x118] sm:$0xff] }
 0x5cc   : > { %3601 = vmatpush1.bf16.msra.mxu0 %v3387_v58  ;;  %v3398_v58 = vld [vmem:[#allocation3 + $0x128] sm:$0xff] }
 0x5cd   : > { %3602 = vmatprep.subr.bf16.mxu0 %v3390_v36  ;;  %v3397_v36 = vld [vmem:[#allocation3 + $0x120] sm:$0xff] }
 0x5d0   : > { %3603 = vmatpush1.bf16.msra.mxu0 %v3389_v29  ;;  %v3399_v29 = vld [vmem:[#allocation3 + $0x130] sm:$0xff] }
 0x5d1   : > { %3604 = vmatprep.subr.bf16.mxu0 %v3392_v32  ;;  %v3402_v32 = vld [vmem:[#allocation3 + $0x148] sm:$0xff] }
 0x5d4   : > { %3605 = vmatpush1.bf16.msra.mxu0 %v3391_v51  ;;  %v3401_v51 = vld [vmem:[#allocation3 + $0x140] sm:$0xff] }
 0x5d5   : > { %3615 = vmatprep.subr.bf16.mxu0 %v3394_v63  ;;  %v3403_v63 = vld [vmem:[#allocation3 + $0x150] sm:$0xff] }
 0x5d7   : > { %3607 = vmatmul.mubr.bf16.vlgmr.msra.gmra.mrb[8].mxu0 %v5294_v8  ;;  %v3404_v8 = vld [vmem:[#allocation3 + $0x158] sm:$0xff] }
 0x5d8   : > { %3616 = vmatpush1.bf16.msra.mxu0 %v3393_v44  ;;  %3647 = vmatprep.mubr.bf16.mxu0 %v3536_v0 }
 0x5d9   : > { %3617 = vmatprep.subr.bf16.mxu0 %v3396_v16 }
 0x5dc   : > { %3618 = vmatpush1.bf16.msra.mxu0 %v3395_v19 }
 0x5dd   : > { %3619 = vmatprep.subr.bf16.mxu0 %v3398_v58 }
 0x5e0   : > { %3620 = vmatpush1.bf16.msra.mxu0 %v3397_v36 }
 0x5e1   : > { %3621 = vmatprep.subr.bf16.mxu0 %v3400_v59 }
 0x5e4   : > { %3622 = vmatpush1.bf16.msra.mxu0 %v3399_v29 }
 0x5e5   : > { %3623 = vmatprep.subr.bf16.mxu0 %v3402_v32 }
 0x5e8   : > { %3624 = vmatpush1.bf16.msra.mxu0 %v3401_v51 }
 0x5e9   : > { %3625 = vmatprep.subr.bf16.mxu0 %v3404_v8 }
 0x5ec   : > { %3626 = vmatpush1.bf16.msra.mxu0 %v3403_v63 }
 0x5ed   : > { %4048 = vmatprep.subr.msk.bf16.mxu0 %vm469_vm15, %v4881_v9  ;;  %v1906_v9 = vpop.permute.xlu1 %1905 }
 0x5f0   : > { %3628 = vmatpush1.bf16.msra.mxu0 %v4908_v33  ;;  %v1911_v33 = vpop.permute.xlu0 %1910 }
 0x5f1   : > { %3629 = vmatprep.subr.bf16.mxu0 %v5110_v53 }
 0x5f4   : > { %3630 = vmatpush1.bf16.msra.mxu0 %v5107_v41  ;;  %v2015_v41 = vadd.f32 %v5061_v15, %v1906_v9 }
 0x5f5   : > { %3631 = vmatprep.subr.bf16.mxu0 %v5138_v24 }
 0x5f8   : > { %3632 = vmatpush1.bf16.msra.mxu0 %v5135_v34  ;;  %v2021_v34 = vadd.f32 %v5090_v38, %v1911_v33 }
 0x5f9   : > { %3633 = vmatprep.subr.bf16.mxu0 %v5126_v11  ;;  %v2019_v11 = vadd.f32 %v5066_v52, %v1911_v33 }
 0x5fc   : > { %3634 = vmatpush1.bf16.msra.mxu0 %v5123_v6 }
 0x5fd   : > { %3635 = vmatprep.subr.bf16.mxu0 %v5158_v5 }
 0x600   : > { %3636 = vmatpush1.bf16.msra.mxu0 %v5153_v2 }
 0x601   : > { %3637 = vmatprep.subr.bf16.mxu0 %v5132_v48 }
 0x604   : > { %3638 = vmatpush1.bf16.msra.mxu0 %v5129_v46 }
 0x605   : > { %3639 = vmatprep.subr.bf16.mxu0 %v5173_v60 }
 0x608   : > { %3640 = vmatpush1.bf16.msra.mxu0 %v5170_v27 }
 0x609   : > { %3641 = vmatprep.subr.bf16.mxu0 %v5120_v22 }
 0x60c   : > { %3642 = vmatpush1.bf16.msra.mxu0 %v5117_v14  ;;  %v2017_v14 = vadd.f32 %v5064_v3, %v1906_v9 }
 0x60d   : > { %3643 = vmatprep.subr.bf16.mxu0 %v5150_v50  ;;  %v1916_v50 = vpop.permute.xlu1 %1915 }
 0x60e   : > { %v2025_v52 = vadd.f32 %v5092_v39, %v1916_v50 }
 0x610   : > { %3644 = vmatpush1.bf16.msra.mxu0 %v5141_v31 }
 0x611   : > { %3645 = vmatprep.subr.bf16.mxu0 %v5161_v12  ;;  %v1921_v12 = vpop.permute.xlu0 %1920 }
 0x614   : > { %3646 = vmatpush1.bf16.msra.mxu0 %v5180_v30 }
 0x615   : > { %3656 = vmatprep.subr.bf16.mxu0 %v5204_v26 }
 0x617   : > { %3648 = vmatmul.mubr.bf16.vlgmr.msra.gmra.mrb[8].mxu0 %v3534_v47 }
 0x618   : > { %3657 = vmatpush1.bf16.msra.mxu0 %v5201_v61  ;;  %v2027_v61 = vadd.f32 %v5097_v42, %v1916_v50 }
 0x619   : > { %3658 = vmatprep.subr.bf16.mxu0 %v5191_v7 }
 0x61c   : > { %3659 = vmatpush1.bf16.msra.mxu0 %v5198_v43 }
 0x61d   : > { %3660 = vmatprep.subr.bf16.mxu0 %v5230_v56  ;;  %v2029_v56 = vadd.f32 %v5102_v54, %v1921_v12 }
 0x620   : > { %3661 = vmatpush1.bf16.msra.mxu0 %v5227_v49 }
 0x621   : > { %3662 = vmatprep.subr.bf16.mxu0 %v5224_v40 }
 0x624   : > { %3663 = vmatpush1.bf16.msra.mxu0 %v5240_v62 }
 0x625   : > { %3664 = vmatprep.subr.bf16.mxu0 %v5247_v10 }
 0x628   : > { %3665 = vmatpush1.bf16.msra.mxu0 %v5251_v21  ;;  %v2031_v21 = vadd.f32 %v5104_v57, %v1921_v12 }
 0x629   : > { %3666 = vmatprep.subr.bf16.mxu0 %v5258_v45 }
 0x62c   : > { %3667 = vmatpush1.bf16.msra.mxu0 %v5265_v25 }
 0x62d   : > { %3668 = vmatprep.subr.bf16.mxu0 %v5270_v55 }
 0x630   : > { %3669 = vmatpush1.bf16.msra.mxu0 %v5273_v37 }
 0x66a   : > { %v2120_v53 = vpop.f32.mrb[0].mxu0 }
 0x66b   : > { %v3905_v22 = vadd.f32 %v2120_v53, %v2015_v41  ;;  %v2122_v6 = vpop.f32.mrb[1].mxu0 }
 0x66c   : > { %v3907_v46 = vadd.f32 %v2122_v6, %v2017_v14  ;;  %v2124_v48 = vpop.f32.mrb[2].mxu0 }
 0x66d   : > { %v2147_v24 = vmul.f32 0.01, %v3905_v22  ;;  %v3909_v31 = vadd.f32 %v2124_v48, %v2019_v11  ;;  %v2126_v55 = vpop.f32.mrb[3].mxu0  ;;  %vm2139_vm4 = vcmp.ge.f32.partialorder %v3905_v22, 0.0 }
 0x66e   : > { %v2148_v2 = vmul.f32 0.01, %v3907_v46  ;;  %v3911_v5 = vadd.f32 %v2126_v55, %v2021_v34  ;;  %vm2140_vm13 = vcmp.ge.f32.partialorder %v3907_v46, 0.0 }
 0x66f   : > { %vm2141_vm12 = vcmp.ge.f32.partialorder %v3909_v31, 0.0  ;;  %v2149_v15 = vmul.f32 0.01, %v3909_v31  ;;  %v2155_v27 = vsel %vm2139_vm4, %v3905_v22, %v2147_v24 }
 0x670   : > { %vm2142_vm7 = vcmp.ge.f32.partialorder %v3911_v5, 0.0  ;;  %v2150_v3 = vmul.f32 0.01, %v3911_v5  ;;  %v2156_v30 = vsel %vm2140_vm13, %v3907_v46, %v2148_v2 }
 0x671   : > { %v2157_v60 = vsel %vm2141_vm12, %v3909_v31, %v2149_v15  ;;  %v6046_v31 = vld [vmem:[#allocation9_spill] sm:$0xff]  ;;  %v6048_v15 = vld [vmem:[#allocation7_spill] sm:$0xff] }
 0x672   : > { %v2163_v7 = vpack.c.bf16 %v2157_v60, %v2155_v27  ;;  %v2158_v38 = vsel %vm2142_vm7, %v3911_v5, %v2150_v3  ;;  %v2130_v43 = vpop.f32.mrb[4].mxu0  ;;  %vm6047_vm12 = vcmp.ne.s16.totalorder %v6046_v31, 0  ;;  %vm6049_vm7 = vcmp.ne.s16.totalorder %v6048_v15, 0  ;;  %v2532_v60 = vld [vmem:[%s5897_s7 + $0x48] sm:$0xff] }
 0x673   : > { %v2164_v26 = vpack.c.bf16 %v2158_v38, %v2156_v30  ;;  %v3913_v40 = vadd.f32 %v2130_v43, %v2025_v52  ;;  %v2132_v49 = vpop.f32.mrb[5].mxu0  ;;  %v2536_v52 = vld [vmem:[%s5897_s7 + $0x68] sm:$0xff] }
 0x674   : > { %v3915_v62 = vadd.f32 %v2132_v49, %v2027_v61  ;;  %v2134_v10 = vpop.f32.mrb[6].mxu0  ;;  %2171 = vrot.lane.b32.xlu1 %v2163_v7, %s4064_s23  ;;  %v3883_v30 = vcombine.high %v2532_v60, %v2536_v52  ;;  %v3882_v7 = vcombine.low %v2532_v60, %v2536_v52  ;;  %v6050_v38 = vld [vmem:[#allocation5_spill] sm:$0xff]  ;;  %v5495_v49 = vld [vmem:[%s5897_s7 + $0x30] sm:$0xff] }
 0x675   : > { %v2151_v45 = vmul.f32 0.01, %v3913_v40  ;;  %v3917_v25 = vadd.f32 %v2134_v10, %v2029_v56  ;;  %v2136_v39 = vpop.f32.mrb[7].mxu0  ;;  %2173 = vrot.lane.b32.xlu0 %v2164_v26, %s4064_s23  ;;  %vm2143_vm9 = vcmp.ge.f32.partialorder %v3913_v40, 0.0  ;;  %v5500_v56 = vld [vmem:[%s5899_s9 + $0x8] sm:$0xff] }
 0x676   : > { %v2152_v37 = vmul.f32 0.01, %v3915_v62  ;;  %v3919_v47 = vadd.f32 %v2136_v39, %v2031_v21  ;;  %vm2144_vm0 = vcmp.ge.f32.partialorder %v3915_v62, 0.0  ;;  %2857 = vmatprep.mubr.bf16.mxu1 %v3883_v30  ;;  %v3537_v28 = vcombine.high %v5500_v56, %v5500_v56 }
 0x677   : > { %vm2145_vm4 = vcmp.ge.f32.partialorder %v3917_v25, 0.0  ;;  %v2153_v42 = vmul.f32 0.01, %v3917_v25  ;;  %v2159_v54 = vsel %vm2143_vm9, %v3913_v40, %v2151_v45  ;;  %vm6051_vm9 = vcmp.ne.s16.totalorder %v6050_v38, 0  ;;  %2858 = vmatmul.mubr.bf16.gmra.mrb[28].mxu1 %v3882_v7  ;;  %v5490_v40 = vld [vmem:[%s5897_s7 + $0x10] sm:$0xff] }
 0x678   : > { %vm2146_vm13 = vcmp.ge.f32.partialorder %v3919_v47, 0.0  ;;  %v2154_v0 = vmul.f32 0.01, %v3919_v47  ;;  %v2160_v16 = vsel %vm2144_vm0, %v3915_v62, %v2152_v37  ;;  %vm6052_vm0 = vmmov %vm6051_vm9  ;;  %v6054_v62 = vld [vmem:[#allocation8_spill] sm:$0xff]  ;;  %v3876_v21 = vcombine.low %v5490_v40, %v5495_v49  ;;  %v6056_v37 = vld [vmem:[#allocation10_spill] sm:$0xff] }
 0x679   : > { %v2161_v44 = vsel %vm2145_vm4, %v3917_v25, %v2153_v42  ;;  %vm6053_vm4 = vmmov %vm6049_vm7  ;;  %v3877_v45 = vcombine.high %v5490_v40, %v5495_v49  ;;  %v5512_v25 = vrot.slane %v5500_v56, %v5283_v1  ;;  %v6058_v42 = vld [vmem:[#allocation6_spill] sm:$0xff]  ;;  %v5624_v40 = vld [vmem:[%s5897_s7 + $0x18] sm:$0xff] }
 0x67a   : > { %v2165_v19 = vpack.c.bf16 %v2161_v44, %v2159_v54  ;;  %v2162_v58 = vsel %vm2146_vm13, %v3919_v47, %v2154_v0  ;;  %vm6055_vm13 = vcmp.ne.s16.totalorder %v6054_v62, 0  ;;  %v2530_v49 = vld [vmem:[%s5897_s7 + $0x38] sm:$0xff] }
 0x67b   : > { %v2166_v36 = vpack.c.bf16 %v2162_v58, %v2160_v16  ;;  %2900 = vmatprep.mubr.bf16.mxu1 %v3877_v45  ;;  %v3552_v39 = vcombine.high %v5512_v25, %v5512_v25  ;;  %v6064_v58 = vld [vmem:[#allocation13_spill] sm:$0xff] }
 0x67c   : > { %2175 = vrot.lane.b32.xlu1 %v2165_v19, %s4064_s23 }
 0x67d   : > { %2177 = vrot.lane.b32.xlu0 %v2166_v36, %s4064_s23  ;;  %3688 = vmatprep.mubr.bf16.mxu0 %v3552_v39 }
 0x6e6   : > { %v2172_v57 = vpop.permute.xlu1 %2171 }
 0x6e7   : > { %2187 = vst.msk [vmem:[#allocation2] sm:$0xff] %vm870_vm5, %v2172_v57  ;;  %v2174_v59 = vpop.permute.xlu0 %2173 }
 0x6e8   : > { %v5356_v29 = vsel %vm442_vm8, %v2172_v57, %v2174_v59  ;;  %2189 = vst.msk [vmem:[#allocation2 + $0x10] sm:$0xff] %vm442_vm8, %v2174_v59  ;;  %v6066_v57 = vld [vmem:[#allocation11_spill] sm:$0xff] }
 0x6e9   : > { %4049 = vmatprep.subr.msk.bf16.mxu1 %vm469_vm15, %v5356_v29  ;;  %4050 = vmatprep.subr.msk.bf16.mxu0 %vm469_vm15, %v5356_v29  ;;  %v2248_v46 = vsel %vm520_vm3, %v5356_v29, 0  ;;  %v2290_v34 = vsel %vm5943_vm6, %v5356_v29, 0  ;;  %v2368_v55 = vsel %vm6047_vm12, %v5356_v29, 0  ;;  %vm6057_vm12 = vcmp.ne.s16.totalorder %v6056_v37, 0 }
 0x6ea   : > { %v2410_v47 = vsel %vm6057_vm12, %v5356_v29, 0 }
 0x6ee   : > { %v2176_v32 = vpop.permute.xlu1 %2175  ;;  %v5365_v51 = vld [vmem:[#allocation2] sm:$0xff] }
 0x6ef   : > { %2190 = vst.msk [vmem:[#allocation2 + $0x18] sm:$0xff] %vm870_vm5, %v2176_v32  ;;  %2217 = vrot.lane.b32.xlu1 %v5365_v51, %s4071_s30  ;;  %v2178_v8 = vpop.permute.xlu0 %2177  ;;  %v5370_v63 = vld [vmem:[#allocation2 + $0x10] sm:$0xff]  ;;  %v2197_v9 = vsel %vm468_vm1, %v5365_v51, 0  ;;  %v2247_v41 = vsel %vm519_vm10, %v5365_v51, 0  ;;  %v2289_v6 = vsel %vm553_vm11, %v5365_v51, 0  ;;  %v2367_v43 = vsel %vm6051_vm9, %v5365_v51, 0 }
 0x6f0   : > { %v5376_v33 = vsel %vm442_vm8, %v2176_v32, %v2178_v8  ;;  %2192 = vst.msk [vmem:[#allocation2 + $0x28] sm:$0xff] %vm442_vm8, %v2178_v8  ;;  %2221 = vrot.lane.b32.xlu0 %v5370_v63, %s4071_s30  ;;  %2883 = vmatpush1.bf16.msra.mxu1 %v2197_v9  ;;  %v2249_v14 = vsel %vm521_vm14, %v5370_v63, 0  ;;  %v2291_v11 = vsel %vm555_vm2, %v5370_v63, 0  ;;  %v2369_v12 = vsel %vm6049_vm7, %v5370_v63, 0  ;;  %v6068_v32 = vld [vmem:[#allocation12_spill] sm:$0xff] }
 0x6f1   : > { %3671 = vmatpush1.bf16.msra.mxu0 %v2197_v9  ;;  %4051 = vmatprep.subr.msk.bf16.mxu1 %vm469_vm15, %v5376_v33  ;;  %v2251_v2 = vsel %vm520_vm3, %v5376_v33, 0  ;;  %v2293_v27 = vsel %vm5943_vm6, %v5376_v33, 0  ;;  %v2411_v10 = vsel %vm6055_vm13, %v5370_v63, 0  ;;  %vm6059_vm7 = vcmp.ne.s16.totalorder %v6058_v42, 0 }
 0x6f2   : > { %4052 = vmatprep.subr.msk.bf16.mxu0 %vm469_vm15, %v5376_v33  ;;  %vm6060_vm9 = vmmov %vm6059_vm7  ;;  %vm6081_vm6 = vcmask 1039360  }
 0x6f3   : > { %2337 = vrot.lane.b32.xlu1 %v5365_v51, %s4070_s29  ;;  %v2409_v54 = vsel %vm6060_vm9, %v5365_v51, 0  ;;  %vm6069_vm9 = vcmp.ne.s16.totalorder %v6068_v32, 0 }
 0x6f4   : > { %2341 = vrot.lane.b32.xlu0 %v5370_v63, %s4070_s29  ;;  %v2487_v8 = vsel %vm6069_vm9, %v5365_v51, 0 }
 0x6f6   : > { %v5394_v53 = vld [vmem:[#allocation2 + $0x18] sm:$0xff] }
 0x6f7   : > { %2259 = vrot.lane.b32.xlu1 %v2247_v41, %s4072_s12  ;;  %v2199_v22 = vsel %vm468_vm1, %v5394_v53, 0  ;;  %v2250_v48 = vsel %vm519_vm10, %v5394_v53, 0  ;;  %v2292_v24 = vsel %vm553_vm11, %v5394_v53, 0  ;;  %v5442_v50 = vld [vmem:[#allocation2 + $0x28] sm:$0xff]  ;;  %v2370_v61 = vsel %vm6052_vm0, %v5394_v53, 0  ;;  %v2655_v41 = vld [vmem:[%s5898_s8 + $0x10] sm:$0xff] }
 0x6f8   : > { %2263 = vrot.lane.b32.xlu0 %v2249_v14, %s4072_s12  ;;  %2885 = vmatpush1.bf16.msra.mxu1 %v2199_v22  ;;  %v2252_v5 = vsel %vm521_vm14, %v5442_v50, 0  ;;  %v2294_v3 = vsel %vm555_vm2, %v5442_v50, 0  ;;  %v2372_v26 = vsel %vm6053_vm4, %v5442_v50, 0  ;;  %v2412_v0 = vsel %vm6059_vm7, %v5394_v53, 0  ;;  %vm6062_vm4 = vmmov %vm6055_vm13 }
 0x6f9   : > { %3673 = vmatpush1.bf16.msra.mxu0 %v2199_v22  ;;  %vm6061_vm0 = vcmp.ne.s16.totalorder %v6046_v31, 0  ;;  %v2414_v16 = vsel %vm6062_vm4, %v5442_v50, 0  ;;  %vm6063_vm13 = vmmov %vm6057_vm12  ;;  %vm6065_vm12 = vcmp.ne.s16.totalorder %v6064_v58, 0  ;;  %vm6067_vm7 = vcmp.ne.s16.totalorder %v6066_v57, 0 }
 0x6fa   : > { %v2371_v44 = vsel %vm6061_vm0, %v5376_v33, 0  ;;  %v2413_v19 = vsel %vm6063_vm13, %v5376_v33, 0  ;;  %v2488_v36 = vsel %vm6065_vm12, %v5356_v29, 0  ;;  %v2489_v59 = vsel %vm6067_vm7, %v5370_v63, 0  ;;  %vm6070_vm0 = vmmov %vm6065_vm12 }
 0x6fb   : > { %2301 = vrot.lane.b32.xlu1 %v2289_v6, %s4073_s13  ;;  %v2491_v9 = vsel %vm6070_vm0, %v5376_v33, 0  ;;  %vm6071_vm4 = vmmov %vm6067_vm7  ;;  %vm6073_vm12 = vcmask 1039360  }
 0x6fc   : > { %2305 = vrot.lane.b32.xlu0 %v2291_v11, %s4073_s13  ;;  %vm6072_vm13 = vmmov %vm6069_vm9  ;;  %vm6075_vm9 = vcmask 908288  }
 0x6fd   : > { %vm6074_vm7 = vmmov %vm6073_vm12 }
 0x6fe   : > { %vm6076_vm0 = vmmov %vm6075_vm9 }
 0x6ff   : > { %2219 = vrot.lane.b32.xlu1 %v5356_v29, %s4071_s30 }
 0x700   : > { %2223 = vrot.lane.b32.xlu0 %v5394_v53, %s4071_s30 }
 0x703   : > { %2339 = vrot.lane.b32.xlu1 %v5356_v29, %s4070_s29 }
 0x704   : > { %2343 = vrot.lane.b32.xlu0 %v5394_v53, %s4070_s29 }
 0x707   : > { %2261 = vrot.lane.b32.xlu1 %v2248_v46, %s4072_s12 }
 0x708   : > { %2265 = vrot.lane.b32.xlu0 %v2250_v48, %s4072_s12 }
 0x70b   : > { %2303 = vrot.lane.b32.xlu1 %v2290_v34, %s4073_s13 }
 0x70c   : > { %2307 = vrot.lane.b32.xlu0 %v2292_v24, %s4073_s13 }
 0x70f   : > { %2381 = vrot.lane.b32.xlu1 %v2368_v55, %s4075_s15 }
 0x710   : > { %2225 = vrot.lane.b32.xlu0 %v5376_v33, %s4071_s30 }
 0x713   : > { %2227 = vrot.lane.b32.xlu1 %v5442_v50, %s4071_s30 }
 0x714   : > { %2345 = vrot.lane.b32.xlu0 %v5376_v33, %s4070_s29 }
 0x717   : > { %2347 = vrot.lane.b32.xlu1 %v5442_v50, %s4070_s29 }
 0x718   : > { %2267 = vrot.lane.b32.xlu0 %v2251_v2, %s4072_s12 }
 0x71b   : > { %2269 = vrot.lane.b32.xlu1 %v2252_v5, %s4072_s12 }
 0x71c   : > { %2383 = vrot.lane.b32.xlu0 %v2369_v12, %s4075_s15 }
 0x71f   : > { %2311 = vrot.lane.b32.xlu1 %v2294_v3, %s4073_s13 }
 0x720   : > { %2309 = vrot.lane.b32.xlu0 %v2293_v27, %s4073_s13 }
 0x723   : > { %2379 = vrot.lane.b32.xlu1 %v2367_v43, %s4075_s15 }
 0x724   : > { %2385 = vrot.lane.b32.xlu0 %v2370_v61, %s4075_s15 }
 0x727   : > { %2389 = vrot.lane.b32.xlu1 %v2372_v26, %s4075_s15 }
 0x728   : > { %2425 = vrot.lane.b32.xlu0 %v2411_v10, %s4074_s14 }
 0x72b   : > { %2423 = vrot.lane.b32.xlu1 %v2410_v47, %s4074_s14 }
 0x72c   : > { %2427 = vrot.lane.b32.xlu0 %v2412_v0, %s4074_s14 }
 0x72f   : > { %2421 = vrot.lane.b32.xlu1 %v2409_v54, %s4074_s14 }
 0x730   : > { %2387 = vrot.lane.b32.xlu0 %v2371_v44, %s4075_s15 }
 0x733   : > { %2431 = vrot.lane.b32.xlu1 %v2414_v16, %s4074_s14 }
 0x734   : > { %2461 = vrot.lane.b32.xlu0 %v5370_v63, %s4076_s16  ;;  %v2490_v63 = vsel %vm6072_vm13, %v5394_v53, 0 }
 0x737   : > { %2459 = vrot.lane.b32.xlu1 %v5356_v29, %s4076_s16  ;;  %v2492_v29 = vsel %vm6071_vm4, %v5442_v50, 0  ;;  %vm6077_vm4 = vcmask 1031168  }
 0x738   : > { %2429 = vrot.lane.b32.xlu0 %v2413_v19, %s4074_s14  ;;  %vm6078_vm13 = vmmov %vm6077_vm4 }
 0x73b   : > { %2457 = vrot.lane.b32.xlu1 %v5365_v51, %s4076_s16  ;;  %v2653_v51 = vld [vmem:[%s5898_s8] sm:$0xff] }
 0x73c   : > { %2465 = vrot.lane.b32.xlu0 %v5376_v33, %s4076_s16  ;;  %v2654_v33 = vld [vmem:[%s5898_s8 + $0x8] sm:$0xff] }
 0x73f   : > { %2467 = vrot.lane.b32.xlu1 %v5442_v50, %s4076_s16 }
 0x740   : > { %2463 = vrot.lane.b32.xlu0 %v5394_v53, %s4076_s16  ;;  %v2656_v53 = vld [vmem:[%s5898_s8 + $0x18] sm:$0xff] }
 0x743   : > { %2501 = vrot.lane.b32.xlu1 %v2488_v36, %s4077_s20 }
 0x744   : > { %2503 = vrot.lane.b32.xlu0 %v2489_v59, %s4077_s20 }
 0x747   : > { %2499 = vrot.lane.b32.xlu1 %v2487_v8, %s4077_s20 }
 0x748   : > { %2507 = vrot.lane.b32.xlu0 %v2491_v9, %s4077_s20 }
 0x74b   : > { %2509 = vrot.lane.b32.xlu1 %v2492_v29, %s4077_s20 }
 0x74c   : > { %2505 = vrot.lane.b32.xlu0 %v2490_v63, %s4077_s20 }
 0x74f   : > { %2659 = vperm.xlu1 %4011, %v2653_v51  }
 0x750   : > { %2664 = vperm.xlu0 %4010, %v2654_v33  }
 0x753   : > { %2669 = vperm.xlu1 %4011, %v2655_v41  }
 0x754   : > { %2674 = vperm.xlu0 %4010, %v2656_v53  }
 0x761   : > { %v2218_v14 = vpop.permute.xlu1 %2217 }
 0x762   : > { %v2222_v22 = vpop.permute.xlu0 %2221 }
 0x765   : > { %v2338_v6 = vpop.permute.xlu1 %2337 }
 0x766   : > { %v2342_v11 = vpop.permute.xlu0 %2341 }
 0x769   : > { %v2260_v46 = vpop.permute.xlu1 %2259 }
 0x76a   : > { %v2264_v48 = vpop.permute.xlu0 %2263 }
 0x76d   : > { %v2302_v34 = vpop.permute.xlu1 %2301 }
 0x76e   : > { %v2306_v24 = vpop.permute.xlu0 %2305 }
 0x771   : > { %v2220_v55 = vpop.permute.xlu1 %2219 }
 0x772   : > { %v2229_v50 = vsel %vm6073_vm12, %v2218_v14, %v2220_v55  ;;  %v2230_v2 = vsel %vm6074_vm7, %v2220_v55, %v2222_v22  ;;  %v2224_v5 = vpop.permute.xlu0 %2223  ;;  %vm6079_vm12 = vcmask 916480   ;;  %v2537_v55 = vld [vmem:[%s5897_s7 + $0x70] sm:$0xff] }
 0x773   : > { %2886 = vmatprep.subr.bf16.mxu1 %v2230_v2  ;;  %3674 = vmatprep.subr.bf16.mxu0 %v2230_v2  ;;  %vm6080_vm7 = vmmov %vm6079_vm12 }
 0x774   : > { %2887 = vmatpush1.bf16.msra.mxu1 %v2229_v50  ;;  %3675 = vmatpush1.bf16.msra.mxu0 %v2229_v50 }
 0x775   : > { %v2340_v12 = vpop.permute.xlu1 %2339 }
 0x776   : > { %v2349_v3 = vsel %vm6075_vm9, %v2338_v6, %v2340_v12  ;;  %v2350_v27 = vsel %vm6076_vm0, %v2340_v12, %v2342_v11  ;;  %v2344_v60 = vpop.permute.xlu0 %2343  ;;  %vm6082_vm9 = vmmov %vm6081_vm6 }
 0x779   : > { %v2262_v52 = vpop.permute.xlu1 %2261 }
 0x77a   : > { %v2271_v30 = vsel %vm6077_vm4, %v2260_v46, %v2262_v52  ;;  %v2272_v7 = vsel %vm6078_vm13, %v2262_v52, %v2264_v48  ;;  %v2266_v43 = vpop.permute.xlu0 %2265  ;;  %vm6083_vm4 = vmmov %vm6076_vm0 }
 0x77d   : > { %v2304_v61 = vpop.permute.xlu1 %2303 }
 0x77e   : > { %v2313_v26 = vsel %vm6079_vm12, %v2302_v34, %v2304_v61  ;;  %v2314_v10 = vsel %vm6080_vm7, %v2304_v61, %v2306_v24  ;;  %v2308_v45 = vpop.permute.xlu0 %2307  ;;  %vm6085_vm12 = vcmask 900096   ;;  %v2533_v24 = vld [vmem:[%s5897_s7 + $0x50] sm:$0xff] }
 0x77f   : > { %v3885_v12 = vcombine.high %v2533_v24, %v2537_v55 }
 0x781   : > { %v2382_v39 = vpop.permute.xlu1 %2381 }
 0x782   : > { %v2226_v47 = vpop.permute.xlu0 %2225 }
 0x783   : > { %v2231_v0 = vsel %vm6081_vm6, %v2224_v5, %v2226_v47  ;;  %vm6084_vm6 = vmmov %vm6078_vm13 }
 0x785   : > { %v2228_v54 = vpop.permute.xlu1 %2227 }
 0x786   : > { %v2232_v44 = vsel %vm6082_vm9, %v2226_v47, %v2228_v54  ;;  %v2346_v16 = vpop.permute.xlu0 %2345  ;;  %vm6086_vm9 = vmmov %vm6080_vm7 }
 0x787   : > { %v2351_v19 = vsel %vm6076_vm0, %v2344_v60, %v2346_v16  ;;  %2888 = vmatprep.subr.bf16.mxu1 %v2232_v44  ;;  %3676 = vmatprep.subr.bf16.mxu0 %v2232_v44  ;;  %vm6087_vm0 = vmmov %vm6085_vm12 }
 0x788   : > { %2889 = vmatpush1.bf16.msra.mxu1 %v2231_v0  ;;  %3677 = vmatpush1.bf16.msra.mxu0 %v2231_v0 }
 0x789   : > { %v2348_v36 = vpop.permute.xlu1 %2347  ;;  %2890 = vmatprep.subr.bf16.mxu1 %v2272_v7  ;;  %3678 = vmatprep.subr.bf16.mxu0 %v2272_v7  ;;  %v3884_v7 = vcombine.low %v2533_v24, %v2537_v55 }
 0x78a   : > { %v2352_v59 = vsel %vm6083_vm4, %v2346_v16, %v2348_v36  ;;  %v2268_v8 = vpop.permute.xlu0 %2267  ;;  %vm6088_vm4 = vcmask 785408  }
 0x78b   : > { %v2273_v9 = vsel %vm6078_vm13, %v2266_v43, %v2268_v8  ;;  %vm6089_vm13 = vmmov %vm6088_vm4  ;;  %v3879_v43 = vcombine.high %v5624_v40, %v2530_v49 }
 0x78c   : > { %2891 = vmatpush1.bf16.msra.mxu1 %v2271_v30  ;;  %3679 = vmatpush1.bf16.msra.mxu0 %v2271_v30 }
 0x78d   : > { %v2270_v29 = vpop.permute.xlu1 %2269 }
 0x78e   : > { %v2274_v63 = vsel %vm6084_vm6, %v2268_v8, %v2270_v29  ;;  %v2384_v51 = vpop.permute.xlu0 %2383  ;;  %vm6090_vm6 = vmmov %vm6087_vm0 }
 0x78f   : > { %v2392_v33 = vsel %vm6085_vm12, %v2382_v39, %v2384_v51  ;;  %2892 = vmatprep.subr.bf16.mxu1 %v2274_v63  ;;  %3680 = vmatprep.subr.bf16.mxu0 %v2274_v63  ;;  %vm6091_vm12 = vmmov %vm6087_vm0 }
 0x790   : > { %2893 = vmatpush1.bf16.msra.mxu1 %v2273_v9  ;;  %3681 = vmatpush1.bf16.msra.mxu0 %v2273_v9 }
 0x791   : > { %v2312_v41 = vpop.permute.xlu1 %2311  ;;  %2894 = vmatprep.subr.bf16.mxu1 %v2314_v10  ;;  %3682 = vmatprep.subr.bf16.mxu0 %v2314_v10 }
 0x792   : > { %v2310_v53 = vpop.permute.xlu0 %2309 }
 0x793   : > { %v2315_v14 = vsel %vm6080_vm7, %v2308_v45, %v2310_v53  ;;  %v2316_v22 = vsel %vm6086_vm9, %v2310_v53, %v2312_v41  ;;  %vm6092_vm7 = vcmask 777216   ;;  %vm6093_vm9 = vcmask 130048   ;;  %v2534_v41 = vld [vmem:[%s5897_s7 + $0x58] sm:$0xff] }
 0x794   : > { %2895 = vmatpush1.bf16.msra.mxu1 %v2313_v26  ;;  %3683 = vmatpush1.bf16.msra.mxu0 %v2313_v26  ;;  %v2538_v53 = vld [vmem:[%s5897_s7 + $0x78] sm:$0xff] }
 0x795   : > { %v2380_v6 = vpop.permute.xlu1 %2379  ;;  %2896 = vmatprep.subr.bf16.mxu1 %v2316_v22  ;;  %3684 = vmatprep.subr.bf16.mxu0 %v2316_v22 }
 0x796   : > { %v2391_v11 = vsel %vm6087_vm0, %v2380_v6, %v2382_v39  ;;  %v2386_v46 = vpop.permute.xlu0 %2385  ;;  %vm6094_vm0 = vmmov %vm6088_vm4 }
 0x798   : > { %2897 = vmatpush1.bf16.msra.mxu1 %v2315_v14  ;;  %3685 = vmatpush1.bf16.msra.mxu0 %v2315_v14 }
 0x799   : > { %v2390_v48 = vpop.permute.xlu1 %2389  ;;  %2898 = vmatprep.subr.bf16.mxu1 %v2350_v27  ;;  %3686 = vmatprep.subr.bf16.mxu0 %v2350_v27 }
 0x79a   : > { %v2426_v34 = vpop.permute.xlu0 %2425 }
 0x79c   : > { %2899 = vmatpush1.bf16.msra.mxu1 %v2349_v3  ;;  %3687 = vmatpush1.bf16.msra.mxu0 %v2349_v3 }
 0x79d   : > { %v2424_v50 = vpop.permute.xlu1 %2423  ;;  %2921 = vmatprep.subr.bf16.mxu1 %v2352_v59  ;;  %3697 = vmatprep.subr.bf16.mxu0 %v2352_v59 }
 0x79e   : > { %v2434_v2 = vsel %vm6088_vm4, %v2424_v50, %v2426_v34  ;;  %v2428_v5 = vpop.permute.xlu0 %2427  ;;  %vm6095_vm4 = vmmov %vm6094_vm0 }
 0x79f   : > { %2901 = vmatmul.mubr.bf16.vlgmr.msra.gmra.mrb[24].mxu1 %v3876_v21  ;;  %3689 = vmatmul.mubr.bf16.vlgmr.msra.gmra.mrb[8].mxu0 %v5512_v25 }
 0x7a0   : > { %2922 = vmatpush1.bf16.msra.mxu1 %v2351_v19  ;;  %3698 = vmatpush1.bf16.msra.mxu0 %v2351_v19 }
 0x7a1   : > { %v2422_v27 = vpop.permute.xlu1 %2421  ;;  %2923 = vmatprep.subr.bf16.mxu1 %v2392_v33  ;;  %3699 = vmatprep.subr.bf16.mxu0 %v2392_v33 }
 0x7a2   : > { %v2433_v3 = vsel %vm6089_vm13, %v2422_v27, %v2424_v50  ;;  %v2388_v60 = vpop.permute.xlu0 %2387  ;;  %2910 = vmatprep.mubr.bf16.mxu1 %v3885_v12  ;;  %vm6096_vm13 = vmmov %vm6092_vm7 }
 0x7a3   : > { %v2393_v52 = vsel %vm6090_vm6, %v2386_v46, %v2388_v60  ;;  %v2394_v30 = vsel %vm6091_vm12, %v2388_v60, %v2390_v48  ;;  %vm6097_vm6 = vmmov %vm6092_vm7  ;;  %v3887_v46 = vcombine.high %v2534_v41, %v2538_v53  ;;  %v3886_v48 = vcombine.low %v2534_v41, %v2538_v53 }
 0x7a4   : > { %2924 = vmatpush1.bf16.msra.mxu1 %v2391_v11  ;;  %3700 = vmatpush1.bf16.msra.mxu0 %v2391_v11  ;;  %vm6098_vm12 = vmmov %vm6097_vm6  ;;  %v3878_v11 = vcombine.low %v5624_v40, %v2530_v49 }
 0x7a5   : > { %v2432_v21 = vpop.permute.xlu1 %2431  ;;  %2925 = vmatprep.subr.bf16.mxu1 %v2394_v30  ;;  %3701 = vmatprep.subr.bf16.mxu0 %v2394_v30 }
 0x7a6   : > { %v2462_v25 = vpop.permute.xlu0 %2461 }
 0x7a7   : > { %2911 = vmatmul.mubr.bf16.gmra.mrb[28].mxu1 %v3884_v7 }
 0x7a8   : > { %2926 = vmatpush1.bf16.msra.mxu1 %v2393_v52  ;;  %3702 = vmatpush1.bf16.msra.mxu0 %v2393_v52 }
 0x7a9   : > { %v2460_v61 = vpop.permute.xlu1 %2459  ;;  %2927 = vmatprep.subr.bf16.mxu1 %v2434_v2  ;;  %3703 = vmatprep.subr.bf16.mxu0 %v2434_v2 }
 0x7aa   : > { %v2470_v26 = vsel %vm6092_vm7, %v2460_v61, %v2462_v25  ;;  %v2430_v10 = vpop.permute.xlu0 %2429  ;;  %3888 = vmatprep.mubr.msk.bf16.mxu1 %vm6093_vm9, %v3879_v43  ;;  %vm6099_vm7 = vcmask 769024  }
 0x7ab   : > { %v2435_v45 = vsel %vm6094_vm0, %v2428_v5, %v2430_v10  ;;  %v2436_v39 = vsel %vm6095_vm4, %v2430_v10, %v2432_v21  ;;  %vm6100_vm9 = vmmov %vm6099_vm7 }
 0x7ac   : > { %2928 = vmatpush1.bf16.msra.mxu1 %v2433_v3  ;;  %3704 = vmatpush1.bf16.msra.mxu0 %v2433_v3  ;;  %vm6101_vm0 = vmmov %vm6099_vm7 }
 0x7ad   : > { %v2458_v47 = vpop.permute.xlu1 %2457  ;;  %2929 = vmatprep.subr.bf16.mxu1 %v2436_v39  ;;  %3705 = vmatprep.subr.bf16.mxu0 %v2436_v39  ;;  %vm6102_vm4 = vmmov %vm6101_vm0 }
 0x7ae   : > { %v2469_v0 = vsel %vm6096_vm13, %v2458_v47, %v2460_v61  ;;  %v2466_v54 = vpop.permute.xlu0 %2465  ;;  %vm6103_vm13 = vcmask 130048  }
 0x7b0   : > { %2930 = vmatpush1.bf16.msra.mxu1 %v2435_v45  ;;  %3706 = vmatpush1.bf16.msra.mxu0 %v2435_v45 }
 0x7b1   : > { %v2468_v44 = vpop.permute.xlu1 %2467  ;;  %2931 = vmatprep.subr.bf16.mxu1 %v2470_v26  ;;  %3707 = vmatprep.subr.bf16.mxu0 %v2470_v26 }
 0x7b2   : > { %v2472_v16 = vsel %vm6097_vm6, %v2466_v54, %v2468_v44  ;;  %v2464_v19 = vpop.permute.xlu0 %2463 }
 0x7b3   : > { %v2471_v36 = vsel %vm6098_vm12, %v2464_v19, %v2466_v54 }
 0x7b4   : > { %2932 = vmatpush1.bf16.msra.mxu1 %v2469_v0  ;;  %3708 = vmatpush1.bf16.msra.mxu0 %v2469_v0 }
 0x7b5   : > { %v2502_v59 = vpop.permute.xlu1 %2501  ;;  %2933 = vmatprep.subr.bf16.mxu1 %v2472_v16  ;;  %3709 = vmatprep.subr.bf16.mxu0 %v2472_v16 }
 0x7b6   : > { %v2504_v8 = vpop.permute.xlu0 %2503 }
 0x7b7   : > { %v2512_v9 = vsel %vm6099_vm7, %v2502_v59, %v2504_v8 }
 0x7b8   : > { %2934 = vmatpush1.bf16.msra.mxu1 %v2471_v36  ;;  %3710 = vmatpush1.bf16.msra.mxu0 %v2471_v36 }
 0x7b9   : > { %v2500_v29 = vpop.permute.xlu1 %2499  ;;  %2935 = vmatprep.subr.bf16.mxu1 %v2512_v9  ;;  %3711 = vmatprep.subr.bf16.mxu0 %v2512_v9 }
 0x7ba   : > { %v2511_v63 = vsel %vm6100_vm9, %v2500_v29, %v2502_v59  ;;  %v2508_v51 = vpop.permute.xlu0 %2507 }
 0x7bc   : > { %2936 = vmatpush1.bf16.msra.mxu1 %v2511_v63  ;;  %3712 = vmatpush1.bf16.msra.mxu0 %v2511_v63 }
 0x7bd   : > { %v2510_v33 = vpop.permute.xlu1 %2509 }
 0x7be   : > { %v2514_v14 = vsel %vm6101_vm0, %v2508_v51, %v2510_v33  ;;  %v2506_v22 = vpop.permute.xlu0 %2505 }
 0x7bf   : > { %v2513_v6 = vsel %vm6102_vm4, %v2506_v22, %v2508_v51  ;;  %2937 = vmatprep.subr.bf16.mxu1 %v2514_v14  ;;  %3713 = vmatprep.subr.bf16.mxu0 %v2514_v14 }
 0x7c0   : > { %2938 = vmatpush1.bf16.msra.mxu1 %v2513_v6  ;;  %3714 = vmatpush1.bf16.msra.mxu0 %v2513_v6 }
 0x7c3   : > { %2954 = vmatmul.mubr.bf16.vlgmr.msra.gmra.mrb[24].mxu1 %v3878_v11 }
 0x7c4   : > { %3889 = vmatprep.mubr.msk.bf16.mxu1 %vm6103_vm13, %v3887_v46 }
 0x7cb   : > { %2964 = vmatmul.mubr.bf16.gmra.mrb[28].mxu1 %v3886_v48 }
 0x7ce   : > { %v2660_v34 = vpop.permute.xlu1 %2659 }
 0x7cf   : > { %v2665_v2 = vpop.permute.xlu0 %2664 }
 0x7d2   : > { %v2670_v25 = vpop.permute.xlu1 %2669 }
 0x7d3   : > { %v2675_v0 = vpop.permute.xlu0 %2674 }
 0x896   : > { %v2955_v24 = vpop.f32.mrb[24].mxu1 }
 0x897   : > { %v3920_v55 = vadd.f32 %v2955_v24, %v2660_v34  ;;  %v2957_v50 = vpop.f32.mrb[25].mxu1 }
 0x898   : > { %v3921_v5 = vadd.f32 %v2957_v50, %v2660_v34  ;;  %v2959_v12 = vpop.f32.mrb[26].mxu1 }
 0x899   : > { %v2982_v27 = vmul.f32 0.01, %v3920_v55  ;;  %v3922_v3 = vadd.f32 %v2959_v12, %v2665_v2  ;;  %v2961_v60 = vpop.f32.mrb[27].mxu1  ;;  %vm2974_vm6 = vcmp.ge.f32.partialorder %v3920_v55, 0.0 }
 0x89a   : > { %v2983_v52 = vmul.f32 0.01, %v3921_v5  ;;  %v3923_v30 = vadd.f32 %v2961_v60, %v2665_v2  ;;  %vm2975_vm12 = vcmp.ge.f32.partialorder %v3921_v5, 0.0 }
 0x89b   : > { %vm2976_vm7 = vcmp.ge.f32.partialorder %v3922_v3, 0.0  ;;  %v2984_v7 = vmul.f32 0.01, %v3922_v3  ;;  %v2990_v49 = vsel %vm2974_vm6, %v3920_v55, %v2982_v27 }
 0x89c   : > { %vm2977_vm9 = vcmp.ge.f32.partialorder %v3923_v30, 0.0  ;;  %v2985_v40 = vmul.f32 0.01, %v3923_v30  ;;  %v2991_v43 = vsel %vm2975_vm12, %v3921_v5, %v2983_v52  ;;  %vm6113_vm12 = vcmp.ne.s16.totalorder %v6058_v42, 0 }
 0x89d   : > { %v2992_v21 = vsel %vm2976_vm7, %v3922_v3, %v2984_v7  ;;  %vm6114_vm7 = vmmov %vm6113_vm12 }
 0x89e   : > { %v2998_v61 = vpack.c.bf16 %v2992_v21, %v2990_v49  ;;  %v2993_v26 = vsel %vm2977_vm9, %v3923_v30, %v2985_v40  ;;  %v2965_v10 = vpop.f32.mrb[28].mxu1 }
 0x89f   : > { %v2999_v45 = vpack.c.bf16 %v2993_v26, %v2991_v43  ;;  %v3924_v39 = vadd.f32 %v2965_v10, %v2670_v25  ;;  %v2967_v47 = vpop.f32.mrb[29].mxu1 }
 0x8a0   : > { %v3925_v54 = vadd.f32 %v2967_v47, %v2670_v25  ;;  %v2969_v44 = vpop.f32.mrb[30].mxu1  ;;  %3006 = vrot.lane.b32.xlu1 %v2998_v61, %s4064_s23  ;;  %v5761_v25 = vrot.slane %v3537_v28, %v5283_v1 }
 0x8a1   : > { %v2986_v16 = vmul.f32 0.01, %v3924_v39  ;;  %v3926_v19 = vadd.f32 %v2969_v44, %v2675_v0  ;;  %v2971_v36 = vpop.f32.mrb[31].mxu1  ;;  %3008 = vrot.lane.b32.xlu0 %v2999_v45, %s4064_s23  ;;  %vm2978_vm0 = vcmp.ge.f32.partialorder %v3924_v39, 0.0 }
 0x8a2   : > { %v2987_v59 = vmul.f32 0.01, %v3925_v54  ;;  %v3927_v8 = vadd.f32 %v2971_v36, %v2675_v0  ;;  %vm2979_vm4 = vcmp.ge.f32.partialorder %v3925_v54, 0.0  ;;  %v3511_v0 = vld [vmem:[%s5900_s10] sm:$0xf] }
 0x8a3   : > { %vm2980_vm13 = vcmp.ge.f32.partialorder %v3926_v19, 0.0  ;;  %v2988_v9 = vmul.f32 0.01, %v3926_v19  ;;  %v2994_v63 = vsel %vm2978_vm0, %v3924_v39, %v2986_v16 }
 0x8a4   : > { %vm2981_vm6 = vcmp.ge.f32.partialorder %v3927_v8, 0.0  ;;  %v2989_v29 = vmul.f32 0.01, %v3927_v8  ;;  %v2995_v33 = vsel %vm2979_vm4, %v3925_v54, %v2987_v59 }
 0x8a5   : > { %v2996_v51 = vsel %vm2980_vm13, %v3926_v19, %v2988_v9  ;;  %vm6118_vm13 = vcmp.ne.s16.totalorder %v6064_v58, 0 }
 0x8a6   : > { %v3000_v41 = vpack.c.bf16 %v2996_v51, %v2994_v63  ;;  %v2997_v53 = vsel %vm2981_vm6, %v3927_v8, %v2989_v29  ;;  %vm6119_vm6 = vcmp.ne.s16.totalorder %v6066_v57, 0 }
 0x8a7   : > { %v3001_v14 = vpack.c.bf16 %v2997_v53, %v2995_v33 }
 0x8a8   : > { %3010 = vrot.lane.b32.xlu1 %v3000_v41, %s4064_s23 }
 0x8a9   : > { %3012 = vrot.lane.b32.xlu0 %v3001_v14, %s4064_s23 }
 0x912   : > { %v3007_v22 = vpop.permute.xlu1 %3006 }
 0x913   : > { %3022 = vst.msk [vmem:[#allocation2] sm:$0xff] %vm870_vm5, %v3007_v22  ;;  %v3009_v6 = vpop.permute.xlu0 %3008 }
 0x914   : > { %v5655_v11 = vsel %vm442_vm8, %v3007_v22, %v3009_v6  ;;  %3024 = vst.msk [vmem:[#allocation2 + $0x10] sm:$0xff] %vm442_vm8, %v3009_v6 }
 0x915   : > { %3023 = vst [vmem:[#allocation2 + $0x8] sm:$0xff] %v5655_v11  ;;  %4053 = vmatprep.subr.msk.bf16.mxu0 %vm469_vm15, %v5655_v11  ;;  %v3083_v17 = vsel %vm520_vm3, %v5655_v11, 0 }
 0x91a   : > { %v3011_v46 = vpop.permute.xlu1 %3010  ;;  %v5662_v48 = vld [vmem:[#allocation2] sm:$0xff] }
 0x91b   : > { %3025 = vst.msk [vmem:[#allocation2 + $0x18] sm:$0xff] %vm870_vm5, %v3011_v46  ;;  %3052 = vrot.lane.b32.xlu1 %v5662_v48, %s4071_s30  ;;  %v3013_v34 = vpop.permute.xlu0 %3012  ;;  %v5667_v24 = vld [vmem:[#allocation2 + $0x10] sm:$0xff]  ;;  %v3032_v55 = vsel %vm468_vm1, %v5662_v48, 0  ;;  %v3082_v2 = vsel %vm519_vm10, %v5662_v48, 0  ;;  %v3124_v27 = vsel %vm553_vm11, %v5662_v48, 0  ;;  %vm6112_vm5 = vcmp.ne.s16.totalorder %v6056_v37, 0 }
 0x91c   : > { %v5673_v50 = vsel %vm442_vm8, %v3011_v46, %v3013_v34  ;;  %3027 = vst.msk [vmem:[#allocation2 + $0x28] sm:$0xff] %vm442_vm8, %v3013_v34  ;;  %3056 = vrot.lane.b32.xlu0 %v5667_v24, %s4071_s30  ;;  %3716 = vmatpush1.bf16.msra.mxu0 %v3032_v55  ;;  %v3084_v12 = vsel %vm521_vm14, %v5667_v24, 0  ;;  %v3126_v3 = vsel %vm555_vm2, %v5667_v24, 0  ;;  %vm6104_vm8 = vcmp.ne.s16.totalorder %v4261_v13, 0  ;;  %vm6117_vm4 = vmmov %vm6112_vm5 }
 0x91d   : > { %4054 = vmatprep.subr.msk.bf16.mxu0 %vm469_vm15, %v5673_v50  ;;  %v3125_v52 = vsel %vm6104_vm8, %v5655_v11, 0  ;;  %vm6105_vm15 = vcmp.ne.s16.totalorder %v6046_v31, 0  ;;  %v3086_v23 = vsel %vm520_vm3, %v5673_v50, 0  ;;  %v3553_v13 = vcombine.high %v5761_v25, %v5761_v25 }
 0x91e   : > { %v3203_v7 = vsel %vm6105_vm15, %v5655_v11, 0  ;;  %vm6111_vm3 = vcmp.ne.s16.totalorder %v6054_v62, 0  ;;  %vm6115_vm9 = vmmov %vm6105_vm15  ;;  %v3248_v42 = vsel %vm6117_vm4, %v5673_v50, 0  ;;  %v3323_v31 = vsel %vm6118_vm13, %v5655_v11, 0 }
 0x91f   : > { %3172 = vrot.lane.b32.xlu1 %v5662_v48, %s4070_s29  ;;  %3729 = vmatprep.mubr.bf16.mxu0 %v3553_v13  ;;  %v3246_v56 = vsel %vm6111_vm3, %v5667_v24, 0  ;;  %v3206_v26 = vsel %vm6115_vm9, %v5673_v50, 0  ;;  %vm6116_vm0 = vmmov %vm6111_vm3  ;;  %v3324_v62 = vsel %vm6119_vm6, %v5667_v24, 0 }
 0x920   : > { %3176 = vrot.lane.b32.xlu0 %v5667_v24, %s4070_s29  ;;  %vm6121_vm15 = vmmov %vm6118_vm13 }
 0x921   : > { %v3326_v45 = vsel %vm6121_vm15, %v5673_v50, 0 }
 0x922   : > { %v5688_v5 = vld [vmem:[#allocation2 + $0x18] sm:$0xff] }
 0x923   : > { %3094 = vrot.lane.b32.xlu1 %v3082_v2, %s4072_s12  ;;  %v3034_v18 = vsel %vm468_vm1, %v5688_v5, 0  ;;  %v3085_v60 = vsel %vm519_vm10, %v5688_v5, 0  ;;  %v3127_v30 = vsel %vm553_vm11, %v5688_v5, 0  ;;  %v3045_v20 = vld [vmem:[#allocation2 + $0x28] sm:$0xff]  ;;  %vm6106_vm10 = vcmp.ne.s16.totalorder %v6048_v15, 0  ;;  %vm6107_vm11 = vmmov %vm6104_vm8 }
 0x924   : > { %3098 = vrot.lane.b32.xlu0 %v3084_v12, %s4072_s12  ;;  %3718 = vmatpush1.bf16.msra.mxu0 %v3034_v18  ;;  %v3087_v40 = vsel %vm521_vm14, %v3045_v20, 0  ;;  %v3204_v49 = vsel %vm6106_vm10, %v5667_v24, 0  ;;  %v3129_v21 = vsel %vm555_vm2, %v3045_v20, 0  ;;  %v3128_v4 = vsel %vm6107_vm11, %v5673_v50, 0  ;;  %vm6110_vm2 = vmmov %vm6106_vm10 }
 0x925   : > { %vm6108_vm14 = vcmp.ne.s16.totalorder %v6050_v38, 0  ;;  %v3207_v1 = vsel %vm6110_vm2, %v3045_v20, 0  ;;  %v3245_v38 = vsel %vm6112_vm5, %v5655_v11, 0  ;;  %v3247_v61 = vsel %vm6113_vm12, %v5688_v5, 0  ;;  %vm6122_vm10 = vmmov %vm6119_vm6 }
 0x926   : > { %v3202_v43 = vsel %vm6108_vm14, %v5662_v48, 0  ;;  %vm6109_vm1 = vmmov %vm6108_vm14  ;;  %v3244_v15 = vsel %vm6114_vm7, %v5662_v48, 0  ;;  %v3249_v10 = vsel %vm6116_vm0, %v3045_v20, 0  ;;  %vm6120_vm8 = vcmp.ne.s16.totalorder %v6068_v32, 0 }
 0x927   : > { %3136 = vrot.lane.b32.xlu1 %v3124_v27, %s4073_s13  ;;  %v3205_v35 = vsel %vm6109_vm1, %v5688_v5, 0  ;;  %v3322_v37 = vsel %vm6120_vm8, %v5662_v48, 0  ;;  %v3327_v39 = vsel %vm6122_vm10, %v3045_v20, 0  ;;  %vm6123_vm11 = vmmov %vm6120_vm8  ;;  %vm6124_vm14 = vcmask 1039360  }
 0x928   : > { %3140 = vrot.lane.b32.xlu0 %v3126_v3, %s4073_s13  ;;  %v3325_v47 = vsel %vm6123_vm11, %v5688_v5, 0  ;;  %vm6125_vm1 = vmmov %vm6124_vm14  ;;  %vm6126_vm2 = vcmask 908288   ;;  %vm6128_vm5 = vcmask 1031168   ;;  %vm6130_vm7 = vcmask 916480  }
 0x929   : > { %vm6127_vm3 = vmmov %vm6126_vm2  ;;  %vm6138_vm10 = vcmask 900096  }
 0x92a   : > { %vm6129_vm12 = vmmov %vm6128_vm5 }
 0x92b   : > { %3054 = vrot.lane.b32.xlu1 %v5655_v11, %s4071_s30  ;;  %vm6131_vm9 = vmmov %vm6130_vm7 }
 0x92c   : > { %3058 = vrot.lane.b32.xlu0 %v5688_v5, %s4071_s30  ;;  %vm6132_vm0 = vmmov %vm6125_vm1 }
 0x92d   : > { %vm6133_vm4 = vmmov %vm6132_vm0 }
 0x92e   : > { %vm6134_vm13 = vmmov %vm6126_vm2 }
 0x92f   : > { %3174 = vrot.lane.b32.xlu1 %v5655_v11, %s4070_s29  ;;  %vm6135_vm6 = vmmov %vm6126_vm2 }
 0x930   : > { %3178 = vrot.lane.b32.xlu0 %v5688_v5, %s4070_s29  ;;  %vm6136_vm8 = vmmov %vm6128_vm5 }
 0x931   : > { %vm6137_vm15 = vmmov %vm6128_vm5 }
 0x932   : > { %vm6139_vm11 = vmmov %vm6130_vm7 }
 0x933   : > { %3096 = vrot.lane.b32.xlu1 %v3083_v17, %s4072_s12 }
 0x934   : > { %3100 = vrot.lane.b32.xlu0 %v3085_v60, %s4072_s12 }
 0x937   : > { %3138 = vrot.lane.b32.xlu1 %v3125_v52, %s4073_s13 }
 0x938   : > { %3142 = vrot.lane.b32.xlu0 %v3127_v30, %s4073_s13 }
 0x93b   : > { %3216 = vrot.lane.b32.xlu1 %v3203_v7, %s4075_s15 }
 0x93c   : > { %3060 = vrot.lane.b32.xlu0 %v5673_v50, %s4071_s30 }
 0x93f   : > { %3062 = vrot.lane.b32.xlu1 %v3045_v20, %s4071_s30 }
 0x940   : > { %3180 = vrot.lane.b32.xlu0 %v5673_v50, %s4070_s29 }
 0x943   : > { %3182 = vrot.lane.b32.xlu1 %v3045_v20, %s4070_s29 }
 0x944   : > { %3102 = vrot.lane.b32.xlu0 %v3086_v23, %s4072_s12 }
 0x947   : > { %3104 = vrot.lane.b32.xlu1 %v3087_v40, %s4072_s12  ;;  %v5858_v40 = vld.sshfl [vmem:[%s5899_s9 + $0x10] sm:$0x33 pattern:$0x76325410] }
 0x948   : > { %3218 = vrot.lane.b32.xlu0 %v3204_v49, %s4075_s15  ;;  %v3561_v28 = vcombine.high %v5858_v40, %v5858_v40 }
 0x94b   : > { %3146 = vrot.lane.b32.xlu1 %v3129_v21, %s4073_s13 }
 0x94c   : > { %3144 = vrot.lane.b32.xlu0 %v3128_v4, %s4073_s13  ;;  %s6157_s13 = sshll.u32 %s6159_s18, 3 }
 0x94f   : > { %3214 = vrot.lane.b32.xlu1 %v3202_v43, %s4075_s15 }
 0x950   : > { %3220 = vrot.lane.b32.xlu0 %v3205_v35, %s4075_s15 }
 0x953   : > { %3224 = vrot.lane.b32.xlu1 %v3207_v1, %s4075_s15 }
 0x954   : > { %3260 = vrot.lane.b32.xlu0 %v3246_v56, %s4074_s14 }
 0x957   : > { %3258 = vrot.lane.b32.xlu1 %v3245_v38, %s4074_s14 }
 0x958   : > { %3262 = vrot.lane.b32.xlu0 %v3247_v61, %s4074_s14 }
 0x95b   : > { %3256 = vrot.lane.b32.xlu1 %v3244_v15, %s4074_s14 }
 0x95c   : > { %3222 = vrot.lane.b32.xlu0 %v3206_v26, %s4075_s15 }
 0x95f   : > { %3266 = vrot.lane.b32.xlu1 %v3249_v10, %s4074_s14 }
 0x960   : > { %3296 = vrot.lane.b32.xlu0 %v5667_v24, %s4076_s16 }
 0x963   : > { %3294 = vrot.lane.b32.xlu1 %v5655_v11, %s4076_s16 }
 0x964   : > { %3264 = vrot.lane.b32.xlu0 %v3248_v42, %s4074_s14 }
 0x967   : > { %3292 = vrot.lane.b32.xlu1 %v5662_v48, %s4076_s16 }
 0x968   : > { %3300 = vrot.lane.b32.xlu0 %v5673_v50, %s4076_s16 }
 0x96b   : > { %3302 = vrot.lane.b32.xlu1 %v3045_v20, %s4076_s16 }
 0x96c   : > { %3298 = vrot.lane.b32.xlu0 %v5688_v5, %s4076_s16  ;;  %s386_s16 = scalar_lea.vmem %s5901_s11, %s6157_s13 }
 0x96f   : > { %3336 = vrot.lane.b32.xlu1 %v3323_v31, %s4077_s20 }
 0x970   : > { %3338 = vrot.lane.b32.xlu0 %v3324_v62, %s4077_s20 }
 0x973   : > { %3334 = vrot.lane.b32.xlu1 %v3322_v37, %s4077_s20 }
 0x974   : > { %3342 = vrot.lane.b32.xlu0 %v3326_v45, %s4077_s20 }
 0x977   : > { %3344 = vrot.lane.b32.xlu1 %v3327_v39, %s4077_s20 }
 0x978   : > { %3340 = vrot.lane.b32.xlu0 %v3325_v47, %s4077_s20 }
 0x97b   : > { %3514 = vperm.xlu1 %4011, %v3511_v0  }
 0x98d   : > { %v3053_v58 = vpop.permute.xlu1 %3052 }
 0x98e   : > { %v3057_v54 = vpop.permute.xlu0 %3056 }
 0x991   : > { %v3173_v44 = vpop.permute.xlu1 %3172 }
 0x992   : > { %v3177_v16 = vpop.permute.xlu0 %3176 }
 0x995   : > { %v3095_v19 = vpop.permute.xlu1 %3094 }
 0x996   : > { %v3099_v57 = vpop.permute.xlu0 %3098 }
 0x999   : > { %v3137_v36 = vpop.permute.xlu1 %3136 }
 0x99a   : > { %v3141_v59 = vpop.permute.xlu0 %3140 }
 0x99d   : > { %v3055_v8 = vpop.permute.xlu1 %3054 }
 0x99e   : > { %v3064_v9 = vsel %vm6124_vm14, %v3053_v58, %v3055_v8  ;;  %v3065_v32 = vsel %vm6125_vm1, %v3055_v8, %v3057_v54  ;;  %v3059_v29 = vpop.permute.xlu0 %3058  ;;  %vm6140_vm14 = vmmov %vm6130_vm7 }
 0x99f   : > { %3719 = vmatprep.subr.bf16.mxu0 %v3065_v32  ;;  %vm6141_vm1 = vmmov %vm6138_vm10 }
 0x9a0   : > { %3720 = vmatpush1.bf16.msra.mxu0 %v3064_v9 }
 0x9a1   : > { %v3175_v63 = vpop.permute.xlu1 %3174 }
 0x9a2   : > { %v3184_v51 = vsel %vm6126_vm2, %v3173_v44, %v3175_v63  ;;  %v3185_v33 = vsel %vm6127_vm3, %v3175_v63, %v3177_v16  ;;  %v3179_v41 = vpop.permute.xlu0 %3178  ;;  %vm6142_vm2 = vcmask 392192   ;;  %vm6143_vm3 = vcmask 785408  }
 0x9a5   : > { %v3097_v53 = vpop.permute.xlu1 %3096 }
 0x9a6   : > { %v3106_v14 = vsel %vm6128_vm5, %v3095_v19, %v3097_v53  ;;  %v3107_v22 = vsel %vm6129_vm12, %v3097_v53, %v3099_v57  ;;  %v3101_v6 = vpop.permute.xlu0 %3100  ;;  %vm6144_vm5 = vmmov %vm6143_vm3 }
 0x9a7   : > { %vm6145_vm12 = vmmov %vm6141_vm1 }
 0x9a9   : > { %v3139_v11 = vpop.permute.xlu1 %3138 }
 0x9aa   : > { %v3148_v46 = vsel %vm6130_vm7, %v3137_v36, %v3139_v11  ;;  %v3149_v48 = vsel %vm6131_vm9, %v3139_v11, %v3141_v59  ;;  %v3143_v34 = vpop.permute.xlu0 %3142  ;;  %vm6146_vm7 = vmmov %vm6141_vm1  ;;  %vm6147_vm9 = vcmask 777216  }
 0x9ad   : > { %v3217_v24 = vpop.permute.xlu1 %3216 }
 0x9ae   : > { %v3061_v55 = vpop.permute.xlu0 %3060 }
 0x9af   : > { %v3066_v50 = vsel %vm6132_vm0, %v3059_v29, %v3061_v55  ;;  %vm6148_vm0 = vmmov %vm6143_vm3 }
 0x9b1   : > { %v3063_v2 = vpop.permute.xlu1 %3062 }
 0x9b2   : > { %v3067_v5 = vsel %vm6133_vm4, %v3061_v55, %v3063_v2  ;;  %v3181_v12 = vpop.permute.xlu0 %3180  ;;  %vm6149_vm4 = vmmov %vm6148_vm0 }
 0x9b3   : > { %v3186_v18 = vsel %vm6134_vm13, %v3179_v41, %v3181_v12  ;;  %3721 = vmatprep.subr.bf16.mxu0 %v3067_v5  ;;  %vm6150_vm13 = vmmov %vm6147_vm9 }
 0x9b4   : > { %3722 = vmatpush1.bf16.msra.mxu0 %v3066_v50 }
 0x9b5   : > { %v3183_v27 = vpop.permute.xlu1 %3182  ;;  %3723 = vmatprep.subr.bf16.mxu0 %v3107_v22 }
 0x9b6   : > { %v3187_v3 = vsel %vm6135_vm6, %v3181_v12, %v3183_v27  ;;  %v3103_v17 = vpop.permute.xlu0 %3102  ;;  %vm6151_vm6 = vmmov %vm6147_vm9 }
 0x9b7   : > { %v3108_v60 = vsel %vm6136_vm8, %v3101_v6, %v3103_v17  ;;  %vm6152_vm8 = vmmov %vm6151_vm6 }
 0x9b8   : > { %3724 = vmatpush1.bf16.msra.mxu0 %v3106_v14 }
 0x9b9   : > { %v3105_v52 = vpop.permute.xlu1 %3104 }
 0x9ba   : > { %v3109_v30 = vsel %vm6137_vm15, %v3103_v17, %v3105_v52  ;;  %v3219_v7 = vpop.permute.xlu0 %3218  ;;  %vm6153_vm15 = vcmask 769024  }
 0x9bb   : > { %v3227_v20 = vsel %vm6138_vm10, %v3217_v24, %v3219_v7  ;;  %3725 = vmatprep.subr.bf16.mxu0 %v3109_v30  ;;  %vm6154_vm10 = vmmov %vm6153_vm15 }
 0x9bc   : > { %3726 = vmatpush1.bf16.msra.mxu0 %v3108_v60 }
 0x9bd   : > { %v3147_v23 = vpop.permute.xlu1 %3146  ;;  %3727 = vmatprep.subr.bf16.mxu0 %v3149_v48 }
 0x9be   : > { %v3145_v49 = vpop.permute.xlu0 %3144 }
 0x9bf   : > { %v3150_v21 = vsel %vm6139_vm11, %v3143_v34, %v3145_v49  ;;  %v3151_v4 = vsel %vm6140_vm14, %v3145_v49, %v3147_v23  ;;  %vm6155_vm11 = vmmov %vm6154_vm10 }
 0x9c0   : > { %3728 = vmatpush1.bf16.msra.mxu0 %v3148_v46  ;;  %vm6156_vm14 = vmmov %vm6154_vm10 }
 0x9c1   : > { %v3215_v43 = vpop.permute.xlu1 %3214  ;;  %3738 = vmatprep.subr.bf16.mxu0 %v3151_v4 }
 0x9c2   : > { %v3226_v35 = vsel %vm6141_vm1, %v3215_v43, %v3217_v24  ;;  %v3221_v13 = vpop.permute.xlu0 %3220 }
 0x9c3   : > { %3730 = vmatmul.mubr.bf16.vlgmr.msra.gmra.mrb[8].mxu0 %v5761_v25 }
 0x9c4   : > { %3739 = vmatpush1.bf16.msra.mxu0 %v3150_v21  ;;  %3891 = vmatprep.mubr.msk.bf16.mxu0 %vm6142_vm2, %v3561_v28 }
 0x9c5   : > { %v3225_v1 = vpop.permute.xlu1 %3224  ;;  %3740 = vmatprep.subr.bf16.mxu0 %v3185_v33 }
 0x9c6   : > { %v3261_v56 = vpop.permute.xlu0 %3260 }
 0x9c8   : > { %3741 = vmatpush1.bf16.msra.mxu0 %v3184_v51 }
 0x9c9   : > { %v3259_v38 = vpop.permute.xlu1 %3258  ;;  %3742 = vmatprep.subr.bf16.mxu0 %v3187_v3 }
 0x9ca   : > { %v3269_v61 = vsel %vm6143_vm3, %v3259_v38, %v3261_v56  ;;  %v3263_v15 = vpop.permute.xlu0 %3262 }
 0x9cc   : > { %3743 = vmatpush1.bf16.msra.mxu0 %v3186_v18 }
 0x9cd   : > { %v3257_v26 = vpop.permute.xlu1 %3256  ;;  %3744 = vmatprep.subr.bf16.mxu0 %v3227_v20 }
 0x9ce   : > { %v3268_v10 = vsel %vm6144_vm5, %v3257_v26, %v3259_v38  ;;  %v3223_v42 = vpop.permute.xlu0 %3222 }
 0x9cf   : > { %v3228_v25 = vsel %vm6145_vm12, %v3221_v13, %v3223_v42  ;;  %v3229_v31 = vsel %vm6146_vm7, %v3223_v42, %v3225_v1 }
 0x9d0   : > { %3745 = vmatpush1.bf16.msra.mxu0 %v3226_v35 }
 0x9d1   : > { %v3267_v62 = vpop.permute.xlu1 %3266  ;;  %3746 = vmatprep.subr.bf16.mxu0 %v3229_v31 }
 0x9d2   : > { %v3297_v37 = vpop.permute.xlu0 %3296 }
 0x9d4   : > { %3747 = vmatpush1.bf16.msra.mxu0 %v3228_v25 }
 0x9d5   : > { %v3295_v45 = vpop.permute.xlu1 %3294  ;;  %3748 = vmatprep.subr.bf16.mxu0 %v3269_v61 }
 0x9d6   : > { %v3305_v39 = vsel %vm6147_vm9, %v3295_v45, %v3297_v37  ;;  %v3265_v47 = vpop.permute.xlu0 %3264 }
 0x9d7   : > { %v3270_v0 = vsel %vm6148_vm0, %v3263_v15, %v3265_v47  ;;  %v3271_v58 = vsel %vm6149_vm4, %v3265_v47, %v3267_v62 }
 0x9d8   : > { %3749 = vmatpush1.bf16.msra.mxu0 %v3268_v10 }
 0x9d9   : > { %v3293_v54 = vpop.permute.xlu1 %3292  ;;  %3750 = vmatprep.subr.bf16.mxu0 %v3271_v58 }
 0x9da   : > { %v3304_v44 = vsel %vm6150_vm13, %v3293_v54, %v3295_v45  ;;  %v3301_v16 = vpop.permute.xlu0 %3300 }
 0x9dc   : > { %3751 = vmatpush1.bf16.msra.mxu0 %v3270_v0 }
 0x9dd   : > { %v3303_v19 = vpop.permute.xlu1 %3302  ;;  %3752 = vmatprep.subr.bf16.mxu0 %v3305_v39 }
 0x9de   : > { %v3307_v57 = vsel %vm6151_vm6, %v3301_v16, %v3303_v19  ;;  %v3299_v36 = vpop.permute.xlu0 %3298 }
 0x9df   : > { %v3306_v59 = vsel %vm6152_vm8, %v3299_v36, %v3301_v16 }
 0x9e0   : > { %3753 = vmatpush1.bf16.msra.mxu0 %v3304_v44 }
 0x9e1   : > { %v3337_v8 = vpop.permute.xlu1 %3336  ;;  %3754 = vmatprep.subr.bf16.mxu0 %v3307_v57 }
 0x9e2   : > { %v3339_v9 = vpop.permute.xlu0 %3338 }
 0x9e3   : > { %v3347_v32 = vsel %vm6153_vm15, %v3337_v8, %v3339_v9 }
 0x9e4   : > { %3755 = vmatpush1.bf16.msra.mxu0 %v3306_v59 }
 0x9e5   : > { %v3335_v29 = vpop.permute.xlu1 %3334  ;;  %3756 = vmatprep.subr.bf16.mxu0 %v3347_v32 }
 0x9e6   : > { %v3346_v63 = vsel %vm6154_vm10, %v3335_v29, %v3337_v8  ;;  %v3343_v51 = vpop.permute.xlu0 %3342 }
 0x9e8   : > { %3757 = vmatpush1.bf16.msra.mxu0 %v3346_v63 }
 0x9e9   : > { %v3345_v33 = vpop.permute.xlu1 %3344 }
 0x9ea   : > { %v3349_v41 = vsel %vm6155_vm11, %v3343_v51, %v3345_v33  ;;  %v3341_v53 = vpop.permute.xlu0 %3340 }
 0x9eb   : > { %v3348_v14 = vsel %vm6156_vm14, %v3341_v53, %v3343_v51  ;;  %3758 = vmatprep.subr.bf16.mxu0 %v3349_v41 }
 0x9ec   : > { %3759 = vmatpush1.bf16.msra.mxu0 %v3348_v14 }
 0x9ef   : > { %3771 = vmatmul.mubr.bf16.vlgmr.msra.gmra.mrb[8].mxu0 %v5858_v40 }
 0x9fa   : > { %v3515_v22 = vpop.permute.xlu1 %3514 }
 0xac2   : > { %v3772_v6 = vpop.f32.mrb[8].mxu0 }
 0xac3   : > { %v3928_v11 = vadd.f32 %v3772_v6, %v3515_v22  ;;  %v3774_v46 = vpop.f32.mrb[9].mxu0 }
 0xac4   : > { %v3929_v48 = vadd.f32 %v3774_v46, %v3515_v22  ;;  %v3776_v34 = vpop.f32.mrb[10].mxu0 }
 0xac5   : > { %v3777_v24 = vpop.f32.mrb[11].mxu0 }
 0xac6   : > { %v3781_v55 = vcombine.low %v3928_v11, %v3929_v48 }
 0xac8   : > { %3783 = vst [vmem:[%s386_s16] sm:$0xff] %v3781_v55 }
 0xac9 PF: > { %s21_s17 = sadd.s32 1, %s4061_s17  }
 0xaca   : > { %p18_p4 = scmp.ge.s32.totalorder %s21_s17, 4  }
 0xacc   :  { %20 = sbr.rel (!%p18_p4) target bundleno = 1 (0x1), region = 94 }

</bundles_post_ra>
